<compile_context>
chip_gen: v7x
topology: tpu7x:2x2x1
jax: 0.10.0
libtpu: 0.0.40
codegen_flags: <defaults>
</compile_context>

<pallas_src>
import functools

import jax
import jax.numpy as jnp
from jax.experimental import pallas as pl
from jax.experimental.pallas import tpu as pltpu

_COMPILER_PARAMS = pltpu.CompilerParams(
    dimension_semantics=("parallel",),          # shard grid across TCs (v7x)
    vmem_limit_bytes=32 * 1024 * 1024,          # explicit; > v5e's 16 MiB default
)

# Budget for the double-buffered per-step input+output blocks of the 1x1
# stages (leaves headroom inside the 32 MiB scoped limit for weights/scratch).
_FPB_BUDGET_BYTES = 20 * 1024 * 1024


def _pick_frames_per_block(nt, frame_bytes, budget=_FPB_BUDGET_BYTES):
    """Largest frames-per-block dividing NT whose double-buffered blocks fit."""
    for f in (8, 4, 2, 1):
        if nt % f == 0 and 2 * f * frame_bytes <= budget:
            return f
    return 1


# =============================================================================
# Kernels
# =============================================================================
def _conv1_bn_kernel(x_ref, w_ref, s_ref, b_ref, o_ref, *, F):
    # 1x1 conv computed transposed: (cr, C) @ (C, S) -> (cr, S) per frame.
    # Output is lane-dense on S and already channel-major for the next stage.
    w = w_ref[...]
    s = s_ref[...]
    b = b_ref[...]
    for f in range(F):                       # static unroll, small F
        y = jnp.dot(w, x_ref[f], preferred_element_type=jnp.float32)
        o_ref[f] = y * s + b


def _temporal_spatial_kernel(y1_ref, w2_ref, w3_ref, s3_ref, b3_ref,
                             ml_ref, mr_ref, o_ref, pad_ref, *, T, H, W, lpad):
    # One video per grid step.
    #   y1_ref : (T, cr, S)   channel-major activations, S = H*W on lanes
    #   w2_ref : (3, cr, cr)  temporal taps [k, co, ci]
    #   w3_ref : (9, cr, cr)  spatial taps  [ky*3+kx, co, ci]
    #   ml/mr  : (1, S)       masks killing the width wrap of flattened-S shifts
    #   o_ref  : (T, cr, S)
    #   pad_ref: (cr, lpad + S + W + 1) VMEM scratch, zero halo around frame
    S = H * W

    # Re-zero every step (tiny VMEM store) so the halo is valid even when the
    # "parallel" grid axis is split across TensorCores; interior is rewritten
    # per frame below.
    pad_ref[...] = jnp.zeros_like(pad_ref)
    mask_l = ml_ref[...]
    mask_r = mr_ref[...]
    s3 = s3_ref[...]
    b3 = b3_ref[...]

    for t in range(T):  # static unroll: T = n_segment is small (default 8)
        # ---- temporal Conv1d(k=3, pad=1): ci-contraction on the MXU + ReLU --
        acc = jnp.dot(w2_ref[1], y1_ref[t], preferred_element_type=jnp.float32)
        if t > 0:
            acc = acc + jnp.dot(w2_ref[0], y1_ref[t - 1],
                                preferred_element_type=jnp.float32)
        if t < T - 1:
            acc = acc + jnp.dot(w2_ref[2], y1_ref[t + 1],
                                preferred_element_type=jnp.float32)
        y2_t = jnp.maximum(acc, 0.0)                              # (cr, S)

        # ---- spatial Conv2d(3x3, pad=1): 9 shifted lane-dense slabs ---------
        pad_ref[:, lpad:lpad + S] = y2_t                          # aligned store
        acc3 = None
        for ky in range(3):
            for kx in range(3):
                off = (ky - 1) * W + (kx - 1)
                slab = pad_ref[:, lpad + off:lpad + off + S]      # (cr, S)
                if kx == 0:
                    slab = slab * mask_l                          # dx = -1 wrap
                elif kx == 2:
                    slab = slab * mask_r                          # dx = +1 wrap
                d = jnp.dot(w3_ref[ky * 3 + kx], slab,
                            preferred_element_type=jnp.float32)
                acc3 = d if acc3 is None else acc3 + d
        o_ref[t] = acc3 * s3 + b3                                 # folded BN3


def _conv4_gate_kernel(y3_ref, x_ref, w_ref, s_ref, b_ref, o_ref, *, F):
    # 1x1 conv (C, cr) @ (cr, S) + folded BN + sigmoid gate + residual.
    # Residual x is read in native NCHW; output written in native NCHW.
    w = w_ref[...]
    s = s_ref[...]
    b = b_ref[...]
    for f in range(F):                       # static unroll, small F
        z = jnp.dot(w, y3_ref[f], preferred_element_type=jnp.float32)
        z = z * s + b
        gate = pl.reciprocal(1.0 + jnp.exp(-z), approx=True)      # sigmoid on EUP
        o_ref[f] = x_ref[f] * (1.0 + gate)                        # x*gate + x


# =============================================================================
# Wrappers
# =============================================================================
def conv1_bn(x_ncs, w1, s1, b1):
    NT, C, S = x_ncs.shape
    cr = w1.shape[0]
    F = _pick_frames_per_block(NT, 4 * S * (C + cr))
    kernel = functools.partial(_conv1_bn_kernel, F=F)
    return pl.pallas_call(
        kernel,
        grid=(NT // F,),
        in_specs=[
            pl.BlockSpec((F, C, S), lambda i: (i, 0, 0)),
            pl.BlockSpec((cr, C), lambda i: (0, 0)),
            pl.BlockSpec((cr, 1), lambda i: (0, 0)),
            pl.BlockSpec((cr, 1), lambda i: (0, 0)),
        ],
        out_specs=pl.BlockSpec((F, cr, S), lambda i: (i, 0, 0)),
        out_shape=jax.ShapeDtypeStruct((NT, cr, S), jnp.float32),
        compiler_params=_COMPILER_PARAMS,
    )(x_ncs, w1, s1.reshape(cr, 1), b1.reshape(cr, 1))


def temporal_spatial(y1, w2k, w3k, s3, b3, mask_l, mask_r, T, H, W):
    NT, cr, S = y1.shape
    B = NT // T
    lpad = ((W + 1 + 127) // 128) * 128        # 128-aligned interior offset
    sp = lpad + S + W + 1
    kernel = functools.partial(_temporal_spatial_kernel, T=T, H=H, W=W, lpad=lpad)
    return pl.pallas_call(
        kernel,
        grid=(B,),
        in_specs=[
            pl.BlockSpec((T, cr, S), lambda b: (b, 0, 0)),
            pl.BlockSpec((3, cr, cr), lambda b: (0, 0, 0)),
            pl.BlockSpec((9, cr, cr), lambda b: (0, 0, 0)),
            pl.BlockSpec((cr, 1), lambda b: (0, 0)),
            pl.BlockSpec((cr, 1), lambda b: (0, 0)),
            pl.BlockSpec((1, S), lambda b: (0, 0)),
            pl.BlockSpec((1, S), lambda b: (0, 0)),
        ],
        out_specs=pl.BlockSpec((T, cr, S), lambda b: (b, 0, 0)),
        out_shape=jax.ShapeDtypeStruct((NT, cr, S), jnp.float32),
        scratch_shapes=[pltpu.VMEM((cr, sp), jnp.float32)],
        compiler_params=_COMPILER_PARAMS,
    )(y1, w2k, w3k, s3.reshape(cr, 1), b3.reshape(cr, 1), mask_l, mask_r)


def conv4_gate_residual(y3, x_ncs, w4, s4, b4):
    NT, C, S = x_ncs.shape
    cr = y3.shape[1]
    F = _pick_frames_per_block(NT, 4 * S * (cr + 2 * C))
    kernel = functools.partial(_conv4_gate_kernel, F=F)
    return pl.pallas_call(
        kernel,
        grid=(NT // F,),
        in_specs=[
            pl.BlockSpec((F, cr, S), lambda i: (i, 0, 0)),
            pl.BlockSpec((F, C, S), lambda i: (i, 0, 0)),
            pl.BlockSpec((C, cr), lambda i: (0, 0)),
            pl.BlockSpec((C, 1), lambda i: (0, 0)),
            pl.BlockSpec((C, 1), lambda i: (0, 0)),
        ],
        out_specs=pl.BlockSpec((F, C, S), lambda i: (i, 0, 0)),
        out_shape=jax.ShapeDtypeStruct((NT, C, S), jnp.float32),
        input_output_aliases={1: 0},           # reuse residual buffer for output
        compiler_params=_COMPILER_PARAMS,
    )(y3, x_ncs, w4, s4.reshape(C, 1), b4.reshape(C, 1))


# =============================================================================
# Full STEModule forward
# =============================================================================
def ste_forward(x, p, n_segment):
    # x: (NT, C, H, W) NCHW, NT = n_batch * n_segment
    NT, C, H, W = x.shape
    cr = p["w1"].shape[0]
    S = H * W
    x_ncs = x.reshape(NT, C, S)                            # pure view, no transpose

    # conv1 (1x1) + bn1 -> channel-major (NT, cr, S)
    y1 = conv1_bn(x_ncs, p["w1"], p["s1"], p["b1"])

    # fused temporal Conv1d + ReLU + spatial Conv2d(3x3) + bn3
    w2k = jnp.transpose(p["w2"], (2, 0, 1))                        # (3, cr, cr)
    w3k = jnp.transpose(p["w3"], (2, 3, 0, 1)).reshape(9, cr, cr)  # (9, cr, cr)
    col = jnp.arange(S, dtype=jnp.int32) % W
    mask_l = (col != 0).astype(jnp.float32).reshape(1, S)
    mask_r = (col != (W - 1)).astype(jnp.float32).reshape(1, S)
    y3 = temporal_spatial(y1, w2k, w3k, p["s3"], p["b3"],
                          mask_l, mask_r, n_segment, H, W)

    # conv4 (1x1) + bn4 + sigmoid + residual, written directly in NCHW
    out = conv4_gate_residual(y3, x_ncs, p["w4"], p["s4"], p["b4"])
    return out.reshape(NT, C, H, W)


# =============================================================================
# Pure-JAX reference (same math as the PyTorch module) for a sanity check
# =============================================================================
def ste_reference(x, p, n_segment):
    NT, C, H, W = x.shape
    cr = p["w1"].shape[0]
    T = n_segment
    n = NT // T
    y1 = jnp.einsum("nchw,oc->nohw", x, p["w1"])
    y1 = y1 * p["s1"][None, :, None, None] + p["b1"][None, :, None, None]
    y1 = y1.reshape(n, T, cr, H, W).transpose(0, 3, 4, 2, 1).reshape(n * H * W, cr, T)
    y1p = jnp.pad(y1, ((0, 0), (0, 0), (1, 1)))
    y2 = jnp.zeros_like(y1)
    for k in range(3):
        y2 = y2 + jnp.einsum("bit,oi->bot", y1p[:, :, k:k + T], p["w2"][:, :, k])
    y2 = jnp.maximum(y2, 0.0)
    y2 = y2.reshape(n, H, W, cr, T).transpose(0, 4, 3, 1, 2).reshape(NT, cr, H, W)
    y2p = jnp.pad(y2, ((0, 0), (0, 0), (1, 1), (1, 1)))
    y3 = jnp.zeros((NT, cr, H, W), jnp.float32)
    for ky in range(3):
        for kx in range(3):
            y3 = y3 + jnp.einsum("nihw,oi->nohw",
                                 y2p[:, :, ky:ky + H, kx:kx + W], p["w3"][:, :, ky, kx])
    y3 = y3 * p["s3"][None, :, None, None] + p["b3"][None, :, None, None]
    z = jnp.einsum("nihw,oi->nohw", y3, p["w4"])
    z = z * p["s4"][None, :, None, None] + p["b4"][None, :, None, None]
    gate = jax.nn.sigmoid(z)
    return x * gate + x


# =============================================================================
# Deterministic parameter init (synthetic; BN folded to inference form)
# =============================================================================
def init_params(key, channel):
    cr = channel // 16
    ks = jax.random.split(key, 16)

    def folded_bn(kg, kb, km, kv, nfeat):
        gamma = 1.0 + 0.1 * jax.random.normal(kg, (nfeat,), jnp.float32)
        beta = 0.1 * jax.random.normal(kb, (nfeat,), jnp.float32)
        mean = 0.1 * jax.random.normal(km, (nfeat,), jnp.float32)
        var = 1.0 + 0.1 * jnp.abs(jax.random.normal(kv, (nfeat,), jnp.float32))
        scale = gamma / jnp.sqrt(var + 1e-5)
        bias = beta - mean * scale
        return scale, bias

    # PyTorch weight layouts: conv1 (cr,C), conv2 (cr,cr,3), conv3 (cr,cr,3,3),
    # conv4 (C,cr)  (1x1 convs stored as (out,in) matrices).
    w1 = 0.2 * jax.random.normal(ks[0], (cr, channel), jnp.float32)
    w2 = 0.2 * jax.random.normal(ks[1], (cr, cr, 3), jnp.float32)
    w3 = 0.2 * jax.random.normal(ks[2], (cr, cr, 3, 3), jnp.float32)
    w4 = 0.2 * jax.random.normal(ks[3], (channel, cr), jnp.float32)

    s1, b1 = folded_bn(ks[4], ks[5], ks[6], ks[7], cr)
    s3, b3 = folded_bn(ks[8], ks[9], ks[10], ks[11], cr)
    s4, b4 = folded_bn(ks[12], ks[13], ks[14], ks[15], channel)

    return dict(w1=w1, w2=w2, w3=w3, w4=w4,
                s1=s1, b1=b1, s3=s3, b3=b3, s4=s4, b4=b4)


# =============================================================================
if __name__ == "__main__":
    channel = 32          # reduction=16 -> cr = 2
    n_segment = 8
    n_batch = 2
    H = W = 8
    NT = n_batch * n_segment

    key = jax.random.PRNGKey(0)
    k_x, k_p = jax.random.split(key)
    x = jax.random.normal(k_x, (NT, channel, H, W), jnp.float32)   # NCHW
    params = init_params(k_p, channel)

    # Reference first (pure JAX): x is donated to the fused kernel below.
    ref = jax.block_until_ready(ste_reference(x, params, n_segment))

    ste = jax.jit(ste_forward, static_argnums=2, donate_argnums=0)
    out = jax.block_until_ready(ste(x, params, n_segment))

    assert out.shape == (NT, channel, H, W)
    assert bool(jnp.all(jnp.isfinite(out)))
    max_err = float(jnp.max(jnp.abs(out - ref)))
    assert max_err < 1e-2, f"mismatch vs reference: {max_err}"

    print("KERNEL_OK")
</pallas_src>

<mosaic_0001>
module attributes {stable_mosaic.version = 11 : i64} {
  func.func @_conv1_bn_kernel(%arg0: i32, %arg1: memref<8x32x64xf32, #tpu.memory_space<vmem>>, %arg2: memref<2x32xf32, #tpu.memory_space<vmem>>, %arg3: memref<2x1xf32, #tpu.memory_space<vmem>>, %arg4: memref<2x1xf32, #tpu.memory_space<vmem>>, %arg5: memref<8x2x64xf32, #tpu.memory_space<vmem>>) attributes {dimension_semantics = [#tpu.dimension_semantics<parallel>], iteration_bounds = array<i64: 2>, scalar_prefetch = 0 : i64, scratch_operands = 0 : i64, tpu.core_type = #tpu.core_type<tc>, window_params = [{transform_indices = @transform_0, window_bounds = array<i64: 8, 32, 64>}, {pipeline_mode = #tpu.pipeline_mode<synchronous>, transform_indices = @transform_1, window_bounds = array<i64: 2, 32>}, {pipeline_mode = #tpu.pipeline_mode<synchronous>, transform_indices = @transform_2, window_bounds = array<i64: 2, 1>}, {pipeline_mode = #tpu.pipeline_mode<synchronous>, transform_indices = @transform_3, window_bounds = array<i64: 2, 1>}, {transform_indices = @transform_4, window_bounds = array<i64: 8, 2, 64>}]} {
    %c0 = arith.constant 0 : index
    %c0_0 = arith.constant 0 : index
    %0 = vector.load %arg2[%c0, %c0_0] : memref<2x32xf32, #tpu.memory_space<vmem>>, vector<2x32xf32>
    %c0_1 = arith.constant 0 : index
    %c0_2 = arith.constant 0 : index
    %1 = vector.load %arg3[%c0_1, %c0_2] : memref<2x1xf32, #tpu.memory_space<vmem>>, vector<2x1xf32>
    %c0_3 = arith.constant 0 : index
    %c0_4 = arith.constant 0 : index
    %2 = vector.load %arg4[%c0_3, %c0_4] : memref<2x1xf32, #tpu.memory_space<vmem>>, vector<2x1xf32>
    %c0_5 = arith.constant 0 : index
    %c0_6 = arith.constant 0 : index
    %c0_7 = arith.constant 0 : index
    %3 = vector.load %arg1[%c0_5, %c0_6, %c0_7] : memref<8x32x64xf32, #tpu.memory_space<vmem>>, vector<1x32x64xf32>
    %4 = vector.shape_cast %3 : vector<1x32x64xf32> to vector<32x64xf32>
    %cst = arith.constant dense<0.000000e+00> : vector<2x64xf32>
    %5 = tpu.matmul %0, %4, %cst {dimension_numbers = #tpu.dot_dimension_numbers<[1], [0], [0], [1], [0, 0, 1, 1], [], []>} : vector<2x32xf32>, vector<32x64xf32>, vector<2x64xf32> -> vector<2x64xf32>
    %6 = vector.broadcast %1 : vector<2x1xf32> to vector<2x64xf32>
    %7 = arith.mulf %5, %6 : vector<2x64xf32>
    %8 = vector.broadcast %2 : vector<2x1xf32> to vector<2x64xf32>
    %9 = arith.addf %7, %8 : vector<2x64xf32>
    %c0_8 = arith.constant 0 : index
    %c0_9 = arith.constant 0 : index
    %c0_10 = arith.constant 0 : index
    %10 = vector.load %arg5[%c0_8, %c0_9, %c0_10] : memref<8x2x64xf32, #tpu.memory_space<vmem>>, vector<1x2x64xf32>
    %11 = vector.shape_cast %10 : vector<1x2x64xf32> to vector<2x64xf32>
    %12 = vector.shape_cast %9 : vector<2x64xf32> to vector<1x2x64xf32>
    tpu.vector_store %arg5[%c0_8, %c0_9, %c0_10], %12 {strides = array<i32>} : memref<8x2x64xf32, #tpu.memory_space<vmem>>, vector<1x2x64xf32>,
    %c1 = arith.constant 1 : index
    %c0_11 = arith.constant 0 : index
    %c0_12 = arith.constant 0 : index
    %13 = vector.load %arg1[%c1, %c0_11, %c0_12] : memref<8x32x64xf32, #tpu.memory_space<vmem>>, vector<1x32x64xf32>
    %14 = vector.shape_cast %13 : vector<1x32x64xf32> to vector<32x64xf32>
    %cst_13 = arith.constant dense<0.000000e+00> : vector<2x64xf32>
    %15 = tpu.matmul %0, %14, %cst_13 {dimension_numbers = #tpu.dot_dimension_numbers<[1], [0], [0], [1], [0, 0, 1, 1], [], []>} : vector<2x32xf32>, vector<32x64xf32>, vector<2x64xf32> -> vector<2x64xf32>
    %16 = vector.broadcast %1 : vector<2x1xf32> to vector<2x64xf32>
    %17 = arith.mulf %15, %16 : vector<2x64xf32>
    %18 = vector.broadcast %2 : vector<2x1xf32> to vector<2x64xf32>
    %19 = arith.addf %17, %18 : vector<2x64xf32>
    %c1_14 = arith.constant 1 : index
    %c0_15 = arith.constant 0 : index
    %c0_16 = arith.constant 0 : index
    %20 = vector.load %arg5[%c1_14, %c0_15, %c0_16] : memref<8x2x64xf32, #tpu.memory_space<vmem>>, vector<1x2x64xf32>
    %21 = vector.shape_cast %20 : vector<1x2x64xf32> to vector<2x64xf32>
    %22 = vector.shape_cast %19 : vector<2x64xf32> to vector<1x2x64xf32>
    tpu.vector_store %arg5[%c1_14, %c0_15, %c0_16], %22 {strides = array<i32>} : memref<8x2x64xf32, #tpu.memory_space<vmem>>, vector<1x2x64xf32>,
    %c2 = arith.constant 2 : index
    %c0_17 = arith.constant 0 : index
    %c0_18 = arith.constant 0 : index
    %23 = vector.load %arg1[%c2, %c0_17, %c0_18] : memref<8x32x64xf32, #tpu.memory_space<vmem>>, vector<1x32x64xf32>
    %24 = vector.shape_cast %23 : vector<1x32x64xf32> to vector<32x64xf32>
    %cst_19 = arith.constant dense<0.000000e+00> : vector<2x64xf32>
    %25 = tpu.matmul %0, %24, %cst_19 {dimension_numbers = #tpu.dot_dimension_numbers<[1], [0], [0], [1], [0, 0, 1, 1], [], []>} : vector<2x32xf32>, vector<32x64xf32>, vector<2x64xf32> -> vector<2x64xf32>
    %26 = vector.broadcast %1 : vector<2x1xf32> to vector<2x64xf32>
    %27 = arith.mulf %25, %26 : vector<2x64xf32>
    %28 = vector.broadcast %2 : vector<2x1xf32> to vector<2x64xf32>
    %29 = arith.addf %27, %28 : vector<2x64xf32>
    %c2_20 = arith.constant 2 : index
    %c0_21 = arith.constant 0 : index
    %c0_22 = arith.constant 0 : index
    %30 = vector.load %arg5[%c2_20, %c0_21, %c0_22] : memref<8x2x64xf32, #tpu.memory_space<vmem>>, vector<1x2x64xf32>
    %31 = vector.shape_cast %30 : vector<1x2x64xf32> to vector<2x64xf32>
    %32 = vector.shape_cast %29 : vector<2x64xf32> to vector<1x2x64xf32>
    tpu.vector_store %arg5[%c2_20, %c0_21, %c0_22], %32 {strides = array<i32>} : memref<8x2x64xf32, #tpu.memory_space<vmem>>, vector<1x2x64xf32>,
    %c3 = arith.constant 3 : index
    %c0_23 = arith.constant 0 : index
    %c0_24 = arith.constant 0 : index
    %33 = vector.load %arg1[%c3, %c0_23, %c0_24] : memref<8x32x64xf32, #tpu.memory_space<vmem>>, vector<1x32x64xf32>
    %34 = vector.shape_cast %33 : vector<1x32x64xf32> to vector<32x64xf32>
    %cst_25 = arith.constant dense<0.000000e+00> : vector<2x64xf32>
    %35 = tpu.matmul %0, %34, %cst_25 {dimension_numbers = #tpu.dot_dimension_numbers<[1], [0], [0], [1], [0, 0, 1, 1], [], []>} : vector<2x32xf32>, vector<32x64xf32>, vector<2x64xf32> -> vector<2x64xf32>
    %36 = vector.broadcast %1 : vector<2x1xf32> to vector<2x64xf32>
    %37 = arith.mulf %35, %36 : vector<2x64xf32>
    %38 = vector.broadcast %2 : vector<2x1xf32> to vector<2x64xf32>
    %39 = arith.addf %37, %38 : vector<2x64xf32>
    %c3_26 = arith.constant 3 : index
    %c0_27 = arith.constant 0 : index
    %c0_28 = arith.constant 0 : index
    %40 = vector.load %arg5[%c3_26, %c0_27, %c0_28] : memref<8x2x64xf32, #tpu.memory_space<vmem>>, vector<1x2x64xf32>
    %41 = vector.shape_cast %40 : vector<1x2x64xf32> to vector<2x64xf32>
    %42 = vector.shape_cast %39 : vector<2x64xf32> to vector<1x2x64xf32>
    tpu.vector_store %arg5[%c3_26, %c0_27, %c0_28], %42 {strides = array<i32>} : memref<8x2x64xf32, #tpu.memory_space<vmem>>, vector<1x2x64xf32>,
    %c4 = arith.constant 4 : index
    %c0_29 = arith.constant 0 : index
    %c0_30 = arith.constant 0 : index
    %43 = vector.load %arg1[%c4, %c0_29, %c0_30] : memref<8x32x64xf32, #tpu.memory_space<vmem>>, vector<1x32x64xf32>
    %44 = vector.shape_cast %43 : vector<1x32x64xf32> to vector<32x64xf32>
    %cst_31 = arith.constant dense<0.000000e+00> : vector<2x64xf32>
    %45 = tpu.matmul %0, %44, %cst_31 {dimension_numbers = #tpu.dot_dimension_numbers<[1], [0], [0], [1], [0, 0, 1, 1], [], []>} : vector<2x32xf32>, vector<32x64xf32>, vector<2x64xf32> -> vector<2x64xf32>
    %46 = vector.broadcast %1 : vector<2x1xf32> to vector<2x64xf32>
    %47 = arith.mulf %45, %46 : vector<2x64xf32>
    %48 = vector.broadcast %2 : vector<2x1xf32> to vector<2x64xf32>
    %49 = arith.addf %47, %48 : vector<2x64xf32>
    %c4_32 = arith.constant 4 : index
    %c0_33 = arith.constant 0 : index
    %c0_34 = arith.constant 0 : index
    %50 = vector.load %arg5[%c4_32, %c0_33, %c0_34] : memref<8x2x64xf32, #tpu.memory_space<vmem>>, vector<1x2x64xf32>
    %51 = vector.shape_cast %50 : vector<1x2x64xf32> to vector<2x64xf32>
    %52 = vector.shape_cast %49 : vector<2x64xf32> to vector<1x2x64xf32>
    tpu.vector_store %arg5[%c4_32, %c0_33, %c0_34], %52 {strides = array<i32>} : memref<8x2x64xf32, #tpu.memory_space<vmem>>, vector<1x2x64xf32>,
    %c5 = arith.constant 5 : index
    %c0_35 = arith.constant 0 : index
    %c0_36 = arith.constant 0 : index
    %53 = vector.load %arg1[%c5, %c0_35, %c0_36] : memref<8x32x64xf32, #tpu.memory_space<vmem>>, vector<1x32x64xf32>
    %54 = vector.shape_cast %53 : vector<1x32x64xf32> to vector<32x64xf32>
    %cst_37 = arith.constant dense<0.000000e+00> : vector<2x64xf32>
    %55 = tpu.matmul %0, %54, %cst_37 {dimension_numbers = #tpu.dot_dimension_numbers<[1], [0], [0], [1], [0, 0, 1, 1], [], []>} : vector<2x32xf32>, vector<32x64xf32>, vector<2x64xf32> -> vector<2x64xf32>
    %56 = vector.broadcast %1 : vector<2x1xf32> to vector<2x64xf32>
    %57 = arith.mulf %55, %56 : vector<2x64xf32>
    %58 = vector.broadcast %2 : vector<2x1xf32> to vector<2x64xf32>
    %59 = arith.addf %57, %58 : vector<2x64xf32>
    %c5_38 = arith.constant 5 : index
    %c0_39 = arith.constant 0 : index
    %c0_40 = arith.constant 0 : index
    %60 = vector.load %arg5[%c5_38, %c0_39, %c0_40] : memref<8x2x64xf32, #tpu.memory_space<vmem>>, vector<1x2x64xf32>
    %61 = vector.shape_cast %60 : vector<1x2x64xf32> to vector<2x64xf32>
    %62 = vector.shape_cast %59 : vector<2x64xf32> to vector<1x2x64xf32>
    tpu.vector_store %arg5[%c5_38, %c0_39, %c0_40], %62 {strides = array<i32>} : memref<8x2x64xf32, #tpu.memory_space<vmem>>, vector<1x2x64xf32>,
    %c6 = arith.constant 6 : index
    %c0_41 = arith.constant 0 : index
    %c0_42 = arith.constant 0 : index
    %63 = vector.load %arg1[%c6, %c0_41, %c0_42] : memref<8x32x64xf32, #tpu.memory_space<vmem>>, vector<1x32x64xf32>
    %64 = vector.shape_cast %63 : vector<1x32x64xf32> to vector<32x64xf32>
    %cst_43 = arith.constant dense<0.000000e+00> : vector<2x64xf32>
    %65 = tpu.matmul %0, %64, %cst_43 {dimension_numbers = #tpu.dot_dimension_numbers<[1], [0], [0], [1], [0, 0, 1, 1], [], []>} : vector<2x32xf32>, vector<32x64xf32>, vector<2x64xf32> -> vector<2x64xf32>
    %66 = vector.broadcast %1 : vector<2x1xf32> to vector<2x64xf32>
    %67 = arith.mulf %65, %66 : vector<2x64xf32>
    %68 = vector.broadcast %2 : vector<2x1xf32> to vector<2x64xf32>
    %69 = arith.addf %67, %68 : vector<2x64xf32>
    %c6_44 = arith.constant 6 : index
    %c0_45 = arith.constant 0 : index
    %c0_46 = arith.constant 0 : index
    %70 = vector.load %arg5[%c6_44, %c0_45, %c0_46] : memref<8x2x64xf32, #tpu.memory_space<vmem>>, vector<1x2x64xf32>
    %71 = vector.shape_cast %70 : vector<1x2x64xf32> to vector<2x64xf32>
    %72 = vector.shape_cast %69 : vector<2x64xf32> to vector<1x2x64xf32>
    tpu.vector_store %arg5[%c6_44, %c0_45, %c0_46], %72 {strides = array<i32>} : memref<8x2x64xf32, #tpu.memory_space<vmem>>, vector<1x2x64xf32>,
    %c7 = arith.constant 7 : index
    %c0_47 = arith.constant 0 : index
    %c0_48 = arith.constant 0 : index
    %73 = vector.load %arg1[%c7, %c0_47, %c0_48] : memref<8x32x64xf32, #tpu.memory_space<vmem>>, vector<1x32x64xf32>
    %74 = vector.shape_cast %73 : vector<1x32x64xf32> to vector<32x64xf32>
    %cst_49 = arith.constant dense<0.000000e+00> : vector<2x64xf32>
    %75 = tpu.matmul %0, %74, %cst_49 {dimension_numbers = #tpu.dot_dimension_numbers<[1], [0], [0], [1], [0, 0, 1, 1], [], []>} : vector<2x32xf32>, vector<32x64xf32>, vector<2x64xf32> -> vector<2x64xf32>
    %76 = vector.broadcast %1 : vector<2x1xf32> to vector<2x64xf32>
    %77 = arith.mulf %75, %76 : vector<2x64xf32>
    %78 = vector.broadcast %2 : vector<2x1xf32> to vector<2x64xf32>
    %79 = arith.addf %77, %78 : vector<2x64xf32>
    %c7_50 = arith.constant 7 : index
    %c0_51 = arith.constant 0 : index
    %c0_52 = arith.constant 0 : index
    %80 = vector.load %arg5[%c7_50, %c0_51, %c0_52] : memref<8x2x64xf32, #tpu.memory_space<vmem>>, vector<1x2x64xf32>
    %81 = vector.shape_cast %80 : vector<1x2x64xf32> to vector<2x64xf32>
    %82 = vector.shape_cast %79 : vector<2x64xf32> to vector<1x2x64xf32>
    tpu.vector_store %arg5[%c7_50, %c0_51, %c0_52], %82 {strides = array<i32>} : memref<8x2x64xf32, #tpu.memory_space<vmem>>, vector<1x2x64xf32>,
    return
  }
  func.func @transform_0(%arg0: i32) -> (i32, i32, i32) {
    %c0_i32 = arith.constant 0 : i32
    %c0_i32_0 = arith.constant 0 : i32
    %c0_i32_1 = arith.constant 0 : i32
    return %arg0, %c0_i32, %c0_i32_0 : i32, i32, i32
  }
  func.func @transform_1(%arg0: i32) -> (i32, i32) {
    %c0_i32 = arith.constant 0 : i32
    %c0_i32_0 = arith.constant 0 : i32
    %c0_i32_1 = arith.constant 0 : i32
    return %c0_i32, %c0_i32_0 : i32, i32
  }
  func.func @transform_2(%arg0: i32) -> (i32, i32) {
    %c0_i32 = arith.constant 0 : i32
    %c0_i32_0 = arith.constant 0 : i32
    %c0_i32_1 = arith.constant 0 : i32
    return %c0_i32, %c0_i32_0 : i32, i32
  }
  func.func @transform_3(%arg0: i32) -> (i32, i32) {
    %c0_i32 = arith.constant 0 : i32
    %c0_i32_0 = arith.constant 0 : i32
    %c0_i32_1 = arith.constant 0 : i32
    return %c0_i32, %c0_i32_0 : i32, i32
  }
  func.func @transform_4(%arg0: i32) -> (i32, i32, i32) {
    %c0_i32 = arith.constant 0 : i32
    %c0_i32_0 = arith.constant 0 : i32
    %c0_i32_1 = arith.constant 0 : i32
    return %arg0, %c0_i32, %c0_i32_0 : i32, i32, i32
  }
}

module attributes {stable_mosaic.version = 11 : i64} {
  func.func @_conv4_gate_kernel(%arg0: i32, %arg1: memref<8x2x64xf32, #tpu.memory_space<vmem>>, %arg2: memref<8x32x64xf32, #tpu.memory_space<vmem>>, %arg3: memref<32x2xf32, #tpu.memory_space<vmem>>, %arg4: memref<32x1xf32, #tpu.memory_space<vmem>>, %arg5: memref<32x1xf32, #tpu.memory_space<vmem>>, %arg6: memref<8x32x64xf32, #tpu.memory_space<vmem>>) attributes {dimension_semantics = [#tpu.dimension_semantics<parallel>], iteration_bounds = array<i64: 2>, scalar_prefetch = 0 : i64, scratch_operands = 0 : i64, tpu.core_type = #tpu.core_type<tc>, window_params = [{transform_indices = @transform_0, window_bounds = array<i64: 8, 2, 64>}, {transform_indices = @transform_1, window_bounds = array<i64: 8, 32, 64>}, {pipeline_mode = #tpu.pipeline_mode<synchronous>, transform_indices = @transform_2, window_bounds = array<i64: 32, 2>}, {pipeline_mode = #tpu.pipeline_mode<synchronous>, transform_indices = @transform_3, window_bounds = array<i64: 32, 1>}, {pipeline_mode = #tpu.pipeline_mode<synchronous>, transform_indices = @transform_4, window_bounds = array<i64: 32, 1>}, {transform_indices = @transform_5, window_bounds = array<i64: 8, 32, 64>}]} {
    %c0 = arith.constant 0 : index
    %c0_0 = arith.constant 0 : index
    %0 = vector.load %arg3[%c0, %c0_0] : memref<32x2xf32, #tpu.memory_space<vmem>>, vector<32x2xf32>
    %c0_1 = arith.constant 0 : index
    %c0_2 = arith.constant 0 : index
    %1 = vector.load %arg4[%c0_1, %c0_2] : memref<32x1xf32, #tpu.memory_space<vmem>>, vector<32x1xf32>
    %c0_3 = arith.constant 0 : index
    %c0_4 = arith.constant 0 : index
    %2 = vector.load %arg5[%c0_3, %c0_4] : memref<32x1xf32, #tpu.memory_space<vmem>>, vector<32x1xf32>
    %c0_5 = arith.constant 0 : index
    %c0_6 = arith.constant 0 : index
    %c0_7 = arith.constant 0 : index
    %3 = vector.load %arg1[%c0_5, %c0_6, %c0_7] : memref<8x2x64xf32, #tpu.memory_space<vmem>>, vector<1x2x64xf32>
    %4 = vector.shape_cast %3 : vector<1x2x64xf32> to vector<2x64xf32>
    %cst = arith.constant dense<0.000000e+00> : vector<32x64xf32>
    %5 = tpu.matmul %0, %4, %cst {dimension_numbers = #tpu.dot_dimension_numbers<[1], [0], [0], [1], [0, 0, 1, 1], [], []>} : vector<32x2xf32>, vector<2x64xf32>, vector<32x64xf32> -> vector<32x64xf32>
    %6 = vector.broadcast %1 : vector<32x1xf32> to vector<32x64xf32>
    %7 = arith.mulf %5, %6 : vector<32x64xf32>
    %8 = vector.broadcast %2 : vector<32x1xf32> to vector<32x64xf32>
    %9 = arith.addf %7, %8 : vector<32x64xf32>
    %cst_8 = arith.constant 0.000000e+00 : f32
    %10 = vector.broadcast %cst_8 : f32 to vector<32x64xf32>
    %11 = arith.subf %10, %9 : vector<32x64xf32>
    %12 = math.exp %11 : vector<32x64xf32>
    %cst_9 = arith.constant 1.000000e+00 : f32
    %13 = vector.broadcast %cst_9 : f32 to vector<32x64xf32>
    %14 = arith.addf %13, %12 : vector<32x64xf32>
    %15 = tpu.reciprocal %14 {approx = true} : vector<32x64xf32> -> vector<32x64xf32>
    %c0_10 = arith.constant 0 : index
    %c0_11 = arith.constant 0 : index
    %c0_12 = arith.constant 0 : index
    %16 = vector.load %arg2[%c0_10, %c0_11, %c0_12] : memref<8x32x64xf32, #tpu.memory_space<vmem>>, vector<1x32x64xf32>
    %17 = vector.shape_cast %16 : vector<1x32x64xf32> to vector<32x64xf32>
    %cst_13 = arith.constant 1.000000e+00 : f32
    %18 = vector.broadcast %cst_13 : f32 to vector<32x64xf32>
    %19 = arith.addf %18, %15 : vector<32x64xf32>
    %20 = arith.mulf %17, %19 : vector<32x64xf32>
    %c0_14 = arith.constant 0 : index
    %c0_15 = arith.constant 0 : index
    %c0_16 = arith.constant 0 : index
    %21 = vector.load %arg6[%c0_14, %c0_15, %c0_16] : memref<8x32x64xf32, #tpu.memory_space<vmem>>, vector<1x32x64xf32>
    %22 = vector.shape_cast %21 : vector<1x32x64xf32> to vector<32x64xf32>
    %23 = vector.shape_cast %20 : vector<32x64xf32> to vector<1x32x64xf32>
    tpu.vector_store %arg6[%c0_14, %c0_15, %c0_16], %23 {strides = array<i32>} : memref<8x32x64xf32, #tpu.memory_space<vmem>>, vector<1x32x64xf32>,
    %c1 = arith.constant 1 : index
    %c0_17 = arith.constant 0 : index
    %c0_18 = arith.constant 0 : index
    %24 = vector.load %arg1[%c1, %c0_17, %c0_18] : memref<8x2x64xf32, #tpu.memory_space<vmem>>, vector<1x2x64xf32>
    %25 = vector.shape_cast %24 : vector<1x2x64xf32> to vector<2x64xf32>
    %cst_19 = arith.constant dense<0.000000e+00> : vector<32x64xf32>
    %26 = tpu.matmul %0, %25, %cst_19 {dimension_numbers = #tpu.dot_dimension_numbers<[1], [0], [0], [1], [0, 0, 1, 1], [], []>} : vector<32x2xf32>, vector<2x64xf32>, vector<32x64xf32> -> vector<32x64xf32>
    %27 = vector.broadcast %1 : vector<32x1xf32> to vector<32x64xf32>
    %28 = arith.mulf %26, %27 : vector<32x64xf32>
    %29 = vector.broadcast %2 : vector<32x1xf32> to vector<32x64xf32>
    %30 = arith.addf %28, %29 : vector<32x64xf32>
    %cst_20 = arith.constant 0.000000e+00 : f32
    %31 = vector.broadcast %cst_20 : f32 to vector<32x64xf32>
    %32 = arith.subf %31, %30 : vector<32x64xf32>
    %33 = math.exp %32 : vector<32x64xf32>
    %cst_21 = arith.constant 1.000000e+00 : f32
    %34 = vector.broadcast %cst_21 : f32 to vector<32x64xf32>
    %35 = arith.addf %34, %33 : vector<32x64xf32>
    %36 = tpu.reciprocal %35 {approx = true} : vector<32x64xf32> -> vector<32x64xf32>
    %c1_22 = arith.constant 1 : index
    %c0_23 = arith.constant 0 : index
    %c0_24 = arith.constant 0 : index
    %37 = vector.load %arg2[%c1_22, %c0_23, %c0_24] : memref<8x32x64xf32, #tpu.memory_space<vmem>>, vector<1x32x64xf32>
    %38 = vector.shape_cast %37 : vector<1x32x64xf32> to vector<32x64xf32>
    %cst_25 = arith.constant 1.000000e+00 : f32
    %39 = vector.broadcast %cst_25 : f32 to vector<32x64xf32>
    %40 = arith.addf %39, %36 : vector<32x64xf32>
    %41 = arith.mulf %38, %40 : vector<32x64xf32>
    %c1_26 = arith.constant 1 : index
    %c0_27 = arith.constant 0 : index
    %c0_28 = arith.constant 0 : index
    %42 = vector.load %arg6[%c1_26, %c0_27, %c0_28] : memref<8x32x64xf32, #tpu.memory_space<vmem>>, vector<1x32x64xf32>
    %43 = vector.shape_cast %42 : vector<1x32x64xf32> to vector<32x64xf32>
    %44 = vector.shape_cast %41 : vector<32x64xf32> to vector<1x32x64xf32>
    tpu.vector_store %arg6[%c1_26, %c0_27, %c0_28], %44 {strides = array<i32>} : memref<8x32x64xf32, #tpu.memory_space<vmem>>, vector<1x32x64xf32>,
    %c2 = arith.constant 2 : index
    %c0_29 = arith.constant 0 : index
    %c0_30 = arith.constant 0 : index
    %45 = vector.load %arg1[%c2, %c0_29, %c0_30] : memref<8x2x64xf32, #tpu.memory_space<vmem>>, vector<1x2x64xf32>
    %46 = vector.shape_cast %45 : vector<1x2x64xf32> to vector<2x64xf32>
    %cst_31 = arith.constant dense<0.000000e+00> : vector<32x64xf32>
    %47 = tpu.matmul %0, %46, %cst_31 {dimension_numbers = #tpu.dot_dimension_numbers<[1], [0], [0], [1], [0, 0, 1, 1], [], []>} : vector<32x2xf32>, vector<2x64xf32>, vector<32x64xf32> -> vector<32x64xf32>
    %48 = vector.broadcast %1 : vector<32x1xf32> to vector<32x64xf32>
    %49 = arith.mulf %47, %48 : vector<32x64xf32>
    %50 = vector.broadcast %2 : vector<32x1xf32> to vector<32x64xf32>
    %51 = arith.addf %49, %50 : vector<32x64xf32>
    %cst_32 = arith.constant 0.000000e+00 : f32
    %52 = vector.broadcast %cst_32 : f32 to vector<32x64xf32>
    %53 = arith.subf %52, %51 : vector<32x64xf32>
    %54 = math.exp %53 : vector<32x64xf32>
    %cst_33 = arith.constant 1.000000e+00 : f32
    %55 = vector.broadcast %cst_33 : f32 to vector<32x64xf32>
    %56 = arith.addf %55, %54 : vector<32x64xf32>
    %57 = tpu.reciprocal %56 {approx = true} : vector<32x64xf32> -> vector<32x64xf32>
    %c2_34 = arith.constant 2 : index
    %c0_35 = arith.constant 0 : index
    %c0_36 = arith.constant 0 : index
    %58 = vector.load %arg2[%c2_34, %c0_35, %c0_36] : memref<8x32x64xf32, #tpu.memory_space<vmem>>, vector<1x32x64xf32>
    %59 = vector.shape_cast %58 : vector<1x32x64xf32> to vector<32x64xf32>
    %cst_37 = arith.constant 1.000000e+00 : f32
    %60 = vector.broadcast %cst_37 : f32 to vector<32x64xf32>
    %61 = arith.addf %60, %57 : vector<32x64xf32>
    %62 = arith.mulf %59, %61 : vector<32x64xf32>
    %c2_38 = arith.constant 2 : index
    %c0_39 = arith.constant 0 : index
    %c0_40 = arith.constant 0 : index
    %63 = vector.load %arg6[%c2_38, %c0_39, %c0_40] : memref<8x32x64xf32, #tpu.memory_space<vmem>>, vector<1x32x64xf32>
    %64 = vector.shape_cast %63 : vector<1x32x64xf32> to vector<32x64xf32>
    %65 = vector.shape_cast %62 : vector<32x64xf32> to vector<1x32x64xf32>
    tpu.vector_store %arg6[%c2_38, %c0_39, %c0_40], %65 {strides = array<i32>} : memref<8x32x64xf32, #tpu.memory_space<vmem>>, vector<1x32x64xf32>,
    %c3 = arith.constant 3 : index
    %c0_41 = arith.constant 0 : index
    %c0_42 = arith.constant 0 : index
    %66 = vector.load %arg1[%c3, %c0_41, %c0_42] : memref<8x2x64xf32, #tpu.memory_space<vmem>>, vector<1x2x64xf32>
    %67 = vector.shape_cast %66 : vector<1x2x64xf32> to vector<2x64xf32>
    %cst_43 = arith.constant dense<0.000000e+00> : vector<32x64xf32>
    %68 = tpu.matmul %0, %67, %cst_43 {dimension_numbers = #tpu.dot_dimension_numbers<[1], [0], [0], [1], [0, 0, 1, 1], [], []>} : vector<32x2xf32>, vector<2x64xf32>, vector<32x64xf32> -> vector<32x64xf32>
    %69 = vector.broadcast %1 : vector<32x1xf32> to vector<32x64xf32>
    %70 = arith.mulf %68, %69 : vector<32x64xf32>
    %71 = vector.broadcast %2 : vector<32x1xf32> to vector<32x64xf32>
    %72 = arith.addf %70, %71 : vector<32x64xf32>
    %cst_44 = arith.constant 0.000000e+00 : f32
    %73 = vector.broadcast %cst_44 : f32 to vector<32x64xf32>
    %74 = arith.subf %73, %72 : vector<32x64xf32>
    %75 = math.exp %74 : vector<32x64xf32>
    %cst_45 = arith.constant 1.000000e+00 : f32
    %76 = vector.broadcast %cst_45 : f32 to vector<32x64xf32>
    %77 = arith.addf %76, %75 : vector<32x64xf32>
    %78 = tpu.reciprocal %77 {approx = true} : vector<32x64xf32> -> vector<32x64xf32>
    %c3_46 = arith.constant 3 : index
    %c0_47 = arith.constant 0 : index
    %c0_48 = arith.constant 0 : index
    %79 = vector.load %arg2[%c3_46, %c0_47, %c0_48] : memref<8x32x64xf32, #tpu.memory_space<vmem>>, vector<1x32x64xf32>
    %80 = vector.shape_cast %79 : vector<1x32x64xf32> to vector<32x64xf32>
    %cst_49 = arith.constant 1.000000e+00 : f32
    %81 = vector.broadcast %cst_49 : f32 to vector<32x64xf32>
    %82 = arith.addf %81, %78 : vector<32x64xf32>
    %83 = arith.mulf %80, %82 : vector<32x64xf32>
    %c3_50 = arith.constant 3 : index
    %c0_51 = arith.constant 0 : index
    %c0_52 = arith.constant 0 : index
    %84 = vector.load %arg6[%c3_50, %c0_51, %c0_52] : memref<8x32x64xf32, #tpu.memory_space<vmem>>, vector<1x32x64xf32>
    %85 = vector.shape_cast %84 : vector<1x32x64xf32> to vector<32x64xf32>
    %86 = vector.shape_cast %83 : vector<32x64xf32> to vector<1x32x64xf32>
    tpu.vector_store %arg6[%c3_50, %c0_51, %c0_52], %86 {strides = array<i32>} : memref<8x32x64xf32, #tpu.memory_space<vmem>>, vector<1x32x64xf32>,
    %c4 = arith.constant 4 : index
    %c0_53 = arith.constant 0 : index
    %c0_54 = arith.constant 0 : index
    %87 = vector.load %arg1[%c4, %c0_53, %c0_54] : memref<8x2x64xf32, #tpu.memory_space<vmem>>, vector<1x2x64xf32>
    %88 = vector.shape_cast %87 : vector<1x2x64xf32> to vector<2x64xf32>
    %cst_55 = arith.constant dense<0.000000e+00> : vector<32x64xf32>
    %89 = tpu.matmul %0, %88, %cst_55 {dimension_numbers = #tpu.dot_dimension_numbers<[1], [0], [0], [1], [0, 0, 1, 1], [], []>} : vector<32x2xf32>, vector<2x64xf32>, vector<32x64xf32> -> vector<32x64xf32>
    %90 = vector.broadcast %1 : vector<32x1xf32> to vector<32x64xf32>
    %91 = arith.mulf %89, %90 : vector<32x64xf32>
    %92 = vector.broadcast %2 : vector<32x1xf32> to vector<32x64xf32>
    %93 = arith.addf %91, %92 : vector<32x64xf32>
    %cst_56 = arith.constant 0.000000e+00 : f32
    %94 = vector.broadcast %cst_56 : f32 to vector<32x64xf32>
    %95 = arith.subf %94, %93 : vector<32x64xf32>
    %96 = math.exp %95 : vector<32x64xf32>
    %cst_57 = arith.constant 1.000000e+00 : f32
    %97 = vector.broadcast %cst_57 : f32 to vector<32x64xf32>
    %98 = arith.addf %97, %96 : vector<32x64xf32>
    %99 = tpu.reciprocal %98 {approx = true} : vector<32x64xf32> -> vector<32x64xf32>
    %c4_58 = arith.constant 4 : index
    %c0_59 = arith.constant 0 : index
    %c0_60 = arith.constant 0 : index
    %100 = vector.load %arg2[%c4_58, %c0_59, %c0_60] : memref<8x32x64xf32, #tpu.memory_space<vmem>>, vector<1x32x64xf32>
    %101 = vector.shape_cast %100 : vector<1x32x64xf32> to vector<32x64xf32>
    %cst_61 = arith.constant 1.000000e+00 : f32
    %102 = vector.broadcast %cst_61 : f32 to vector<32x64xf32>
    %103 = arith.addf %102, %99 : vector<32x64xf32>
    %104 = arith.mulf %101, %103 : vector<32x64xf32>
    %c4_62 = arith.constant 4 : index
    %c0_63 = arith.constant 0 : index
    %c0_64 = arith.constant 0 : index
    %105 = vector.load %arg6[%c4_62, %c0_63, %c0_64] : memref<8x32x64xf32, #tpu.memory_space<vmem>>, vector<1x32x64xf32>
    %106 = vector.shape_cast %105 : vector<1x32x64xf32> to vector<32x64xf32>
    %107 = vector.shape_cast %104 : vector<32x64xf32> to vector<1x32x64xf32>
    tpu.vector_store %arg6[%c4_62, %c0_63, %c0_64], %107 {strides = array<i32>} : memref<8x32x64xf32, #tpu.memory_space<vmem>>, vector<1x32x64xf32>,
    %c5 = arith.constant 5 : index
    %c0_65 = arith.constant 0 : index
    %c0_66 = arith.constant 0 : index
    %108 = vector.load %arg1[%c5, %c0_65, %c0_66] : memref<8x2x64xf32, #tpu.memory_space<vmem>>, vector<1x2x64xf32>
    %109 = vector.shape_cast %108 : vector<1x2x64xf32> to vector<2x64xf32>
    %cst_67 = arith.constant dense<0.000000e+00> : vector<32x64xf32>
    %110 = tpu.matmul %0, %109, %cst_67 {dimension_numbers = #tpu.dot_dimension_numbers<[1], [0], [0], [1], [0, 0, 1, 1], [], []>} : vector<32x2xf32>, vector<2x64xf32>, vector<32x64xf32> -> vector<32x64xf32>
    %111 = vector.broadcast %1 : vector<32x1xf32> to vector<32x64xf32>
    %112 = arith.mulf %110, %111 : vector<32x64xf32>
    %113 = vector.broadcast %2 : vector<32x1xf32> to vector<32x64xf32>
    %114 = arith.addf %112, %113 : vector<32x64xf32>
    %cst_68 = arith.constant 0.000000e+00 : f32
    %115 = vector.broadcast %cst_68 : f32 to vector<32x64xf32>
    %116 = arith.subf %115, %114 : vector<32x64xf32>
    %117 = math.exp %116 : vector<32x64xf32>
    %cst_69 = arith.constant 1.000000e+00 : f32
    %118 = vector.broadcast %cst_69 : f32 to vector<32x64xf32>
    %119 = arith.addf %118, %117 : vector<32x64xf32>
    %120 = tpu.reciprocal %119 {approx = true} : vector<32x64xf32> -> vector<32x64xf32>
    %c5_70 = arith.constant 5 : index
    %c0_71 = arith.constant 0 : index
    %c0_72 = arith.constant 0 : index
    %121 = vector.load %arg2[%c5_70, %c0_71, %c0_72] : memref<8x32x64xf32, #tpu.memory_space<vmem>>, vector<1x32x64xf32>
    %122 = vector.shape_cast %121 : vector<1x32x64xf32> to vector<32x64xf32>
    %cst_73 = arith.constant 1.000000e+00 : f32
    %123 = vector.broadcast %cst_73 : f32 to vector<32x64xf32>
    %124 = arith.addf %123, %120 : vector<32x64xf32>
    %125 = arith.mulf %122, %124 : vector<32x64xf32>
    %c5_74 = arith.constant 5 : index
    %c0_75 = arith.constant 0 : index
    %c0_76 = arith.constant 0 : index
    %126 = vector.load %arg6[%c5_74, %c0_75, %c0_76] : memref<8x32x64xf32, #tpu.memory_space<vmem>>, vector<1x32x64xf32>
    %127 = vector.shape_cast %126 : vector<1x32x64xf32> to vector<32x64xf32>
    %128 = vector.shape_cast %125 : vector<32x64xf32> to vector<1x32x64xf32>
    tpu.vector_store %arg6[%c5_74, %c0_75, %c0_76], %128 {strides = array<i32>} : memref<8x32x64xf32, #tpu.memory_space<vmem>>, vector<1x32x64xf32>,
    %c6 = arith.constant 6 : index
    %c0_77 = arith.constant 0 : index
    %c0_78 = arith.constant 0 : index
    %129 = vector.load %arg1[%c6, %c0_77, %c0_78] : memref<8x2x64xf32, #tpu.memory_space<vmem>>, vector<1x2x64xf32>
    %130 = vector.shape_cast %129 : vector<1x2x64xf32> to vector<2x64xf32>
    %cst_79 = arith.constant dense<0.000000e+00> : vector<32x64xf32>
    %131 = tpu.matmul %0, %130, %cst_79 {dimension_numbers = #tpu.dot_dimension_numbers<[1], [0], [0], [1], [0, 0, 1, 1], [], []>} : vector<32x2xf32>, vector<2x64xf32>, vector<32x64xf32> -> vector<32x64xf32>
    %132 = vector.broadcast %1 : vector<32x1xf32> to vector<32x64xf32>
    %133 = arith.mulf %131, %132 : vector<32x64xf32>
    %134 = vector.broadcast %2 : vector<32x1xf32> to vector<32x64xf32>
    %135 = arith.addf %133, %134 : vector<32x64xf32>
    %cst_80 = arith.constant 0.000000e+00 : f32
    %136 = vector.broadcast %cst_80 : f32 to vector<32x64xf32>
    %137 = arith.subf %136, %135 : vector<32x64xf32>
    %138 = math.exp %137 : vector<32x64xf32>
    %cst_81 = arith.constant 1.000000e+00 : f32
    %139 = vector.broadcast %cst_81 : f32 to vector<32x64xf32>
    %140 = arith.addf %139, %138 : vector<32x64xf32>
    %141 = tpu.reciprocal %140 {approx = true} : vector<32x64xf32> -> vector<32x64xf32>
    %c6_82 = arith.constant 6 : index
    %c0_83 = arith.constant 0 : index
    %c0_84 = arith.constant 0 : index
    %142 = vector.load %arg2[%c6_82, %c0_83, %c0_84] : memref<8x32x64xf32, #tpu.memory_space<vmem>>, vector<1x32x64xf32>
    %143 = vector.shape_cast %142 : vector<1x32x64xf32> to vector<32x64xf32>
    %cst_85 = arith.constant 1.000000e+00 : f32
    %144 = vector.broadcast %cst_85 : f32 to vector<32x64xf32>
    %145 = arith.addf %144, %141 : vector<32x64xf32>
    %146 = arith.mulf %143, %145 : vector<32x64xf32>
    %c6_86 = arith.constant 6 : index
    %c0_87 = arith.constant 0 : index
    %c0_88 = arith.constant 0 : index
    %147 = vector.load %arg6[%c6_86, %c0_87, %c0_88] : memref<8x32x64xf32, #tpu.memory_space<vmem>>, vector<1x32x64xf32>
    %148 = vector.shape_cast %147 : vector<1x32x64xf32> to vector<32x64xf32>
    %149 = vector.shape_cast %146 : vector<32x64xf32> to vector<1x32x64xf32>
    tpu.vector_store %arg6[%c6_86, %c0_87, %c0_88], %149 {strides = array<i32>} : memref<8x32x64xf32, #tpu.memory_space<vmem>>, vector<1x32x64xf32>,
    %c7 = arith.constant 7 : index
    %c0_89 = arith.constant 0 : index
    %c0_90 = arith.constant 0 : index
    %150 = vector.load %arg1[%c7, %c0_89, %c0_90] : memref<8x2x64xf32, #tpu.memory_space<vmem>>, vector<1x2x64xf32>
    %151 = vector.shape_cast %150 : vector<1x2x64xf32> to vector<2x64xf32>
    %cst_91 = arith.constant dense<0.000000e+00> : vector<32x64xf32>
    %152 = tpu.matmul %0, %151, %cst_91 {dimension_numbers = #tpu.dot_dimension_numbers<[1], [0], [0], [1], [0, 0, 1, 1], [], []>} : vector<32x2xf32>, vector<2x64xf32>, vector<32x64xf32> -> vector<32x64xf32>
    %153 = vector.broadcast %1 : vector<32x1xf32> to vector<32x64xf32>
    %154 = arith.mulf %152, %153 : vector<32x64xf32>
    %155 = vector.broadcast %2 : vector<32x1xf32> to vector<32x64xf32>
    %156 = arith.addf %154, %155 : vector<32x64xf32>
    %cst_92 = arith.constant 0.000000e+00 : f32
    %157 = vector.broadcast %cst_92 : f32 to vector<32x64xf32>
    %158 = arith.subf %157, %156 : vector<32x64xf32>
    %159 = math.exp %158 : vector<32x64xf32>
    %cst_93 = arith.constant 1.000000e+00 : f32
    %160 = vector.broadcast %cst_93 : f32 to vector<32x64xf32>
    %161 = arith.addf %160, %159 : vector<32x64xf32>
    %162 = tpu.reciprocal %161 {approx = true} : vector<32x64xf32> -> vector<32x64xf32>
    %c7_94 = arith.constant 7 : index
    %c0_95 = arith.constant 0 : index
    %c0_96 = arith.constant 0 : index
    %163 = vector.load %arg2[%c7_94, %c0_95, %c0_96] : memref<8x32x64xf32, #tpu.memory_space<vmem>>, vector<1x32x64xf32>
    %164 = vector.shape_cast %163 : vector<1x32x64xf32> to vector<32x64xf32>
    %cst_97 = arith.constant 1.000000e+00 : f32
    %165 = vector.broadcast %cst_97 : f32 to vector<32x64xf32>
    %166 = arith.addf %165, %162 : vector<32x64xf32>
    %167 = arith.mulf %164, %166 : vector<32x64xf32>
    %c7_98 = arith.constant 7 : index
    %c0_99 = arith.constant 0 : index
    %c0_100 = arith.constant 0 : index
    %168 = vector.load %arg6[%c7_98, %c0_99, %c0_100] : memref<8x32x64xf32, #tpu.memory_space<vmem>>, vector<1x32x64xf32>
    %169 = vector.shape_cast %168 : vector<1x32x64xf32> to vector<32x64xf32>
    %170 = vector.shape_cast %167 : vector<32x64xf32> to vector<1x32x64xf32>
    tpu.vector_store %arg6[%c7_98, %c0_99, %c0_100], %170 {strides = array<i32>} : memref<8x32x64xf32, #tpu.memory_space<vmem>>, vector<1x32x64xf32>,
    return
  }
  func.func @transform_0(%arg0: i32) -> (i32, i32, i32) {
    %c0_i32 = arith.constant 0 : i32
    %c0_i32_0 = arith.constant 0 : i32
    %c0_i32_1 = arith.constant 0 : i32
    return %arg0, %c0_i32, %c0_i32_0 : i32, i32, i32
  }
  func.func @transform_1(%arg0: i32) -> (i32, i32, i32) {
    %c0_i32 = arith.constant 0 : i32
    %c0_i32_0 = arith.constant 0 : i32
    %c0_i32_1 = arith.constant 0 : i32
    return %arg0, %c0_i32, %c0_i32_0 : i32, i32, i32
  }
  func.func @transform_2(%arg0: i32) -> (i32, i32) {
    %c0_i32 = arith.constant 0 : i32
    %c0_i32_0 = arith.constant 0 : i32
    %c0_i32_1 = arith.constant 0 : i32
    return %c0_i32, %c0_i32_0 : i32, i32
  }
  func.func @transform_3(%arg0: i32) -> (i32, i32) {
    %c0_i32 = arith.constant 0 : i32
    %c0_i32_0 = arith.constant 0 : i32
    %c0_i32_1 = arith.constant 0 : i32
    return %c0_i32, %c0_i32_0 : i32, i32
  }
  func.func @transform_4(%arg0: i32) -> (i32, i32) {
    %c0_i32 = arith.constant 0 : i32
    %c0_i32_0 = arith.constant 0 : i32
    %c0_i32_1 = arith.constant 0 : i32
    return %c0_i32, %c0_i32_0 : i32, i32
  }
  func.func @transform_5(%arg0: i32) -> (i32, i32, i32) {
    %c0_i32 = arith.constant 0 : i32
    %c0_i32_0 = arith.constant 0 : i32
    %c0_i32_1 = arith.constant 0 : i32
    return %arg0, %c0_i32, %c0_i32_0 : i32, i32, i32
  }
}

module attributes {stable_mosaic.version = 11 : i64} {
  func.func @_temporal_spatial_kernel(%arg0: i32, %arg1: memref<8x2x64xf32, #tpu.memory_space<vmem>>, %arg2: memref<3x2x2xf32, #tpu.memory_space<vmem>>, %arg3: memref<9x2x2xf32, #tpu.memory_space<vmem>>, %arg4: memref<2x1xf32, #tpu.memory_space<vmem>>, %arg5: memref<2x1xf32, #tpu.memory_space<vmem>>, %arg6: memref<1x64xf32, #tpu.memory_space<vmem>>, %arg7: memref<1x64xf32, #tpu.memory_space<vmem>>, %arg8: memref<8x2x64xf32, #tpu.memory_space<vmem>>, %arg9: memref<2x201xf32, #tpu.memory_space<vmem>>) attributes {dimension_semantics = [#tpu.dimension_semantics<parallel>], iteration_bounds = array<i64: 2>, scalar_prefetch = 0 : i64, scratch_operands = 1 : i64, tpu.core_type = #tpu.core_type<tc>, window_params = [{transform_indices = @transform_0, window_bounds = array<i64: 8, 2, 64>}, {pipeline_mode = #tpu.pipeline_mode<synchronous>, transform_indices = @transform_1, window_bounds = array<i64: 3, 2, 2>}, {pipeline_mode = #tpu.pipeline_mode<synchronous>, transform_indices = @transform_2, window_bounds = array<i64: 9, 2, 2>}, {pipeline_mode = #tpu.pipeline_mode<synchronous>, transform_indices = @transform_3, window_bounds = array<i64: 2, 1>}, {pipeline_mode = #tpu.pipeline_mode<synchronous>, transform_indices = @transform_4, window_bounds = array<i64: 2, 1>}, {pipeline_mode = #tpu.pipeline_mode<synchronous>, transform_indices = @transform_5, window_bounds = array<i64: 1, 64>}, {pipeline_mode = #tpu.pipeline_mode<synchronous>, transform_indices = @transform_6, window_bounds = array<i64: 1, 64>}, {transform_indices = @transform_7, window_bounds = array<i64: 8, 2, 64>}]} {
    %cst = arith.constant 0.000000e+00 : f32
    %0 = vector.broadcast %cst : f32 to vector<2x201xf32>
    %c0 = arith.constant 0 : index
    %c0_0 = arith.constant 0 : index
    %1 = vector.load %arg9[%c0, %c0_0] : memref<2x201xf32, #tpu.memory_space<vmem>>, vector<2x201xf32>
    tpu.vector_store %arg9[%c0, %c0_0], %0 {strides = array<i32>} : memref<2x201xf32, #tpu.memory_space<vmem>>, vector<2x201xf32>,
    %c0_1 = arith.constant 0 : index
    %c0_2 = arith.constant 0 : index
    %2 = vector.load %arg6[%c0_1, %c0_2] : memref<1x64xf32, #tpu.memory_space<vmem>>, vector<1x64xf32>
    %c0_3 = arith.constant 0 : index
    %c0_4 = arith.constant 0 : index
    %3 = vector.load %arg7[%c0_3, %c0_4] : memref<1x64xf32, #tpu.memory_space<vmem>>, vector<1x64xf32>
    %c0_5 = arith.constant 0 : index
    %c0_6 = arith.constant 0 : index
    %4 = vector.load %arg4[%c0_5, %c0_6] : memref<2x1xf32, #tpu.memory_space<vmem>>, vector<2x1xf32>
    %c0_7 = arith.constant 0 : index
    %c0_8 = arith.constant 0 : index
    %5 = vector.load %arg5[%c0_7, %c0_8] : memref<2x1xf32, #tpu.memory_space<vmem>>, vector<2x1xf32>
    %c1 = arith.constant 1 : index
    %c0_9 = arith.constant 0 : index
    %c0_10 = arith.constant 0 : index
    %6 = vector.load %arg2[%c1, %c0_9, %c0_10] : memref<3x2x2xf32, #tpu.memory_space<vmem>>, vector<1x2x2xf32>
    %7 = vector.shape_cast %6 : vector<1x2x2xf32> to vector<2x2xf32>
    %c0_11 = arith.constant 0 : index
    %c0_12 = arith.constant 0 : index
    %c0_13 = arith.constant 0 : index
    %8 = vector.load %arg1[%c0_11, %c0_12, %c0_13] : memref<8x2x64xf32, #tpu.memory_space<vmem>>, vector<1x2x64xf32>
    %9 = vector.shape_cast %8 : vector<1x2x64xf32> to vector<2x64xf32>
    %cst_14 = arith.constant dense<0.000000e+00> : vector<2x64xf32>
    %10 = tpu.matmul %7, %9, %cst_14 {dimension_numbers = #tpu.dot_dimension_numbers<[1], [0], [0], [1], [0, 0, 1, 1], [], []>} : vector<2x2xf32>, vector<2x64xf32>, vector<2x64xf32> -> vector<2x64xf32>
    %c2 = arith.constant 2 : index
    %c0_15 = arith.constant 0 : index
    %c0_16 = arith.constant 0 : index
    %11 = vector.load %arg2[%c2, %c0_15, %c0_16] : memref<3x2x2xf32, #tpu.memory_space<vmem>>, vector<1x2x2xf32>
    %12 = vector.shape_cast %11 : vector<1x2x2xf32> to vector<2x2xf32>
    %c1_17 = arith.constant 1 : index
    %c0_18 = arith.constant 0 : index
    %c0_19 = arith.constant 0 : index
    %13 = vector.load %arg1[%c1_17, %c0_18, %c0_19] : memref<8x2x64xf32, #tpu.memory_space<vmem>>, vector<1x2x64xf32>
    %14 = vector.shape_cast %13 : vector<1x2x64xf32> to vector<2x64xf32>
    %cst_20 = arith.constant dense<0.000000e+00> : vector<2x64xf32>
    %15 = tpu.matmul %12, %14, %cst_20 {dimension_numbers = #tpu.dot_dimension_numbers<[1], [0], [0], [1], [0, 0, 1, 1], [], []>} : vector<2x2xf32>, vector<2x64xf32>, vector<2x64xf32> -> vector<2x64xf32>
    %16 = arith.addf %10, %15 : vector<2x64xf32>
    %cst_21 = arith.constant 0.000000e+00 : f32
    %17 = vector.broadcast %cst_21 : f32 to vector<2x64xf32>
    %18 = arith.maximumf %16, %17 : vector<2x64xf32>
    %c0_22 = arith.constant 0 : index
    %c128 = arith.constant 128 : index
    %19 = vector.load %arg9[%c0_22, %c128] : memref<2x201xf32, #tpu.memory_space<vmem>>, vector<2x64xf32>
    tpu.vector_store %arg9[%c0_22, %c128], %18 {strides = array<i32>} : memref<2x201xf32, #tpu.memory_space<vmem>>, vector<2x64xf32>,
    %c0_23 = arith.constant 0 : index
    %c119 = arith.constant 119 : index
    %20 = vector.load %arg9[%c0_23, %c119] : memref<2x201xf32, #tpu.memory_space<vmem>>, vector<2x64xf32>
    %21 = vector.broadcast %2 : vector<1x64xf32> to vector<2x64xf32>
    %22 = arith.mulf %20, %21 : vector<2x64xf32>
    %c0_24 = arith.constant 0 : index
    %c0_25 = arith.constant 0 : index
    %c0_26 = arith.constant 0 : index
    %23 = vector.load %arg3[%c0_24, %c0_25, %c0_26] : memref<9x2x2xf32, #tpu.memory_space<vmem>>, vector<1x2x2xf32>
    %24 = vector.shape_cast %23 : vector<1x2x2xf32> to vector<2x2xf32>
    %cst_27 = arith.constant dense<0.000000e+00> : vector<2x64xf32>
    %25 = tpu.matmul %24, %22, %cst_27 {dimension_numbers = #tpu.dot_dimension_numbers<[1], [0], [0], [1], [0, 0, 1, 1], [], []>} : vector<2x2xf32>, vector<2x64xf32>, vector<2x64xf32> -> vector<2x64xf32>
    %c0_28 = arith.constant 0 : index
    %c120 = arith.constant 120 : index
    %26 = vector.load %arg9[%c0_28, %c120] : memref<2x201xf32, #tpu.memory_space<vmem>>, vector<2x64xf32>
    %c1_29 = arith.constant 1 : index
    %c0_30 = arith.constant 0 : index
    %c0_31 = arith.constant 0 : index
    %27 = vector.load %arg3[%c1_29, %c0_30, %c0_31] : memref<9x2x2xf32, #tpu.memory_space<vmem>>, vector<1x2x2xf32>
    %28 = vector.shape_cast %27 : vector<1x2x2xf32> to vector<2x2xf32>
    %cst_32 = arith.constant dense<0.000000e+00> : vector<2x64xf32>
    %29 = tpu.matmul %28, %26, %cst_32 {dimension_numbers = #tpu.dot_dimension_numbers<[1], [0], [0], [1], [0, 0, 1, 1], [], []>} : vector<2x2xf32>, vector<2x64xf32>, vector<2x64xf32> -> vector<2x64xf32>
    %30 = arith.addf %25, %29 : vector<2x64xf32>
    %c0_33 = arith.constant 0 : index
    %c121 = arith.constant 121 : index
    %31 = vector.load %arg9[%c0_33, %c121] : memref<2x201xf32, #tpu.memory_space<vmem>>, vector<2x64xf32>
    %32 = vector.broadcast %3 : vector<1x64xf32> to vector<2x64xf32>
    %33 = arith.mulf %31, %32 : vector<2x64xf32>
    %c2_34 = arith.constant 2 : index
    %c0_35 = arith.constant 0 : index
    %c0_36 = arith.constant 0 : index
    %34 = vector.load %arg3[%c2_34, %c0_35, %c0_36] : memref<9x2x2xf32, #tpu.memory_space<vmem>>, vector<1x2x2xf32>
    %35 = vector.shape_cast %34 : vector<1x2x2xf32> to vector<2x2xf32>
    %cst_37 = arith.constant dense<0.000000e+00> : vector<2x64xf32>
    %36 = tpu.matmul %35, %33, %cst_37 {dimension_numbers = #tpu.dot_dimension_numbers<[1], [0], [0], [1], [0, 0, 1, 1], [], []>} : vector<2x2xf32>, vector<2x64xf32>, vector<2x64xf32> -> vector<2x64xf32>
    %37 = arith.addf %30, %36 : vector<2x64xf32>
    %c0_38 = arith.constant 0 : index
    %c127 = arith.constant 127 : index
    %38 = vector.load %arg9[%c0_38, %c127] : memref<2x201xf32, #tpu.memory_space<vmem>>, vector<2x64xf32>
    %39 = vector.broadcast %2 : vector<1x64xf32> to vector<2x64xf32>
    %40 = arith.mulf %38, %39 : vector<2x64xf32>
    %c3 = arith.constant 3 : index
    %c0_39 = arith.constant 0 : index
    %c0_40 = arith.constant 0 : index
    %41 = vector.load %arg3[%c3, %c0_39, %c0_40] : memref<9x2x2xf32, #tpu.memory_space<vmem>>, vector<1x2x2xf32>
    %42 = vector.shape_cast %41 : vector<1x2x2xf32> to vector<2x2xf32>
    %cst_41 = arith.constant dense<0.000000e+00> : vector<2x64xf32>
    %43 = tpu.matmul %42, %40, %cst_41 {dimension_numbers = #tpu.dot_dimension_numbers<[1], [0], [0], [1], [0, 0, 1, 1], [], []>} : vector<2x2xf32>, vector<2x64xf32>, vector<2x64xf32> -> vector<2x64xf32>
    %44 = arith.addf %37, %43 : vector<2x64xf32>
    %c0_42 = arith.constant 0 : index
    %c128_43 = arith.constant 128 : index
    %45 = vector.load %arg9[%c0_42, %c128_43] : memref<2x201xf32, #tpu.memory_space<vmem>>, vector<2x64xf32>
    %c4 = arith.constant 4 : index
    %c0_44 = arith.constant 0 : index
    %c0_45 = arith.constant 0 : index
    %46 = vector.load %arg3[%c4, %c0_44, %c0_45] : memref<9x2x2xf32, #tpu.memory_space<vmem>>, vector<1x2x2xf32>
    %47 = vector.shape_cast %46 : vector<1x2x2xf32> to vector<2x2xf32>
    %cst_46 = arith.constant dense<0.000000e+00> : vector<2x64xf32>
    %48 = tpu.matmul %47, %45, %cst_46 {dimension_numbers = #tpu.dot_dimension_numbers<[1], [0], [0], [1], [0, 0, 1, 1], [], []>} : vector<2x2xf32>, vector<2x64xf32>, vector<2x64xf32> -> vector<2x64xf32>
    %49 = arith.addf %44, %48 : vector<2x64xf32>
    %c0_47 = arith.constant 0 : index
    %c129 = arith.constant 129 : index
    %50 = vector.load %arg9[%c0_47, %c129] : memref<2x201xf32, #tpu.memory_space<vmem>>, vector<2x64xf32>
    %51 = vector.broadcast %3 : vector<1x64xf32> to vector<2x64xf32>
    %52 = arith.mulf %50, %51 : vector<2x64xf32>
    %c5 = arith.constant 5 : index
    %c0_48 = arith.constant 0 : index
    %c0_49 = arith.constant 0 : index
    %53 = vector.load %arg3[%c5, %c0_48, %c0_49] : memref<9x2x2xf32, #tpu.memory_space<vmem>>, vector<1x2x2xf32>
    %54 = vector.shape_cast %53 : vector<1x2x2xf32> to vector<2x2xf32>
    %cst_50 = arith.constant dense<0.000000e+00> : vector<2x64xf32>
    %55 = tpu.matmul %54, %52, %cst_50 {dimension_numbers = #tpu.dot_dimension_numbers<[1], [0], [0], [1], [0, 0, 1, 1], [], []>} : vector<2x2xf32>, vector<2x64xf32>, vector<2x64xf32> -> vector<2x64xf32>
    %56 = arith.addf %49, %55 : vector<2x64xf32>
    %c0_51 = arith.constant 0 : index
    %c135 = arith.constant 135 : index
    %57 = vector.load %arg9[%c0_51, %c135] : memref<2x201xf32, #tpu.memory_space<vmem>>, vector<2x64xf32>
    %58 = vector.broadcast %2 : vector<1x64xf32> to vector<2x64xf32>
    %59 = arith.mulf %57, %58 : vector<2x64xf32>
    %c6 = arith.constant 6 : index
    %c0_52 = arith.constant 0 : index
    %c0_53 = arith.constant 0 : index
    %60 = vector.load %arg3[%c6, %c0_52, %c0_53] : memref<9x2x2xf32, #tpu.memory_space<vmem>>, vector<1x2x2xf32>
    %61 = vector.shape_cast %60 : vector<1x2x2xf32> to vector<2x2xf32>
    %cst_54 = arith.constant dense<0.000000e+00> : vector<2x64xf32>
    %62 = tpu.matmul %61, %59, %cst_54 {dimension_numbers = #tpu.dot_dimension_numbers<[1], [0], [0], [1], [0, 0, 1, 1], [], []>} : vector<2x2xf32>, vector<2x64xf32>, vector<2x64xf32> -> vector<2x64xf32>
    %63 = arith.addf %56, %62 : vector<2x64xf32>
    %c0_55 = arith.constant 0 : index
    %c136 = arith.constant 136 : index
    %64 = vector.load %arg9[%c0_55, %c136] : memref<2x201xf32, #tpu.memory_space<vmem>>, vector<2x64xf32>
    %c7 = arith.constant 7 : index
    %c0_56 = arith.constant 0 : index
    %c0_57 = arith.constant 0 : index
    %65 = vector.load %arg3[%c7, %c0_56, %c0_57] : memref<9x2x2xf32, #tpu.memory_space<vmem>>, vector<1x2x2xf32>
    %66 = vector.shape_cast %65 : vector<1x2x2xf32> to vector<2x2xf32>
    %cst_58 = arith.constant dense<0.000000e+00> : vector<2x64xf32>
    %67 = tpu.matmul %66, %64, %cst_58 {dimension_numbers = #tpu.dot_dimension_numbers<[1], [0], [0], [1], [0, 0, 1, 1], [], []>} : vector<2x2xf32>, vector<2x64xf32>, vector<2x64xf32> -> vector<2x64xf32>
    %68 = arith.addf %63, %67 : vector<2x64xf32>
    %c0_59 = arith.constant 0 : index
    %c137 = arith.constant 137 : index
    %69 = vector.load %arg9[%c0_59, %c137] : memref<2x201xf32, #tpu.memory_space<vmem>>, vector<2x64xf32>
    %70 = vector.broadcast %3 : vector<1x64xf32> to vector<2x64xf32>
    %71 = arith.mulf %69, %70 : vector<2x64xf32>
    %c8 = arith.constant 8 : index
    %c0_60 = arith.constant 0 : index
    %c0_61 = arith.constant 0 : index
    %72 = vector.load %arg3[%c8, %c0_60, %c0_61] : memref<9x2x2xf32, #tpu.memory_space<vmem>>, vector<1x2x2xf32>
    %73 = vector.shape_cast %72 : vector<1x2x2xf32> to vector<2x2xf32>
    %cst_62 = arith.constant dense<0.000000e+00> : vector<2x64xf32>
    %74 = tpu.matmul %73, %71, %cst_62 {dimension_numbers = #tpu.dot_dimension_numbers<[1], [0], [0], [1], [0, 0, 1, 1], [], []>} : vector<2x2xf32>, vector<2x64xf32>, vector<2x64xf32> -> vector<2x64xf32>
    %75 = arith.addf %68, %74 : vector<2x64xf32>
    %76 = vector.broadcast %4 : vector<2x1xf32> to vector<2x64xf32>
    %77 = arith.mulf %75, %76 : vector<2x64xf32>
    %78 = vector.broadcast %5 : vector<2x1xf32> to vector<2x64xf32>
    %79 = arith.addf %77, %78 : vector<2x64xf32>
    %c0_63 = arith.constant 0 : index
    %c0_64 = arith.constant 0 : index
    %c0_65 = arith.constant 0 : index
    %80 = vector.load %arg8[%c0_63, %c0_64, %c0_65] : memref<8x2x64xf32, #tpu.memory_space<vmem>>, vector<1x2x64xf32>
    %81 = vector.shape_cast %80 : vector<1x2x64xf32> to vector<2x64xf32>
    %82 = vector.shape_cast %79 : vector<2x64xf32> to vector<1x2x64xf32>
    tpu.vector_store %arg8[%c0_63, %c0_64, %c0_65], %82 {strides = array<i32>} : memref<8x2x64xf32, #tpu.memory_space<vmem>>, vector<1x2x64xf32>,
    %c1_66 = arith.constant 1 : index
    %c0_67 = arith.constant 0 : index
    %c0_68 = arith.constant 0 : index
    %83 = vector.load %arg2[%c1_66, %c0_67, %c0_68] : memref<3x2x2xf32, #tpu.memory_space<vmem>>, vector<1x2x2xf32>
    %84 = vector.shape_cast %83 : vector<1x2x2xf32> to vector<2x2xf32>
    %c1_69 = arith.constant 1 : index
    %c0_70 = arith.constant 0 : index
    %c0_71 = arith.constant 0 : index
    %85 = vector.load %arg1[%c1_69, %c0_70, %c0_71] : memref<8x2x64xf32, #tpu.memory_space<vmem>>, vector<1x2x64xf32>
    %86 = vector.shape_cast %85 : vector<1x2x64xf32> to vector<2x64xf32>
    %cst_72 = arith.constant dense<0.000000e+00> : vector<2x64xf32>
    %87 = tpu.matmul %84, %86, %cst_72 {dimension_numbers = #tpu.dot_dimension_numbers<[1], [0], [0], [1], [0, 0, 1, 1], [], []>} : vector<2x2xf32>, vector<2x64xf32>, vector<2x64xf32> -> vector<2x64xf32>
    %c0_73 = arith.constant 0 : index
    %c0_74 = arith.constant 0 : index
    %c0_75 = arith.constant 0 : index
    %88 = vector.load %arg2[%c0_73, %c0_74, %c0_75] : memref<3x2x2xf32, #tpu.memory_space<vmem>>, vector<1x2x2xf32>
    %89 = vector.shape_cast %88 : vector<1x2x2xf32> to vector<2x2xf32>
    %c0_76 = arith.constant 0 : index
    %c0_77 = arith.constant 0 : index
    %c0_78 = arith.constant 0 : index
    %90 = vector.load %arg1[%c0_76, %c0_77, %c0_78] : memref<8x2x64xf32, #tpu.memory_space<vmem>>, vector<1x2x64xf32>
    %91 = vector.shape_cast %90 : vector<1x2x64xf32> to vector<2x64xf32>
    %cst_79 = arith.constant dense<0.000000e+00> : vector<2x64xf32>
    %92 = tpu.matmul %89, %91, %cst_79 {dimension_numbers = #tpu.dot_dimension_numbers<[1], [0], [0], [1], [0, 0, 1, 1], [], []>} : vector<2x2xf32>, vector<2x64xf32>, vector<2x64xf32> -> vector<2x64xf32>
    %93 = arith.addf %87, %92 : vector<2x64xf32>
    %c2_80 = arith.constant 2 : index
    %c0_81 = arith.constant 0 : index
    %c0_82 = arith.constant 0 : index
    %94 = vector.load %arg2[%c2_80, %c0_81, %c0_82] : memref<3x2x2xf32, #tpu.memory_space<vmem>>, vector<1x2x2xf32>
    %95 = vector.shape_cast %94 : vector<1x2x2xf32> to vector<2x2xf32>
    %c2_83 = arith.constant 2 : index
    %c0_84 = arith.constant 0 : index
    %c0_85 = arith.constant 0 : index
    %96 = vector.load %arg1[%c2_83, %c0_84, %c0_85] : memref<8x2x64xf32, #tpu.memory_space<vmem>>, vector<1x2x64xf32>
    %97 = vector.shape_cast %96 : vector<1x2x64xf32> to vector<2x64xf32>
    %cst_86 = arith.constant dense<0.000000e+00> : vector<2x64xf32>
    %98 = tpu.matmul %95, %97, %cst_86 {dimension_numbers = #tpu.dot_dimension_numbers<[1], [0], [0], [1], [0, 0, 1, 1], [], []>} : vector<2x2xf32>, vector<2x64xf32>, vector<2x64xf32> -> vector<2x64xf32>
    %99 = arith.addf %93, %98 : vector<2x64xf32>
    %cst_87 = arith.constant 0.000000e+00 : f32
    %100 = vector.broadcast %cst_87 : f32 to vector<2x64xf32>
    %101 = arith.maximumf %99, %100 : vector<2x64xf32>
    %c0_88 = arith.constant 0 : index
    %c128_89 = arith.constant 128 : index
    %102 = vector.load %arg9[%c0_88, %c128_89] : memref<2x201xf32, #tpu.memory_space<vmem>>, vector<2x64xf32>
    tpu.vector_store %arg9[%c0_88, %c128_89], %101 {strides = array<i32>} : memref<2x201xf32, #tpu.memory_space<vmem>>, vector<2x64xf32>,
    %c0_90 = arith.constant 0 : index
    %c119_91 = arith.constant 119 : index
    %103 = vector.load %arg9[%c0_90, %c119_91] : memref<2x201xf32, #tpu.memory_space<vmem>>, vector<2x64xf32>
    %104 = vector.broadcast %2 : vector<1x64xf32> to vector<2x64xf32>
    %105 = arith.mulf %103, %104 : vector<2x64xf32>
    %c0_92 = arith.constant 0 : index
    %c0_93 = arith.constant 0 : index
    %c0_94 = arith.constant 0 : index
    %106 = vector.load %arg3[%c0_92, %c0_93, %c0_94] : memref<9x2x2xf32, #tpu.memory_space<vmem>>, vector<1x2x2xf32>
    %107 = vector.shape_cast %106 : vector<1x2x2xf32> to vector<2x2xf32>
    %cst_95 = arith.constant dense<0.000000e+00> : vector<2x64xf32>
    %108 = tpu.matmul %107, %105, %cst_95 {dimension_numbers = #tpu.dot_dimension_numbers<[1], [0], [0], [1], [0, 0, 1, 1], [], []>} : vector<2x2xf32>, vector<2x64xf32>, vector<2x64xf32> -> vector<2x64xf32>
    %c0_96 = arith.constant 0 : index
    %c120_97 = arith.constant 120 : index
    %109 = vector.load %arg9[%c0_96, %c120_97] : memref<2x201xf32, #tpu.memory_space<vmem>>, vector<2x64xf32>
    %c1_98 = arith.constant 1 : index
    %c0_99 = arith.constant 0 : index
    %c0_100 = arith.constant 0 : index
    %110 = vector.load %arg3[%c1_98, %c0_99, %c0_100] : memref<9x2x2xf32, #tpu.memory_space<vmem>>, vector<1x2x2xf32>
    %111 = vector.shape_cast %110 : vector<1x2x2xf32> to vector<2x2xf32>
    %cst_101 = arith.constant dense<0.000000e+00> : vector<2x64xf32>
    %112 = tpu.matmul %111, %109, %cst_101 {dimension_numbers = #tpu.dot_dimension_numbers<[1], [0], [0], [1], [0, 0, 1, 1], [], []>} : vector<2x2xf32>, vector<2x64xf32>, vector<2x64xf32> -> vector<2x64xf32>
    %113 = arith.addf %108, %112 : vector<2x64xf32>
    %c0_102 = arith.constant 0 : index
    %c121_103 = arith.constant 121 : index
    %114 = vector.load %arg9[%c0_102, %c121_103] : memref<2x201xf32, #tpu.memory_space<vmem>>, vector<2x64xf32>
    %115 = vector.broadcast %3 : vector<1x64xf32> to vector<2x64xf32>
    %116 = arith.mulf %114, %115 : vector<2x64xf32>
    %c2_104 = arith.constant 2 : index
    %c0_105 = arith.constant 0 : index
    %c0_106 = arith.constant 0 : index
    %117 = vector.load %arg3[%c2_104, %c0_105, %c0_106] : memref<9x2x2xf32, #tpu.memory_space<vmem>>, vector<1x2x2xf32>
    %118 = vector.shape_cast %117 : vector<1x2x2xf32> to vector<2x2xf32>
    %cst_107 = arith.constant dense<0.000000e+00> : vector<2x64xf32>
    %119 = tpu.matmul %118, %116, %cst_107 {dimension_numbers = #tpu.dot_dimension_numbers<[1], [0], [0], [1], [0, 0, 1, 1], [], []>} : vector<2x2xf32>, vector<2x64xf32>, vector<2x64xf32> -> vector<2x64xf32>
    %120 = arith.addf %113, %119 : vector<2x64xf32>
    %c0_108 = arith.constant 0 : index
    %c127_109 = arith.constant 127 : index
    %121 = vector.load %arg9[%c0_108, %c127_109] : memref<2x201xf32, #tpu.memory_space<vmem>>, vector<2x64xf32>
    %122 = vector.broadcast %2 : vector<1x64xf32> to vector<2x64xf32>
    %123 = arith.mulf %121, %122 : vector<2x64xf32>
    %c3_110 = arith.constant 3 : index
    %c0_111 = arith.constant 0 : index
    %c0_112 = arith.constant 0 : index
    %124 = vector.load %arg3[%c3_110, %c0_111, %c0_112] : memref<9x2x2xf32, #tpu.memory_space<vmem>>, vector<1x2x2xf32>
    %125 = vector.shape_cast %124 : vector<1x2x2xf32> to vector<2x2xf32>
    %cst_113 = arith.constant dense<0.000000e+00> : vector<2x64xf32>
    %126 = tpu.matmul %125, %123, %cst_113 {dimension_numbers = #tpu.dot_dimension_numbers<[1], [0], [0], [1], [0, 0, 1, 1], [], []>} : vector<2x2xf32>, vector<2x64xf32>, vector<2x64xf32> -> vector<2x64xf32>
    %127 = arith.addf %120, %126 : vector<2x64xf32>
    %c0_114 = arith.constant 0 : index
    %c128_115 = arith.constant 128 : index
    %128 = vector.load %arg9[%c0_114, %c128_115] : memref<2x201xf32, #tpu.memory_space<vmem>>, vector<2x64xf32>
    %c4_116 = arith.constant 4 : index
    %c0_117 = arith.constant 0 : index
    %c0_118 = arith.constant 0 : index
    %129 = vector.load %arg3[%c4_116, %c0_117, %c0_118] : memref<9x2x2xf32, #tpu.memory_space<vmem>>, vector<1x2x2xf32>
    %130 = vector.shape_cast %129 : vector<1x2x2xf32> to vector<2x2xf32>
    %cst_119 = arith.constant dense<0.000000e+00> : vector<2x64xf32>
    %131 = tpu.matmul %130, %128, %cst_119 {dimension_numbers = #tpu.dot_dimension_numbers<[1], [0], [0], [1], [0, 0, 1, 1], [], []>} : vector<2x2xf32>, vector<2x64xf32>, vector<2x64xf32> -> vector<2x64xf32>
    %132 = arith.addf %127, %131 : vector<2x64xf32>
    %c0_120 = arith.constant 0 : index
    %c129_121 = arith.constant 129 : index
    %133 = vector.load %arg9[%c0_120, %c129_121] : memref<2x201xf32, #tpu.memory_space<vmem>>, vector<2x64xf32>
    %134 = vector.broadcast %3 : vector<1x64xf32> to vector<2x64xf32>
    %135 = arith.mulf %133, %134 : vector<2x64xf32>
    %c5_122 = arith.constant 5 : index
    %c0_123 = arith.constant 0 : index
    %c0_124 = arith.constant 0 : index
    %136 = vector.load %arg3[%c5_122, %c0_123, %c0_124] : memref<9x2x2xf32, #tpu.memory_space<vmem>>, vector<1x2x2xf32>
    %137 = vector.shape_cast %136 : vector<1x2x2xf32> to vector<2x2xf32>
    %cst_125 = arith.constant dense<0.000000e+00> : vector<2x64xf32>
    %138 = tpu.matmul %137, %135, %cst_125 {dimension_numbers = #tpu.dot_dimension_numbers<[1], [0], [0], [1], [0, 0, 1, 1], [], []>} : vector<2x2xf32>, vector<2x64xf32>, vector<2x64xf32> -> vector<2x64xf32>
    %139 = arith.addf %132, %138 : vector<2x64xf32>
    %c0_126 = arith.constant 0 : index
    %c135_127 = arith.constant 135 : index
    %140 = vector.load %arg9[%c0_126, %c135_127] : memref<2x201xf32, #tpu.memory_space<vmem>>, vector<2x64xf32>
    %141 = vector.broadcast %2 : vector<1x64xf32> to vector<2x64xf32>
    %142 = arith.mulf %140, %141 : vector<2x64xf32>
    %c6_128 = arith.constant 6 : index
    %c0_129 = arith.constant 0 : index
    %c0_130 = arith.constant 0 : index
    %143 = vector.load %arg3[%c6_128, %c0_129, %c0_130] : memref<9x2x2xf32, #tpu.memory_space<vmem>>, vector<1x2x2xf32>
    %144 = vector.shape_cast %143 : vector<1x2x2xf32> to vector<2x2xf32>
    %cst_131 = arith.constant dense<0.000000e+00> : vector<2x64xf32>
    %145 = tpu.matmul %144, %142, %cst_131 {dimension_numbers = #tpu.dot_dimension_numbers<[1], [0], [0], [1], [0, 0, 1, 1], [], []>} : vector<2x2xf32>, vector<2x64xf32>, vector<2x64xf32> -> vector<2x64xf32>
    %146 = arith.addf %139, %145 : vector<2x64xf32>
    %c0_132 = arith.constant 0 : index
    %c136_133 = arith.constant 136 : index
    %147 = vector.load %arg9[%c0_132, %c136_133] : memref<2x201xf32, #tpu.memory_space<vmem>>, vector<2x64xf32>
    %c7_134 = arith.constant 7 : index
    %c0_135 = arith.constant 0 : index
    %c0_136 = arith.constant 0 : index
    %148 = vector.load %arg3[%c7_134, %c0_135, %c0_136] : memref<9x2x2xf32, #tpu.memory_space<vmem>>, vector<1x2x2xf32>
    %149 = vector.shape_cast %148 : vector<1x2x2xf32> to vector<2x2xf32>
    %cst_137 = arith.constant dense<0.000000e+00> : vector<2x64xf32>
    %150 = tpu.matmul %149, %147, %cst_137 {dimension_numbers = #tpu.dot_dimension_numbers<[1], [0], [0], [1], [0, 0, 1, 1], [], []>} : vector<2x2xf32>, vector<2x64xf32>, vector<2x64xf32> -> vector<2x64xf32>
    %151 = arith.addf %146, %150 : vector<2x64xf32>
    %c0_138 = arith.constant 0 : index
    %c137_139 = arith.constant 137 : index
    %152 = vector.load %arg9[%c0_138, %c137_139] : memref<2x201xf32, #tpu.memory_space<vmem>>, vector<2x64xf32>
    %153 = vector.broadcast %3 : vector<1x64xf32> to vector<2x64xf32>
    %154 = arith.mulf %152, %153 : vector<2x64xf32>
    %c8_140 = arith.constant 8 : index
    %c0_141 = arith.constant 0 : index
    %c0_142 = arith.constant 0 : index
    %155 = vector.load %arg3[%c8_140, %c0_141, %c0_142] : memref<9x2x2xf32, #tpu.memory_space<vmem>>, vector<1x2x2xf32>
    %156 = vector.shape_cast %155 : vector<1x2x2xf32> to vector<2x2xf32>
    %cst_143 = arith.constant dense<0.000000e+00> : vector<2x64xf32>
    %157 = tpu.matmul %156, %154, %cst_143 {dimension_numbers = #tpu.dot_dimension_numbers<[1], [0], [0], [1], [0, 0, 1, 1], [], []>} : vector<2x2xf32>, vector<2x64xf32>, vector<2x64xf32> -> vector<2x64xf32>
    %158 = arith.addf %151, %157 : vector<2x64xf32>
    %159 = vector.broadcast %4 : vector<2x1xf32> to vector<2x64xf32>
    %160 = arith.mulf %158, %159 : vector<2x64xf32>
    %161 = vector.broadcast %5 : vector<2x1xf32> to vector<2x64xf32>
    %162 = arith.addf %160, %161 : vector<2x64xf32>
    %c1_144 = arith.constant 1 : index
    %c0_145 = arith.constant 0 : index
    %c0_146 = arith.constant 0 : index
    %163 = vector.load %arg8[%c1_144, %c0_145, %c0_146] : memref<8x2x64xf32, #tpu.memory_space<vmem>>, vector<1x2x64xf32>
    %164 = vector.shape_cast %163 : vector<1x2x64xf32> to vector<2x64xf32>
    %165 = vector.shape_cast %162 : vector<2x64xf32> to vector<1x2x64xf32>
    tpu.vector_store %arg8[%c1_144, %c0_145, %c0_146], %165 {strides = array<i32>} : memref<8x2x64xf32, #tpu.memory_space<vmem>>, vector<1x2x64xf32>,
    %c1_147 = arith.constant 1 : index
    %c0_148 = arith.constant 0 : index
    %c0_149 = arith.constant 0 : index
    %166 = vector.load %arg2[%c1_147, %c0_148, %c0_149] : memref<3x2x2xf32, #tpu.memory_space<vmem>>, vector<1x2x2xf32>
    %167 = vector.shape_cast %166 : vector<1x2x2xf32> to vector<2x2xf32>
    %c2_150 = arith.constant 2 : index
    %c0_151 = arith.constant 0 : index
    %c0_152 = arith.constant 0 : index
    %168 = vector.load %arg1[%c2_150, %c0_151, %c0_152] : memref<8x2x64xf32, #tpu.memory_space<vmem>>, vector<1x2x64xf32>
    %169 = vector.shape_cast %168 : vector<1x2x64xf32> to vector<2x64xf32>
    %cst_153 = arith.constant dense<0.000000e+00> : vector<2x64xf32>
    %170 = tpu.matmul %167, %169, %cst_153 {dimension_numbers = #tpu.dot_dimension_numbers<[1], [0], [0], [1], [0, 0, 1, 1], [], []>} : vector<2x2xf32>, vector<2x64xf32>, vector<2x64xf32> -> vector<2x64xf32>
    %c0_154 = arith.constant 0 : index
    %c0_155 = arith.constant 0 : index
    %c0_156 = arith.constant 0 : index
    %171 = vector.load %arg2[%c0_154, %c0_155, %c0_156] : memref<3x2x2xf32, #tpu.memory_space<vmem>>, vector<1x2x2xf32>
    %172 = vector.shape_cast %171 : vector<1x2x2xf32> to vector<2x2xf32>
    %c1_157 = arith.constant 1 : index
    %c0_158 = arith.constant 0 : index
    %c0_159 = arith.constant 0 : index
    %173 = vector.load %arg1[%c1_157, %c0_158, %c0_159] : memref<8x2x64xf32, #tpu.memory_space<vmem>>, vector<1x2x64xf32>
    %174 = vector.shape_cast %173 : vector<1x2x64xf32> to vector<2x64xf32>
    %cst_160 = arith.constant dense<0.000000e+00> : vector<2x64xf32>
    %175 = tpu.matmul %172, %174, %cst_160 {dimension_numbers = #tpu.dot_dimension_numbers<[1], [0], [0], [1], [0, 0, 1, 1], [], []>} : vector<2x2xf32>, vector<2x64xf32>, vector<2x64xf32> -> vector<2x64xf32>
    %176 = arith.addf %170, %175 : vector<2x64xf32>
    %c2_161 = arith.constant 2 : index
    %c0_162 = arith.constant 0 : index
    %c0_163 = arith.constant 0 : index
    %177 = vector.load %arg2[%c2_161, %c0_162, %c0_163] : memref<3x2x2xf32, #tpu.memory_space<vmem>>, vector<1x2x2xf32>
    %178 = vector.shape_cast %177 : vector<1x2x2xf32> to vector<2x2xf32>
    %c3_164 = arith.constant 3 : index
    %c0_165 = arith.constant 0 : index
    %c0_166 = arith.constant 0 : index
    %179 = vector.load %arg1[%c3_164, %c0_165, %c0_166] : memref<8x2x64xf32, #tpu.memory_space<vmem>>, vector<1x2x64xf32>
    %180 = vector.shape_cast %179 : vector<1x2x64xf32> to vector<2x64xf32>
    %cst_167 = arith.constant dense<0.000000e+00> : vector<2x64xf32>
    %181 = tpu.matmul %178, %180, %cst_167 {dimension_numbers = #tpu.dot_dimension_numbers<[1], [0], [0], [1], [0, 0, 1, 1], [], []>} : vector<2x2xf32>, vector<2x64xf32>, vector<2x64xf32> -> vector<2x64xf32>
    %182 = arith.addf %176, %181 : vector<2x64xf32>
    %cst_168 = arith.constant 0.000000e+00 : f32
    %183 = vector.broadcast %cst_168 : f32 to vector<2x64xf32>
    %184 = arith.maximumf %182, %183 : vector<2x64xf32>
    %c0_169 = arith.constant 0 : index
    %c128_170 = arith.constant 128 : index
    %185 = vector.load %arg9[%c0_169, %c128_170] : memref<2x201xf32, #tpu.memory_space<vmem>>, vector<2x64xf32>
    tpu.vector_store %arg9[%c0_169, %c128_170], %184 {strides = array<i32>} : memref<2x201xf32, #tpu.memory_space<vmem>>, vector<2x64xf32>,
    %c0_171 = arith.constant 0 : index
    %c119_172 = arith.constant 119 : index
    %186 = vector.load %arg9[%c0_171, %c119_172] : memref<2x201xf32, #tpu.memory_space<vmem>>, vector<2x64xf32>
    %187 = vector.broadcast %2 : vector<1x64xf32> to vector<2x64xf32>
    %188 = arith.mulf %186, %187 : vector<2x64xf32>
    %c0_173 = arith.constant 0 : index
    %c0_174 = arith.constant 0 : index
    %c0_175 = arith.constant 0 : index
    %189 = vector.load %arg3[%c0_173, %c0_174, %c0_175] : memref<9x2x2xf32, #tpu.memory_space<vmem>>, vector<1x2x2xf32>
    %190 = vector.shape_cast %189 : vector<1x2x2xf32> to vector<2x2xf32>
    %cst_176 = arith.constant dense<0.000000e+00> : vector<2x64xf32>
    %191 = tpu.matmul %190, %188, %cst_176 {dimension_numbers = #tpu.dot_dimension_numbers<[1], [0], [0], [1], [0, 0, 1, 1], [], []>} : vector<2x2xf32>, vector<2x64xf32>, vector<2x64xf32> -> vector<2x64xf32>
    %c0_177 = arith.constant 0 : index
    %c120_178 = arith.constant 120 : index
    %192 = vector.load %arg9[%c0_177, %c120_178] : memref<2x201xf32, #tpu.memory_space<vmem>>, vector<2x64xf32>
    %c1_179 = arith.constant 1 : index
    %c0_180 = arith.constant 0 : index
    %c0_181 = arith.constant 0 : index
    %193 = vector.load %arg3[%c1_179, %c0_180, %c0_181] : memref<9x2x2xf32, #tpu.memory_space<vmem>>, vector<1x2x2xf32>
    %194 = vector.shape_cast %193 : vector<1x2x2xf32> to vector<2x2xf32>
    %cst_182 = arith.constant dense<0.000000e+00> : vector<2x64xf32>
    %195 = tpu.matmul %194, %192, %cst_182 {dimension_numbers = #tpu.dot_dimension_numbers<[1], [0], [0], [1], [0, 0, 1, 1], [], []>} : vector<2x2xf32>, vector<2x64xf32>, vector<2x64xf32> -> vector<2x64xf32>
    %196 = arith.addf %191, %195 : vector<2x64xf32>
    %c0_183 = arith.constant 0 : index
    %c121_184 = arith.constant 121 : index
    %197 = vector.load %arg9[%c0_183, %c121_184] : memref<2x201xf32, #tpu.memory_space<vmem>>, vector<2x64xf32>
    %198 = vector.broadcast %3 : vector<1x64xf32> to vector<2x64xf32>
    %199 = arith.mulf %197, %198 : vector<2x64xf32>
    %c2_185 = arith.constant 2 : index
    %c0_186 = arith.constant 0 : index
    %c0_187 = arith.constant 0 : index
    %200 = vector.load %arg3[%c2_185, %c0_186, %c0_187] : memref<9x2x2xf32, #tpu.memory_space<vmem>>, vector<1x2x2xf32>
    %201 = vector.shape_cast %200 : vector<1x2x2xf32> to vector<2x2xf32>
    %cst_188 = arith.constant dense<0.000000e+00> : vector<2x64xf32>
    %202 = tpu.matmul %201, %199, %cst_188 {dimension_numbers = #tpu.dot_dimension_numbers<[1], [0], [0], [1], [0, 0, 1, 1], [], []>} : vector<2x2xf32>, vector<2x64xf32>, vector<2x64xf32> -> vector<2x64xf32>
    %203 = arith.addf %196, %202 : vector<2x64xf32>
    %c0_189 = arith.constant 0 : index
    %c127_190 = arith.constant 127 : index
    %204 = vector.load %arg9[%c0_189, %c127_190] : memref<2x201xf32, #tpu.memory_space<vmem>>, vector<2x64xf32>
    %205 = vector.broadcast %2 : vector<1x64xf32> to vector<2x64xf32>
    %206 = arith.mulf %204, %205 : vector<2x64xf32>
    %c3_191 = arith.constant 3 : index
    %c0_192 = arith.constant 0 : index
    %c0_193 = arith.constant 0 : index
    %207 = vector.load %arg3[%c3_191, %c0_192, %c0_193] : memref<9x2x2xf32, #tpu.memory_space<vmem>>, vector<1x2x2xf32>
    %208 = vector.shape_cast %207 : vector<1x2x2xf32> to vector<2x2xf32>
    %cst_194 = arith.constant dense<0.000000e+00> : vector<2x64xf32>
    %209 = tpu.matmul %208, %206, %cst_194 {dimension_numbers = #tpu.dot_dimension_numbers<[1], [0], [0], [1], [0, 0, 1, 1], [], []>} : vector<2x2xf32>, vector<2x64xf32>, vector<2x64xf32> -> vector<2x64xf32>
    %210 = arith.addf %203, %209 : vector<2x64xf32>
    %c0_195 = arith.constant 0 : index
    %c128_196 = arith.constant 128 : index
    %211 = vector.load %arg9[%c0_195, %c128_196] : memref<2x201xf32, #tpu.memory_space<vmem>>, vector<2x64xf32>
    %c4_197 = arith.constant 4 : index
    %c0_198 = arith.constant 0 : index
    %c0_199 = arith.constant 0 : index
    %212 = vector.load %arg3[%c4_197, %c0_198, %c0_199] : memref<9x2x2xf32, #tpu.memory_space<vmem>>, vector<1x2x2xf32>
    %213 = vector.shape_cast %212 : vector<1x2x2xf32> to vector<2x2xf32>
    %cst_200 = arith.constant dense<0.000000e+00> : vector<2x64xf32>
    %214 = tpu.matmul %213, %211, %cst_200 {dimension_numbers = #tpu.dot_dimension_numbers<[1], [0], [0], [1], [0, 0, 1, 1], [], []>} : vector<2x2xf32>, vector<2x64xf32>, vector<2x64xf32> -> vector<2x64xf32>
    %215 = arith.addf %210, %214 : vector<2x64xf32>
    %c0_201 = arith.constant 0 : index
    %c129_202 = arith.constant 129 : index
    %216 = vector.load %arg9[%c0_201, %c129_202] : memref<2x201xf32, #tpu.memory_space<vmem>>, vector<2x64xf32>
    %217 = vector.broadcast %3 : vector<1x64xf32> to vector<2x64xf32>
    %218 = arith.mulf %216, %217 : vector<2x64xf32>
    %c5_203 = arith.constant 5 : index
    %c0_204 = arith.constant 0 : index
    %c0_205 = arith.constant 0 : index
    %219 = vector.load %arg3[%c5_203, %c0_204, %c0_205] : memref<9x2x2xf32, #tpu.memory_space<vmem>>, vector<1x2x2xf32>
    %220 = vector.shape_cast %219 : vector<1x2x2xf32> to vector<2x2xf32>
    %cst_206 = arith.constant dense<0.000000e+00> : vector<2x64xf32>
    %221 = tpu.matmul %220, %218, %cst_206 {dimension_numbers = #tpu.dot_dimension_numbers<[1], [0], [0], [1], [0, 0, 1, 1], [], []>} : vector<2x2xf32>, vector<2x64xf32>, vector<2x64xf32> -> vector<2x64xf32>
    %222 = arith.addf %215, %221 : vector<2x64xf32>
    %c0_207 = arith.constant 0 : index
    %c135_208 = arith.constant 135 : index
    %223 = vector.load %arg9[%c0_207, %c135_208] : memref<2x201xf32, #tpu.memory_space<vmem>>, vector<2x64xf32>
    %224 = vector.broadcast %2 : vector<1x64xf32> to vector<2x64xf32>
    %225 = arith.mulf %223, %224 : vector<2x64xf32>
    %c6_209 = arith.constant 6 : index
    %c0_210 = arith.constant 0 : index
    %c0_211 = arith.constant 0 : index
    %226 = vector.load %arg3[%c6_209, %c0_210, %c0_211] : memref<9x2x2xf32, #tpu.memory_space<vmem>>, vector<1x2x2xf32>
    %227 = vector.shape_cast %226 : vector<1x2x2xf32> to vector<2x2xf32>
    %cst_212 = arith.constant dense<0.000000e+00> : vector<2x64xf32>
    %228 = tpu.matmul %227, %225, %cst_212 {dimension_numbers = #tpu.dot_dimension_numbers<[1], [0], [0], [1], [0, 0, 1, 1], [], []>} : vector<2x2xf32>, vector<2x64xf32>, vector<2x64xf32> -> vector<2x64xf32>
    %229 = arith.addf %222, %228 : vector<2x64xf32>
    %c0_213 = arith.constant 0 : index
    %c136_214 = arith.constant 136 : index
    %230 = vector.load %arg9[%c0_213, %c136_214] : memref<2x201xf32, #tpu.memory_space<vmem>>, vector<2x64xf32>
    %c7_215 = arith.constant 7 : index
    %c0_216 = arith.constant 0 : index
    %c0_217 = arith.constant 0 : index
    %231 = vector.load %arg3[%c7_215, %c0_216, %c0_217] : memref<9x2x2xf32, #tpu.memory_space<vmem>>, vector<1x2x2xf32>
    %232 = vector.shape_cast %231 : vector<1x2x2xf32> to vector<2x2xf32>
    %cst_218 = arith.constant dense<0.000000e+00> : vector<2x64xf32>
    %233 = tpu.matmul %232, %230, %cst_218 {dimension_numbers = #tpu.dot_dimension_numbers<[1], [0], [0], [1], [0, 0, 1, 1], [], []>} : vector<2x2xf32>, vector<2x64xf32>, vector<2x64xf32> -> vector<2x64xf32>
    %234 = arith.addf %229, %233 : vector<2x64xf32>
    %c0_219 = arith.constant 0 : index
    %c137_220 = arith.constant 137 : index
    %235 = vector.load %arg9[%c0_219, %c137_220] : memref<2x201xf32, #tpu.memory_space<vmem>>, vector<2x64xf32>
    %236 = vector.broadcast %3 : vector<1x64xf32> to vector<2x64xf32>
    %237 = arith.mulf %235, %236 : vector<2x64xf32>
    %c8_221 = arith.constant 8 : index
    %c0_222 = arith.constant 0 : index
    %c0_223 = arith.constant 0 : index
    %238 = vector.load %arg3[%c8_221, %c0_222, %c0_223] : memref<9x2x2xf32, #tpu.memory_space<vmem>>, vector<1x2x2xf32>
    %239 = vector.shape_cast %238 : vector<1x2x2xf32> to vector<2x2xf32>
    %cst_224 = arith.constant dense<0.000000e+00> : vector<2x64xf32>
    %240 = tpu.matmul %239, %237, %cst_224 {dimension_numbers = #tpu.dot_dimension_numbers<[1], [0], [0], [1], [0, 0, 1, 1], [], []>} : vector<2x2xf32>, vector<2x64xf32>, vector<2x64xf32> -> vector<2x64xf32>
    %241 = arith.addf %234, %240 : vector<2x64xf32>
    %242 = vector.broadcast %4 : vector<2x1xf32> to vector<2x64xf32>
    %243 = arith.mulf %241, %242 : vector<2x64xf32>
    %244 = vector.broadcast %5 : vector<2x1xf32> to vector<2x64xf32>
    %245 = arith.addf %243, %244 : vector<2x64xf32>
    %c2_225 = arith.constant 2 : index
    %c0_226 = arith.constant 0 : index
    %c0_227 = arith.constant 0 : index
    %246 = vector.load %arg8[%c2_225, %c0_226, %c0_227] : memref<8x2x64xf32, #tpu.memory_space<vmem>>, vector<1x2x64xf32>
    %247 = vector.shape_cast %246 : vector<1x2x64xf32> to vector<2x64xf32>
    %248 = vector.shape_cast %245 : vector<2x64xf32> to vector<1x2x64xf32>
    tpu.vector_store %arg8[%c2_225, %c0_226, %c0_227], %248 {strides = array<i32>} : memref<8x2x64xf32, #tpu.memory_space<vmem>>, vector<1x2x64xf32>,
    %c1_228 = arith.constant 1 : index
    %c0_229 = arith.constant 0 : index
    %c0_230 = arith.constant 0 : index
    %249 = vector.load %arg2[%c1_228, %c0_229, %c0_230] : memref<3x2x2xf32, #tpu.memory_space<vmem>>, vector<1x2x2xf32>
    %250 = vector.shape_cast %249 : vector<1x2x2xf32> to vector<2x2xf32>
    %c3_231 = arith.constant 3 : index
    %c0_232 = arith.constant 0 : index
    %c0_233 = arith.constant 0 : index
    %251 = vector.load %arg1[%c3_231, %c0_232, %c0_233] : memref<8x2x64xf32, #tpu.memory_space<vmem>>, vector<1x2x64xf32>
    %252 = vector.shape_cast %251 : vector<1x2x64xf32> to vector<2x64xf32>
    %cst_234 = arith.constant dense<0.000000e+00> : vector<2x64xf32>
    %253 = tpu.matmul %250, %252, %cst_234 {dimension_numbers = #tpu.dot_dimension_numbers<[1], [0], [0], [1], [0, 0, 1, 1], [], []>} : vector<2x2xf32>, vector<2x64xf32>, vector<2x64xf32> -> vector<2x64xf32>
    %c0_235 = arith.constant 0 : index
    %c0_236 = arith.constant 0 : index
    %c0_237 = arith.constant 0 : index
    %254 = vector.load %arg2[%c0_235, %c0_236, %c0_237] : memref<3x2x2xf32, #tpu.memory_space<vmem>>, vector<1x2x2xf32>
    %255 = vector.shape_cast %254 : vector<1x2x2xf32> to vector<2x2xf32>
    %c2_238 = arith.constant 2 : index
    %c0_239 = arith.constant 0 : index
    %c0_240 = arith.constant 0 : index
    %256 = vector.load %arg1[%c2_238, %c0_239, %c0_240] : memref<8x2x64xf32, #tpu.memory_space<vmem>>, vector<1x2x64xf32>
    %257 = vector.shape_cast %256 : vector<1x2x64xf32> to vector<2x64xf32>
    %cst_241 = arith.constant dense<0.000000e+00> : vector<2x64xf32>
    %258 = tpu.matmul %255, %257, %cst_241 {dimension_numbers = #tpu.dot_dimension_numbers<[1], [0], [0], [1], [0, 0, 1, 1], [], []>} : vector<2x2xf32>, vector<2x64xf32>, vector<2x64xf32> -> vector<2x64xf32>
    %259 = arith.addf %253, %258 : vector<2x64xf32>
    %c2_242 = arith.constant 2 : index
    %c0_243 = arith.constant 0 : index
    %c0_244 = arith.constant 0 : index
    %260 = vector.load %arg2[%c2_242, %c0_243, %c0_244] : memref<3x2x2xf32, #tpu.memory_space<vmem>>, vector<1x2x2xf32>
    %261 = vector.shape_cast %260 : vector<1x2x2xf32> to vector<2x2xf32>
    %c4_245 = arith.constant 4 : index
    %c0_246 = arith.constant 0 : index
    %c0_247 = arith.constant 0 : index
    %262 = vector.load %arg1[%c4_245, %c0_246, %c0_247] : memref<8x2x64xf32, #tpu.memory_space<vmem>>, vector<1x2x64xf32>
    %263 = vector.shape_cast %262 : vector<1x2x64xf32> to vector<2x64xf32>
    %cst_248 = arith.constant dense<0.000000e+00> : vector<2x64xf32>
    %264 = tpu.matmul %261, %263, %cst_248 {dimension_numbers = #tpu.dot_dimension_numbers<[1], [0], [0], [1], [0, 0, 1, 1], [], []>} : vector<2x2xf32>, vector<2x64xf32>, vector<2x64xf32> -> vector<2x64xf32>
    %265 = arith.addf %259, %264 : vector<2x64xf32>
    %cst_249 = arith.constant 0.000000e+00 : f32
    %266 = vector.broadcast %cst_249 : f32 to vector<2x64xf32>
    %267 = arith.maximumf %265, %266 : vector<2x64xf32>
    %c0_250 = arith.constant 0 : index
    %c128_251 = arith.constant 128 : index
    %268 = vector.load %arg9[%c0_250, %c128_251] : memref<2x201xf32, #tpu.memory_space<vmem>>, vector<2x64xf32>
    tpu.vector_store %arg9[%c0_250, %c128_251], %267 {strides = array<i32>} : memref<2x201xf32, #tpu.memory_space<vmem>>, vector<2x64xf32>,
    %c0_252 = arith.constant 0 : index
    %c119_253 = arith.constant 119 : index
    %269 = vector.load %arg9[%c0_252, %c119_253] : memref<2x201xf32, #tpu.memory_space<vmem>>, vector<2x64xf32>
    %270 = vector.broadcast %2 : vector<1x64xf32> to vector<2x64xf32>
    %271 = arith.mulf %269, %270 : vector<2x64xf32>
    %c0_254 = arith.constant 0 : index
    %c0_255 = arith.constant 0 : index
    %c0_256 = arith.constant 0 : index
    %272 = vector.load %arg3[%c0_254, %c0_255, %c0_256] : memref<9x2x2xf32, #tpu.memory_space<vmem>>, vector<1x2x2xf32>
    %273 = vector.shape_cast %272 : vector<1x2x2xf32> to vector<2x2xf32>
    %cst_257 = arith.constant dense<0.000000e+00> : vector<2x64xf32>
    %274 = tpu.matmul %273, %271, %cst_257 {dimension_numbers = #tpu.dot_dimension_numbers<[1], [0], [0], [1], [0, 0, 1, 1], [], []>} : vector<2x2xf32>, vector<2x64xf32>, vector<2x64xf32> -> vector<2x64xf32>
    %c0_258 = arith.constant 0 : index
    %c120_259 = arith.constant 120 : index
    %275 = vector.load %arg9[%c0_258, %c120_259] : memref<2x201xf32, #tpu.memory_space<vmem>>, vector<2x64xf32>
    %c1_260 = arith.constant 1 : index
    %c0_261 = arith.constant 0 : index
    %c0_262 = arith.constant 0 : index
    %276 = vector.load %arg3[%c1_260, %c0_261, %c0_262] : memref<9x2x2xf32, #tpu.memory_space<vmem>>, vector<1x2x2xf32>
    %277 = vector.shape_cast %276 : vector<1x2x2xf32> to vector<2x2xf32>
    %cst_263 = arith.constant dense<0.000000e+00> : vector<2x64xf32>
    %278 = tpu.matmul %277, %275, %cst_263 {dimension_numbers = #tpu.dot_dimension_numbers<[1], [0], [0], [1], [0, 0, 1, 1], [], []>} : vector<2x2xf32>, vector<2x64xf32>, vector<2x64xf32> -> vector<2x64xf32>
    %279 = arith.addf %274, %278 : vector<2x64xf32>
    %c0_264 = arith.constant 0 : index
    %c121_265 = arith.constant 121 : index
    %280 = vector.load %arg9[%c0_264, %c121_265] : memref<2x201xf32, #tpu.memory_space<vmem>>, vector<2x64xf32>
    %281 = vector.broadcast %3 : vector<1x64xf32> to vector<2x64xf32>
    %282 = arith.mulf %280, %281 : vector<2x64xf32>
    %c2_266 = arith.constant 2 : index
    %c0_267 = arith.constant 0 : index
    %c0_268 = arith.constant 0 : index
    %283 = vector.load %arg3[%c2_266, %c0_267, %c0_268] : memref<9x2x2xf32, #tpu.memory_space<vmem>>, vector<1x2x2xf32>
    %284 = vector.shape_cast %283 : vector<1x2x2xf32> to vector<2x2xf32>
    %cst_269 = arith.constant dense<0.000000e+00> : vector<2x64xf32>
    %285 = tpu.matmul %284, %282, %cst_269 {dimension_numbers = #tpu.dot_dimension_numbers<[1], [0], [0], [1], [0, 0, 1, 1], [], []>} : vector<2x2xf32>, vector<2x64xf32>, vector<2x64xf32> -> vector<2x64xf32>
    %286 = arith.addf %279, %285 : vector<2x64xf32>
    %c0_270 = arith.constant 0 : index
    %c127_271 = arith.constant 127 : index
    %287 = vector.load %arg9[%c0_270, %c127_271] : memref<2x201xf32, #tpu.memory_space<vmem>>, vector<2x64xf32>
    %288 = vector.broadcast %2 : vector<1x64xf32> to vector<2x64xf32>
    %289 = arith.mulf %287, %288 : vector<2x64xf32>
    %c3_272 = arith.constant 3 : index
    %c0_273 = arith.constant 0 : index
    %c0_274 = arith.constant 0 : index
    %290 = vector.load %arg3[%c3_272, %c0_273, %c0_274] : memref<9x2x2xf32, #tpu.memory_space<vmem>>, vector<1x2x2xf32>
    %291 = vector.shape_cast %290 : vector<1x2x2xf32> to vector<2x2xf32>
    %cst_275 = arith.constant dense<0.000000e+00> : vector<2x64xf32>
    %292 = tpu.matmul %291, %289, %cst_275 {dimension_numbers = #tpu.dot_dimension_numbers<[1], [0], [0], [1], [0, 0, 1, 1], [], []>} : vector<2x2xf32>, vector<2x64xf32>, vector<2x64xf32> -> vector<2x64xf32>
    %293 = arith.addf %286, %292 : vector<2x64xf32>
    %c0_276 = arith.constant 0 : index
    %c128_277 = arith.constant 128 : index
    %294 = vector.load %arg9[%c0_276, %c128_277] : memref<2x201xf32, #tpu.memory_space<vmem>>, vector<2x64xf32>
    %c4_278 = arith.constant 4 : index
    %c0_279 = arith.constant 0 : index
    %c0_280 = arith.constant 0 : index
    %295 = vector.load %arg3[%c4_278, %c0_279, %c0_280] : memref<9x2x2xf32, #tpu.memory_space<vmem>>, vector<1x2x2xf32>
    %296 = vector.shape_cast %295 : vector<1x2x2xf32> to vector<2x2xf32>
    %cst_281 = arith.constant dense<0.000000e+00> : vector<2x64xf32>
    %297 = tpu.matmul %296, %294, %cst_281 {dimension_numbers = #tpu.dot_dimension_numbers<[1], [0], [0], [1], [0, 0, 1, 1], [], []>} : vector<2x2xf32>, vector<2x64xf32>, vector<2x64xf32> -> vector<2x64xf32>
    %298 = arith.addf %293, %297 : vector<2x64xf32>
    %c0_282 = arith.constant 0 : index
    %c129_283 = arith.constant 129 : index
    %299 = vector.load %arg9[%c0_282, %c129_283] : memref<2x201xf32, #tpu.memory_space<vmem>>, vector<2x64xf32>
    %300 = vector.broadcast %3 : vector<1x64xf32> to vector<2x64xf32>
    %301 = arith.mulf %299, %300 : vector<2x64xf32>
    %c5_284 = arith.constant 5 : index
    %c0_285 = arith.constant 0 : index
    %c0_286 = arith.constant 0 : index
    %302 = vector.load %arg3[%c5_284, %c0_285, %c0_286] : memref<9x2x2xf32, #tpu.memory_space<vmem>>, vector<1x2x2xf32>
    %303 = vector.shape_cast %302 : vector<1x2x2xf32> to vector<2x2xf32>
    %cst_287 = arith.constant dense<0.000000e+00> : vector<2x64xf32>
    %304 = tpu.matmul %303, %301, %cst_287 {dimension_numbers = #tpu.dot_dimension_numbers<[1], [0], [0], [1], [0, 0, 1, 1], [], []>} : vector<2x2xf32>, vector<2x64xf32>, vector<2x64xf32> -> vector<2x64xf32>
    %305 = arith.addf %298, %304 : vector<2x64xf32>
    %c0_288 = arith.constant 0 : index
    %c135_289 = arith.constant 135 : index
    %306 = vector.load %arg9[%c0_288, %c135_289] : memref<2x201xf32, #tpu.memory_space<vmem>>, vector<2x64xf32>
    %307 = vector.broadcast %2 : vector<1x64xf32> to vector<2x64xf32>
    %308 = arith.mulf %306, %307 : vector<2x64xf32>
    %c6_290 = arith.constant 6 : index
    %c0_291 = arith.constant 0 : index
    %c0_292 = arith.constant 0 : index
    %309 = vector.load %arg3[%c6_290, %c0_291, %c0_292] : memref<9x2x2xf32, #tpu.memory_space<vmem>>, vector<1x2x2xf32>
    %310 = vector.shape_cast %309 : vector<1x2x2xf32> to vector<2x2xf32>
    %cst_293 = arith.constant dense<0.000000e+00> : vector<2x64xf32>
    %311 = tpu.matmul %310, %308, %cst_293 {dimension_numbers = #tpu.dot_dimension_numbers<[1], [0], [0], [1], [0, 0, 1, 1], [], []>} : vector<2x2xf32>, vector<2x64xf32>, vector<2x64xf32> -> vector<2x64xf32>
    %312 = arith.addf %305, %311 : vector<2x64xf32>
    %c0_294 = arith.constant 0 : index
    %c136_295 = arith.constant 136 : index
    %313 = vector.load %arg9[%c0_294, %c136_295] : memref<2x201xf32, #tpu.memory_space<vmem>>, vector<2x64xf32>
    %c7_296 = arith.constant 7 : index
    %c0_297 = arith.constant 0 : index
    %c0_298 = arith.constant 0 : index
    %314 = vector.load %arg3[%c7_296, %c0_297, %c0_298] : memref<9x2x2xf32, #tpu.memory_space<vmem>>, vector<1x2x2xf32>
    %315 = vector.shape_cast %314 : vector<1x2x2xf32> to vector<2x2xf32>
    %cst_299 = arith.constant dense<0.000000e+00> : vector<2x64xf32>
    %316 = tpu.matmul %315, %313, %cst_299 {dimension_numbers = #tpu.dot_dimension_numbers<[1], [0], [0], [1], [0, 0, 1, 1], [], []>} : vector<2x2xf32>, vector<2x64xf32>, vector<2x64xf32> -> vector<2x64xf32>
    %317 = arith.addf %312, %316 : vector<2x64xf32>
    %c0_300 = arith.constant 0 : index
    %c137_301 = arith.constant 137 : index
    %318 = vector.load %arg9[%c0_300, %c137_301] : memref<2x201xf32, #tpu.memory_space<vmem>>, vector<2x64xf32>
    %319 = vector.broadcast %3 : vector<1x64xf32> to vector<2x64xf32>
    %320 = arith.mulf %318, %319 : vector<2x64xf32>
    %c8_302 = arith.constant 8 : index
    %c0_303 = arith.constant 0 : index
    %c0_304 = arith.constant 0 : index
    %321 = vector.load %arg3[%c8_302, %c0_303, %c0_304] : memref<9x2x2xf32, #tpu.memory_space<vmem>>, vector<1x2x2xf32>
    %322 = vector.shape_cast %321 : vector<1x2x2xf32> to vector<2x2xf32>
    %cst_305 = arith.constant dense<0.000000e+00> : vector<2x64xf32>
    %323 = tpu.matmul %322, %320, %cst_305 {dimension_numbers = #tpu.dot_dimension_numbers<[1], [0], [0], [1], [0, 0, 1, 1], [], []>} : vector<2x2xf32>, vector<2x64xf32>, vector<2x64xf32> -> vector<2x64xf32>
    %324 = arith.addf %317, %323 : vector<2x64xf32>
    %325 = vector.broadcast %4 : vector<2x1xf32> to vector<2x64xf32>
    %326 = arith.mulf %324, %325 : vector<2x64xf32>
    %327 = vector.broadcast %5 : vector<2x1xf32> to vector<2x64xf32>
    %328 = arith.addf %326, %327 : vector<2x64xf32>
    %c3_306 = arith.constant 3 : index
    %c0_307 = arith.constant 0 : index
    %c0_308 = arith.constant 0 : index
    %329 = vector.load %arg8[%c3_306, %c0_307, %c0_308] : memref<8x2x64xf32, #tpu.memory_space<vmem>>, vector<1x2x64xf32>
    %330 = vector.shape_cast %329 : vector<1x2x64xf32> to vector<2x64xf32>
    %331 = vector.shape_cast %328 : vector<2x64xf32> to vector<1x2x64xf32>
    tpu.vector_store %arg8[%c3_306, %c0_307, %c0_308], %331 {strides = array<i32>} : memref<8x2x64xf32, #tpu.memory_space<vmem>>, vector<1x2x64xf32>,
    %c1_309 = arith.constant 1 : index
    %c0_310 = arith.constant 0 : index
    %c0_311 = arith.constant 0 : index
    %332 = vector.load %arg2[%c1_309, %c0_310, %c0_311] : memref<3x2x2xf32, #tpu.memory_space<vmem>>, vector<1x2x2xf32>
    %333 = vector.shape_cast %332 : vector<1x2x2xf32> to vector<2x2xf32>
    %c4_312 = arith.constant 4 : index
    %c0_313 = arith.constant 0 : index
    %c0_314 = arith.constant 0 : index
    %334 = vector.load %arg1[%c4_312, %c0_313, %c0_314] : memref<8x2x64xf32, #tpu.memory_space<vmem>>, vector<1x2x64xf32>
    %335 = vector.shape_cast %334 : vector<1x2x64xf32> to vector<2x64xf32>
    %cst_315 = arith.constant dense<0.000000e+00> : vector<2x64xf32>
    %336 = tpu.matmul %333, %335, %cst_315 {dimension_numbers = #tpu.dot_dimension_numbers<[1], [0], [0], [1], [0, 0, 1, 1], [], []>} : vector<2x2xf32>, vector<2x64xf32>, vector<2x64xf32> -> vector<2x64xf32>
    %c0_316 = arith.constant 0 : index
    %c0_317 = arith.constant 0 : index
    %c0_318 = arith.constant 0 : index
    %337 = vector.load %arg2[%c0_316, %c0_317, %c0_318] : memref<3x2x2xf32, #tpu.memory_space<vmem>>, vector<1x2x2xf32>
    %338 = vector.shape_cast %337 : vector<1x2x2xf32> to vector<2x2xf32>
    %c3_319 = arith.constant 3 : index
    %c0_320 = arith.constant 0 : index
    %c0_321 = arith.constant 0 : index
    %339 = vector.load %arg1[%c3_319, %c0_320, %c0_321] : memref<8x2x64xf32, #tpu.memory_space<vmem>>, vector<1x2x64xf32>
    %340 = vector.shape_cast %339 : vector<1x2x64xf32> to vector<2x64xf32>
    %cst_322 = arith.constant dense<0.000000e+00> : vector<2x64xf32>
    %341 = tpu.matmul %338, %340, %cst_322 {dimension_numbers = #tpu.dot_dimension_numbers<[1], [0], [0], [1], [0, 0, 1, 1], [], []>} : vector<2x2xf32>, vector<2x64xf32>, vector<2x64xf32> -> vector<2x64xf32>
    %342 = arith.addf %336, %341 : vector<2x64xf32>
    %c2_323 = arith.constant 2 : index
    %c0_324 = arith.constant 0 : index
    %c0_325 = arith.constant 0 : index
    %343 = vector.load %arg2[%c2_323, %c0_324, %c0_325] : memref<3x2x2xf32, #tpu.memory_space<vmem>>, vector<1x2x2xf32>
    %344 = vector.shape_cast %343 : vector<1x2x2xf32> to vector<2x2xf32>
    %c5_326 = arith.constant 5 : index
    %c0_327 = arith.constant 0 : index
    %c0_328 = arith.constant 0 : index
    %345 = vector.load %arg1[%c5_326, %c0_327, %c0_328] : memref<8x2x64xf32, #tpu.memory_space<vmem>>, vector<1x2x64xf32>
    %346 = vector.shape_cast %345 : vector<1x2x64xf32> to vector<2x64xf32>
    %cst_329 = arith.constant dense<0.000000e+00> : vector<2x64xf32>
    %347 = tpu.matmul %344, %346, %cst_329 {dimension_numbers = #tpu.dot_dimension_numbers<[1], [0], [0], [1], [0, 0, 1, 1], [], []>} : vector<2x2xf32>, vector<2x64xf32>, vector<2x64xf32> -> vector<2x64xf32>
    %348 = arith.addf %342, %347 : vector<2x64xf32>
    %cst_330 = arith.constant 0.000000e+00 : f32
    %349 = vector.broadcast %cst_330 : f32 to vector<2x64xf32>
    %350 = arith.maximumf %348, %349 : vector<2x64xf32>
    %c0_331 = arith.constant 0 : index
    %c128_332 = arith.constant 128 : index
    %351 = vector.load %arg9[%c0_331, %c128_332] : memref<2x201xf32, #tpu.memory_space<vmem>>, vector<2x64xf32>
    tpu.vector_store %arg9[%c0_331, %c128_332], %350 {strides = array<i32>} : memref<2x201xf32, #tpu.memory_space<vmem>>, vector<2x64xf32>,
    %c0_333 = arith.constant 0 : index
    %c119_334 = arith.constant 119 : index
    %352 = vector.load %arg9[%c0_333, %c119_334] : memref<2x201xf32, #tpu.memory_space<vmem>>, vector<2x64xf32>
    %353 = vector.broadcast %2 : vector<1x64xf32> to vector<2x64xf32>
    %354 = arith.mulf %352, %353 : vector<2x64xf32>
    %c0_335 = arith.constant 0 : index
    %c0_336 = arith.constant 0 : index
    %c0_337 = arith.constant 0 : index
    %355 = vector.load %arg3[%c0_335, %c0_336, %c0_337] : memref<9x2x2xf32, #tpu.memory_space<vmem>>, vector<1x2x2xf32>
    %356 = vector.shape_cast %355 : vector<1x2x2xf32> to vector<2x2xf32>
    %cst_338 = arith.constant dense<0.000000e+00> : vector<2x64xf32>
    %357 = tpu.matmul %356, %354, %cst_338 {dimension_numbers = #tpu.dot_dimension_numbers<[1], [0], [0], [1], [0, 0, 1, 1], [], []>} : vector<2x2xf32>, vector<2x64xf32>, vector<2x64xf32> -> vector<2x64xf32>
    %c0_339 = arith.constant 0 : index
    %c120_340 = arith.constant 120 : index
    %358 = vector.load %arg9[%c0_339, %c120_340] : memref<2x201xf32, #tpu.memory_space<vmem>>, vector<2x64xf32>
    %c1_341 = arith.constant 1 : index
    %c0_342 = arith.constant 0 : index
    %c0_343 = arith.constant 0 : index
    %359 = vector.load %arg3[%c1_341, %c0_342, %c0_343] : memref<9x2x2xf32, #tpu.memory_space<vmem>>, vector<1x2x2xf32>
    %360 = vector.shape_cast %359 : vector<1x2x2xf32> to vector<2x2xf32>
    %cst_344 = arith.constant dense<0.000000e+00> : vector<2x64xf32>
    %361 = tpu.matmul %360, %358, %cst_344 {dimension_numbers = #tpu.dot_dimension_numbers<[1], [0], [0], [1], [0, 0, 1, 1], [], []>} : vector<2x2xf32>, vector<2x64xf32>, vector<2x64xf32> -> vector<2x64xf32>
    %362 = arith.addf %357, %361 : vector<2x64xf32>
    %c0_345 = arith.constant 0 : index
    %c121_346 = arith.constant 121 : index
    %363 = vector.load %arg9[%c0_345, %c121_346] : memref<2x201xf32, #tpu.memory_space<vmem>>, vector<2x64xf32>
    %364 = vector.broadcast %3 : vector<1x64xf32> to vector<2x64xf32>
    %365 = arith.mulf %363, %364 : vector<2x64xf32>
    %c2_347 = arith.constant 2 : index
    %c0_348 = arith.constant 0 : index
    %c0_349 = arith.constant 0 : index
    %366 = vector.load %arg3[%c2_347, %c0_348, %c0_349] : memref<9x2x2xf32, #tpu.memory_space<vmem>>, vector<1x2x2xf32>
    %367 = vector.shape_cast %366 : vector<1x2x2xf32> to vector<2x2xf32>
    %cst_350 = arith.constant dense<0.000000e+00> : vector<2x64xf32>
    %368 = tpu.matmul %367, %365, %cst_350 {dimension_numbers = #tpu.dot_dimension_numbers<[1], [0], [0], [1], [0, 0, 1, 1], [], []>} : vector<2x2xf32>, vector<2x64xf32>, vector<2x64xf32> -> vector<2x64xf32>
    %369 = arith.addf %362, %368 : vector<2x64xf32>
    %c0_351 = arith.constant 0 : index
    %c127_352 = arith.constant 127 : index
    %370 = vector.load %arg9[%c0_351, %c127_352] : memref<2x201xf32, #tpu.memory_space<vmem>>, vector<2x64xf32>
    %371 = vector.broadcast %2 : vector<1x64xf32> to vector<2x64xf32>
    %372 = arith.mulf %370, %371 : vector<2x64xf32>
    %c3_353 = arith.constant 3 : index
    %c0_354 = arith.constant 0 : index
    %c0_355 = arith.constant 0 : index
    %373 = vector.load %arg3[%c3_353, %c0_354, %c0_355] : memref<9x2x2xf32, #tpu.memory_space<vmem>>, vector<1x2x2xf32>
    %374 = vector.shape_cast %373 : vector<1x2x2xf32> to vector<2x2xf32>
    %cst_356 = arith.constant dense<0.000000e+00> : vector<2x64xf32>
    %375 = tpu.matmul %374, %372, %cst_356 {dimension_numbers = #tpu.dot_dimension_numbers<[1], [0], [0], [1], [0, 0, 1, 1], [], []>} : vector<2x2xf32>, vector<2x64xf32>, vector<2x64xf32> -> vector<2x64xf32>
    %376 = arith.addf %369, %375 : vector<2x64xf32>
    %c0_357 = arith.constant 0 : index
    %c128_358 = arith.constant 128 : index
    %377 = vector.load %arg9[%c0_357, %c128_358] : memref<2x201xf32, #tpu.memory_space<vmem>>, vector<2x64xf32>
    %c4_359 = arith.constant 4 : index
    %c0_360 = arith.constant 0 : index
    %c0_361 = arith.constant 0 : index
    %378 = vector.load %arg3[%c4_359, %c0_360, %c0_361] : memref<9x2x2xf32, #tpu.memory_space<vmem>>, vector<1x2x2xf32>
    %379 = vector.shape_cast %378 : vector<1x2x2xf32> to vector<2x2xf32>
    %cst_362 = arith.constant dense<0.000000e+00> : vector<2x64xf32>
    %380 = tpu.matmul %379, %377, %cst_362 {dimension_numbers = #tpu.dot_dimension_numbers<[1], [0], [0], [1], [0, 0, 1, 1], [], []>} : vector<2x2xf32>, vector<2x64xf32>, vector<2x64xf32> -> vector<2x64xf32>
    %381 = arith.addf %376, %380 : vector<2x64xf32>
    %c0_363 = arith.constant 0 : index
    %c129_364 = arith.constant 129 : index
    %382 = vector.load %arg9[%c0_363, %c129_364] : memref<2x201xf32, #tpu.memory_space<vmem>>, vector<2x64xf32>
    %383 = vector.broadcast %3 : vector<1x64xf32> to vector<2x64xf32>
    %384 = arith.mulf %382, %383 : vector<2x64xf32>
    %c5_365 = arith.constant 5 : index
    %c0_366 = arith.constant 0 : index
    %c0_367 = arith.constant 0 : index
    %385 = vector.load %arg3[%c5_365, %c0_366, %c0_367] : memref<9x2x2xf32, #tpu.memory_space<vmem>>, vector<1x2x2xf32>
    %386 = vector.shape_cast %385 : vector<1x2x2xf32> to vector<2x2xf32>
    %cst_368 = arith.constant dense<0.000000e+00> : vector<2x64xf32>
    %387 = tpu.matmul %386, %384, %cst_368 {dimension_numbers = #tpu.dot_dimension_numbers<[1], [0], [0], [1], [0, 0, 1, 1], [], []>} : vector<2x2xf32>, vector<2x64xf32>, vector<2x64xf32> -> vector<2x64xf32>
    %388 = arith.addf %381, %387 : vector<2x64xf32>
    %c0_369 = arith.constant 0 : index
    %c135_370 = arith.constant 135 : index
    %389 = vector.load %arg9[%c0_369, %c135_370] : memref<2x201xf32, #tpu.memory_space<vmem>>, vector<2x64xf32>
    %390 = vector.broadcast %2 : vector<1x64xf32> to vector<2x64xf32>
    %391 = arith.mulf %389, %390 : vector<2x64xf32>
    %c6_371 = arith.constant 6 : index
    %c0_372 = arith.constant 0 : index
    %c0_373 = arith.constant 0 : index
    %392 = vector.load %arg3[%c6_371, %c0_372, %c0_373] : memref<9x2x2xf32, #tpu.memory_space<vmem>>, vector<1x2x2xf32>
    %393 = vector.shape_cast %392 : vector<1x2x2xf32> to vector<2x2xf32>
    %cst_374 = arith.constant dense<0.000000e+00> : vector<2x64xf32>
    %394 = tpu.matmul %393, %391, %cst_374 {dimension_numbers = #tpu.dot_dimension_numbers<[1], [0], [0], [1], [0, 0, 1, 1], [], []>} : vector<2x2xf32>, vector<2x64xf32>, vector<2x64xf32> -> vector<2x64xf32>
    %395 = arith.addf %388, %394 : vector<2x64xf32>
    %c0_375 = arith.constant 0 : index
    %c136_376 = arith.constant 136 : index
    %396 = vector.load %arg9[%c0_375, %c136_376] : memref<2x201xf32, #tpu.memory_space<vmem>>, vector<2x64xf32>
    %c7_377 = arith.constant 7 : index
    %c0_378 = arith.constant 0 : index
    %c0_379 = arith.constant 0 : index
    %397 = vector.load %arg3[%c7_377, %c0_378, %c0_379] : memref<9x2x2xf32, #tpu.memory_space<vmem>>, vector<1x2x2xf32>
    %398 = vector.shape_cast %397 : vector<1x2x2xf32> to vector<2x2xf32>
    %cst_380 = arith.constant dense<0.000000e+00> : vector<2x64xf32>
    %399 = tpu.matmul %398, %396, %cst_380 {dimension_numbers = #tpu.dot_dimension_numbers<[1], [0], [0], [1], [0, 0, 1, 1], [], []>} : vector<2x2xf32>, vector<2x64xf32>, vector<2x64xf32> -> vector<2x64xf32>
    %400 = arith.addf %395, %399 : vector<2x64xf32>
    %c0_381 = arith.constant 0 : index
    %c137_382 = arith.constant 137 : index
    %401 = vector.load %arg9[%c0_381, %c137_382] : memref<2x201xf32, #tpu.memory_space<vmem>>, vector<2x64xf32>
    %402 = vector.broadcast %3 : vector<1x64xf32> to vector<2x64xf32>
    %403 = arith.mulf %401, %402 : vector<2x64xf32>
    %c8_383 = arith.constant 8 : index
    %c0_384 = arith.constant 0 : index
    %c0_385 = arith.constant 0 : index
    %404 = vector.load %arg3[%c8_383, %c0_384, %c0_385] : memref<9x2x2xf32, #tpu.memory_space<vmem>>, vector<1x2x2xf32>
    %405 = vector.shape_cast %404 : vector<1x2x2xf32> to vector<2x2xf32>
    %cst_386 = arith.constant dense<0.000000e+00> : vector<2x64xf32>
    %406 = tpu.matmul %405, %403, %cst_386 {dimension_numbers = #tpu.dot_dimension_numbers<[1], [0], [0], [1], [0, 0, 1, 1], [], []>} : vector<2x2xf32>, vector<2x64xf32>, vector<2x64xf32> -> vector<2x64xf32>
    %407 = arith.addf %400, %406 : vector<2x64xf32>
    %408 = vector.broadcast %4 : vector<2x1xf32> to vector<2x64xf32>
    %409 = arith.mulf %407, %408 : vector<2x64xf32>
    %410 = vector.broadcast %5 : vector<2x1xf32> to vector<2x64xf32>
    %411 = arith.addf %409, %410 : vector<2x64xf32>
    %c4_387 = arith.constant 4 : index
    %c0_388 = arith.constant 0 : index
    %c0_389 = arith.constant 0 : index
    %412 = vector.load %arg8[%c4_387, %c0_388, %c0_389] : memref<8x2x64xf32, #tpu.memory_space<vmem>>, vector<1x2x64xf32>
    %413 = vector.shape_cast %412 : vector<1x2x64xf32> to vector<2x64xf32>
    %414 = vector.shape_cast %411 : vector<2x64xf32> to vector<1x2x64xf32>
    tpu.vector_store %arg8[%c4_387, %c0_388, %c0_389], %414 {strides = array<i32>} : memref<8x2x64xf32, #tpu.memory_space<vmem>>, vector<1x2x64xf32>,
    %c1_390 = arith.constant 1 : index
    %c0_391 = arith.constant 0 : index
    %c0_392 = arith.constant 0 : index
    %415 = vector.load %arg2[%c1_390, %c0_391, %c0_392] : memref<3x2x2xf32, #tpu.memory_space<vmem>>, vector<1x2x2xf32>
    %416 = vector.shape_cast %415 : vector<1x2x2xf32> to vector<2x2xf32>
    %c5_393 = arith.constant 5 : index
    %c0_394 = arith.constant 0 : index
    %c0_395 = arith.constant 0 : index
    %417 = vector.load %arg1[%c5_393, %c0_394, %c0_395] : memref<8x2x64xf32, #tpu.memory_space<vmem>>, vector<1x2x64xf32>
    %418 = vector.shape_cast %417 : vector<1x2x64xf32> to vector<2x64xf32>
    %cst_396 = arith.constant dense<0.000000e+00> : vector<2x64xf32>
    %419 = tpu.matmul %416, %418, %cst_396 {dimension_numbers = #tpu.dot_dimension_numbers<[1], [0], [0], [1], [0, 0, 1, 1], [], []>} : vector<2x2xf32>, vector<2x64xf32>, vector<2x64xf32> -> vector<2x64xf32>
    %c0_397 = arith.constant 0 : index
    %c0_398 = arith.constant 0 : index
    %c0_399 = arith.constant 0 : index
    %420 = vector.load %arg2[%c0_397, %c0_398, %c0_399] : memref<3x2x2xf32, #tpu.memory_space<vmem>>, vector<1x2x2xf32>
    %421 = vector.shape_cast %420 : vector<1x2x2xf32> to vector<2x2xf32>
    %c4_400 = arith.constant 4 : index
    %c0_401 = arith.constant 0 : index
    %c0_402 = arith.constant 0 : index
    %422 = vector.load %arg1[%c4_400, %c0_401, %c0_402] : memref<8x2x64xf32, #tpu.memory_space<vmem>>, vector<1x2x64xf32>
    %423 = vector.shape_cast %422 : vector<1x2x64xf32> to vector<2x64xf32>
    %cst_403 = arith.constant dense<0.000000e+00> : vector<2x64xf32>
    %424 = tpu.matmul %421, %423, %cst_403 {dimension_numbers = #tpu.dot_dimension_numbers<[1], [0], [0], [1], [0, 0, 1, 1], [], []>} : vector<2x2xf32>, vector<2x64xf32>, vector<2x64xf32> -> vector<2x64xf32>
    %425 = arith.addf %419, %424 : vector<2x64xf32>
    %c2_404 = arith.constant 2 : index
    %c0_405 = arith.constant 0 : index
    %c0_406 = arith.constant 0 : index
    %426 = vector.load %arg2[%c2_404, %c0_405, %c0_406] : memref<3x2x2xf32, #tpu.memory_space<vmem>>, vector<1x2x2xf32>
    %427 = vector.shape_cast %426 : vector<1x2x2xf32> to vector<2x2xf32>
    %c6_407 = arith.constant 6 : index
    %c0_408 = arith.constant 0 : index
    %c0_409 = arith.constant 0 : index
    %428 = vector.load %arg1[%c6_407, %c0_408, %c0_409] : memref<8x2x64xf32, #tpu.memory_space<vmem>>, vector<1x2x64xf32>
    %429 = vector.shape_cast %428 : vector<1x2x64xf32> to vector<2x64xf32>
    %cst_410 = arith.constant dense<0.000000e+00> : vector<2x64xf32>
    %430 = tpu.matmul %427, %429, %cst_410 {dimension_numbers = #tpu.dot_dimension_numbers<[1], [0], [0], [1], [0, 0, 1, 1], [], []>} : vector<2x2xf32>, vector<2x64xf32>, vector<2x64xf32> -> vector<2x64xf32>
    %431 = arith.addf %425, %430 : vector<2x64xf32>
    %cst_411 = arith.constant 0.000000e+00 : f32
    %432 = vector.broadcast %cst_411 : f32 to vector<2x64xf32>
    %433 = arith.maximumf %431, %432 : vector<2x64xf32>
    %c0_412 = arith.constant 0 : index
    %c128_413 = arith.constant 128 : index
    %434 = vector.load %arg9[%c0_412, %c128_413] : memref<2x201xf32, #tpu.memory_space<vmem>>, vector<2x64xf32>
    tpu.vector_store %arg9[%c0_412, %c128_413], %433 {strides = array<i32>} : memref<2x201xf32, #tpu.memory_space<vmem>>, vector<2x64xf32>,
    %c0_414 = arith.constant 0 : index
    %c119_415 = arith.constant 119 : index
    %435 = vector.load %arg9[%c0_414, %c119_415] : memref<2x201xf32, #tpu.memory_space<vmem>>, vector<2x64xf32>
    %436 = vector.broadcast %2 : vector<1x64xf32> to vector<2x64xf32>
    %437 = arith.mulf %435, %436 : vector<2x64xf32>
    %c0_416 = arith.constant 0 : index
    %c0_417 = arith.constant 0 : index
    %c0_418 = arith.constant 0 : index
    %438 = vector.load %arg3[%c0_416, %c0_417, %c0_418] : memref<9x2x2xf32, #tpu.memory_space<vmem>>, vector<1x2x2xf32>
    %439 = vector.shape_cast %438 : vector<1x2x2xf32> to vector<2x2xf32>
    %cst_419 = arith.constant dense<0.000000e+00> : vector<2x64xf32>
    %440 = tpu.matmul %439, %437, %cst_419 {dimension_numbers = #tpu.dot_dimension_numbers<[1], [0], [0], [1], [0, 0, 1, 1], [], []>} : vector<2x2xf32>, vector<2x64xf32>, vector<2x64xf32> -> vector<2x64xf32>
    %c0_420 = arith.constant 0 : index
    %c120_421 = arith.constant 120 : index
    %441 = vector.load %arg9[%c0_420, %c120_421] : memref<2x201xf32, #tpu.memory_space<vmem>>, vector<2x64xf32>
    %c1_422 = arith.constant 1 : index
    %c0_423 = arith.constant 0 : index
    %c0_424 = arith.constant 0 : index
    %442 = vector.load %arg3[%c1_422, %c0_423, %c0_424] : memref<9x2x2xf32, #tpu.memory_space<vmem>>, vector<1x2x2xf32>
    %443 = vector.shape_cast %442 : vector<1x2x2xf32> to vector<2x2xf32>
    %cst_425 = arith.constant dense<0.000000e+00> : vector<2x64xf32>
    %444 = tpu.matmul %443, %441, %cst_425 {dimension_numbers = #tpu.dot_dimension_numbers<[1], [0], [0], [1], [0, 0, 1, 1], [], []>} : vector<2x2xf32>, vector<2x64xf32>, vector<2x64xf32> -> vector<2x64xf32>
    %445 = arith.addf %440, %444 : vector<2x64xf32>
    %c0_426 = arith.constant 0 : index
    %c121_427 = arith.constant 121 : index
    %446 = vector.load %arg9[%c0_426, %c121_427] : memref<2x201xf32, #tpu.memory_space<vmem>>, vector<2x64xf32>
    %447 = vector.broadcast %3 : vector<1x64xf32> to vector<2x64xf32>
    %448 = arith.mulf %446, %447 : vector<2x64xf32>
    %c2_428 = arith.constant 2 : index
    %c0_429 = arith.constant 0 : index
    %c0_430 = arith.constant 0 : index
    %449 = vector.load %arg3[%c2_428, %c0_429, %c0_430] : memref<9x2x2xf32, #tpu.memory_space<vmem>>, vector<1x2x2xf32>
    %450 = vector.shape_cast %449 : vector<1x2x2xf32> to vector<2x2xf32>
    %cst_431 = arith.constant dense<0.000000e+00> : vector<2x64xf32>
    %451 = tpu.matmul %450, %448, %cst_431 {dimension_numbers = #tpu.dot_dimension_numbers<[1], [0], [0], [1], [0, 0, 1, 1], [], []>} : vector<2x2xf32>, vector<2x64xf32>, vector<2x64xf32> -> vector<2x64xf32>
    %452 = arith.addf %445, %451 : vector<2x64xf32>
    %c0_432 = arith.constant 0 : index
    %c127_433 = arith.constant 127 : index
    %453 = vector.load %arg9[%c0_432, %c127_433] : memref<2x201xf32, #tpu.memory_space<vmem>>, vector<2x64xf32>
    %454 = vector.broadcast %2 : vector<1x64xf32> to vector<2x64xf32>
    %455 = arith.mulf %453, %454 : vector<2x64xf32>
    %c3_434 = arith.constant 3 : index
    %c0_435 = arith.constant 0 : index
    %c0_436 = arith.constant 0 : index
    %456 = vector.load %arg3[%c3_434, %c0_435, %c0_436] : memref<9x2x2xf32, #tpu.memory_space<vmem>>, vector<1x2x2xf32>
    %457 = vector.shape_cast %456 : vector<1x2x2xf32> to vector<2x2xf32>
    %cst_437 = arith.constant dense<0.000000e+00> : vector<2x64xf32>
    %458 = tpu.matmul %457, %455, %cst_437 {dimension_numbers = #tpu.dot_dimension_numbers<[1], [0], [0], [1], [0, 0, 1, 1], [], []>} : vector<2x2xf32>, vector<2x64xf32>, vector<2x64xf32> -> vector<2x64xf32>
    %459 = arith.addf %452, %458 : vector<2x64xf32>
    %c0_438 = arith.constant 0 : index
    %c128_439 = arith.constant 128 : index
    %460 = vector.load %arg9[%c0_438, %c128_439] : memref<2x201xf32, #tpu.memory_space<vmem>>, vector<2x64xf32>
    %c4_440 = arith.constant 4 : index
    %c0_441 = arith.constant 0 : index
    %c0_442 = arith.constant 0 : index
    %461 = vector.load %arg3[%c4_440, %c0_441, %c0_442] : memref<9x2x2xf32, #tpu.memory_space<vmem>>, vector<1x2x2xf32>
    %462 = vector.shape_cast %461 : vector<1x2x2xf32> to vector<2x2xf32>
    %cst_443 = arith.constant dense<0.000000e+00> : vector<2x64xf32>
    %463 = tpu.matmul %462, %460, %cst_443 {dimension_numbers = #tpu.dot_dimension_numbers<[1], [0], [0], [1], [0, 0, 1, 1], [], []>} : vector<2x2xf32>, vector<2x64xf32>, vector<2x64xf32> -> vector<2x64xf32>
    %464 = arith.addf %459, %463 : vector<2x64xf32>
    %c0_444 = arith.constant 0 : index
    %c129_445 = arith.constant 129 : index
    %465 = vector.load %arg9[%c0_444, %c129_445] : memref<2x201xf32, #tpu.memory_space<vmem>>, vector<2x64xf32>
    %466 = vector.broadcast %3 : vector<1x64xf32> to vector<2x64xf32>
    %467 = arith.mulf %465, %466 : vector<2x64xf32>
    %c5_446 = arith.constant 5 : index
    %c0_447 = arith.constant 0 : index
    %c0_448 = arith.constant 0 : index
    %468 = vector.load %arg3[%c5_446, %c0_447, %c0_448] : memref<9x2x2xf32, #tpu.memory_space<vmem>>, vector<1x2x2xf32>
    %469 = vector.shape_cast %468 : vector<1x2x2xf32> to vector<2x2xf32>
    %cst_449 = arith.constant dense<0.000000e+00> : vector<2x64xf32>
    %470 = tpu.matmul %469, %467, %cst_449 {dimension_numbers = #tpu.dot_dimension_numbers<[1], [0], [0], [1], [0, 0, 1, 1], [], []>} : vector<2x2xf32>, vector<2x64xf32>, vector<2x64xf32> -> vector<2x64xf32>
    %471 = arith.addf %464, %470 : vector<2x64xf32>
    %c0_450 = arith.constant 0 : index
    %c135_451 = arith.constant 135 : index
    %472 = vector.load %arg9[%c0_450, %c135_451] : memref<2x201xf32, #tpu.memory_space<vmem>>, vector<2x64xf32>
    %473 = vector.broadcast %2 : vector<1x64xf32> to vector<2x64xf32>
    %474 = arith.mulf %472, %473 : vector<2x64xf32>
    %c6_452 = arith.constant 6 : index
    %c0_453 = arith.constant 0 : index
    %c0_454 = arith.constant 0 : index
    %475 = vector.load %arg3[%c6_452, %c0_453, %c0_454] : memref<9x2x2xf32, #tpu.memory_space<vmem>>, vector<1x2x2xf32>
    %476 = vector.shape_cast %475 : vector<1x2x2xf32> to vector<2x2xf32>
    %cst_455 = arith.constant dense<0.000000e+00> : vector<2x64xf32>
    %477 = tpu.matmul %476, %474, %cst_455 {dimension_numbers = #tpu.dot_dimension_numbers<[1], [0], [0], [1], [0, 0, 1, 1], [], []>} : vector<2x2xf32>, vector<2x64xf32>, vector<2x64xf32> -> vector<2x64xf32>
    %478 = arith.addf %471, %477 : vector<2x64xf32>
    %c0_456 = arith.constant 0 : index
    %c136_457 = arith.constant 136 : index
    %479 = vector.load %arg9[%c0_456, %c136_457] : memref<2x201xf32, #tpu.memory_space<vmem>>, vector<2x64xf32>
    %c7_458 = arith.constant 7 : index
    %c0_459 = arith.constant 0 : index
    %c0_460 = arith.constant 0 : index
    %480 = vector.load %arg3[%c7_458, %c0_459, %c0_460] : memref<9x2x2xf32, #tpu.memory_space<vmem>>, vector<1x2x2xf32>
    %481 = vector.shape_cast %480 : vector<1x2x2xf32> to vector<2x2xf32>
    %cst_461 = arith.constant dense<0.000000e+00> : vector<2x64xf32>
    %482 = tpu.matmul %481, %479, %cst_461 {dimension_numbers = #tpu.dot_dimension_numbers<[1], [0], [0], [1], [0, 0, 1, 1], [], []>} : vector<2x2xf32>, vector<2x64xf32>, vector<2x64xf32> -> vector<2x64xf32>
    %483 = arith.addf %478, %482 : vector<2x64xf32>
    %c0_462 = arith.constant 0 : index
    %c137_463 = arith.constant 137 : index
    %484 = vector.load %arg9[%c0_462, %c137_463] : memref<2x201xf32, #tpu.memory_space<vmem>>, vector<2x64xf32>
    %485 = vector.broadcast %3 : vector<1x64xf32> to vector<2x64xf32>
    %486 = arith.mulf %484, %485 : vector<2x64xf32>
    %c8_464 = arith.constant 8 : index
    %c0_465 = arith.constant 0 : index
    %c0_466 = arith.constant 0 : index
    %487 = vector.load %arg3[%c8_464, %c0_465, %c0_466] : memref<9x2x2xf32, #tpu.memory_space<vmem>>, vector<1x2x2xf32>
    %488 = vector.shape_cast %487 : vector<1x2x2xf32> to vector<2x2xf32>
    %cst_467 = arith.constant dense<0.000000e+00> : vector<2x64xf32>
    %489 = tpu.matmul %488, %486, %cst_467 {dimension_numbers = #tpu.dot_dimension_numbers<[1], [0], [0], [1], [0, 0, 1, 1], [], []>} : vector<2x2xf32>, vector<2x64xf32>, vector<2x64xf32> -> vector<2x64xf32>
    %490 = arith.addf %483, %489 : vector<2x64xf32>
    %491 = vector.broadcast %4 : vector<2x1xf32> to vector<2x64xf32>
    %492 = arith.mulf %490, %491 : vector<2x64xf32>
    %493 = vector.broadcast %5 : vector<2x1xf32> to vector<2x64xf32>
    %494 = arith.addf %492, %493 : vector<2x64xf32>
    %c5_468 = arith.constant 5 : index
    %c0_469 = arith.constant 0 : index
    %c0_470 = arith.constant 0 : index
    %495 = vector.load %arg8[%c5_468, %c0_469, %c0_470] : memref<8x2x64xf32, #tpu.memory_space<vmem>>, vector<1x2x64xf32>
    %496 = vector.shape_cast %495 : vector<1x2x64xf32> to vector<2x64xf32>
    %497 = vector.shape_cast %494 : vector<2x64xf32> to vector<1x2x64xf32>
    tpu.vector_store %arg8[%c5_468, %c0_469, %c0_470], %497 {strides = array<i32>} : memref<8x2x64xf32, #tpu.memory_space<vmem>>, vector<1x2x64xf32>,
    %c1_471 = arith.constant 1 : index
    %c0_472 = arith.constant 0 : index
    %c0_473 = arith.constant 0 : index
    %498 = vector.load %arg2[%c1_471, %c0_472, %c0_473] : memref<3x2x2xf32, #tpu.memory_space<vmem>>, vector<1x2x2xf32>
    %499 = vector.shape_cast %498 : vector<1x2x2xf32> to vector<2x2xf32>
    %c6_474 = arith.constant 6 : index
    %c0_475 = arith.constant 0 : index
    %c0_476 = arith.constant 0 : index
    %500 = vector.load %arg1[%c6_474, %c0_475, %c0_476] : memref<8x2x64xf32, #tpu.memory_space<vmem>>, vector<1x2x64xf32>
    %501 = vector.shape_cast %500 : vector<1x2x64xf32> to vector<2x64xf32>
    %cst_477 = arith.constant dense<0.000000e+00> : vector<2x64xf32>
    %502 = tpu.matmul %499, %501, %cst_477 {dimension_numbers = #tpu.dot_dimension_numbers<[1], [0], [0], [1], [0, 0, 1, 1], [], []>} : vector<2x2xf32>, vector<2x64xf32>, vector<2x64xf32> -> vector<2x64xf32>
    %c0_478 = arith.constant 0 : index
    %c0_479 = arith.constant 0 : index
    %c0_480 = arith.constant 0 : index
    %503 = vector.load %arg2[%c0_478, %c0_479, %c0_480] : memref<3x2x2xf32, #tpu.memory_space<vmem>>, vector<1x2x2xf32>
    %504 = vector.shape_cast %503 : vector<1x2x2xf32> to vector<2x2xf32>
    %c5_481 = arith.constant 5 : index
    %c0_482 = arith.constant 0 : index
    %c0_483 = arith.constant 0 : index
    %505 = vector.load %arg1[%c5_481, %c0_482, %c0_483] : memref<8x2x64xf32, #tpu.memory_space<vmem>>, vector<1x2x64xf32>
    %506 = vector.shape_cast %505 : vector<1x2x64xf32> to vector<2x64xf32>
    %cst_484 = arith.constant dense<0.000000e+00> : vector<2x64xf32>
    %507 = tpu.matmul %504, %506, %cst_484 {dimension_numbers = #tpu.dot_dimension_numbers<[1], [0], [0], [1], [0, 0, 1, 1], [], []>} : vector<2x2xf32>, vector<2x64xf32>, vector<2x64xf32> -> vector<2x64xf32>
    %508 = arith.addf %502, %507 : vector<2x64xf32>
    %c2_485 = arith.constant 2 : index
    %c0_486 = arith.constant 0 : index
    %c0_487 = arith.constant 0 : index
    %509 = vector.load %arg2[%c2_485, %c0_486, %c0_487] : memref<3x2x2xf32, #tpu.memory_space<vmem>>, vector<1x2x2xf32>
    %510 = vector.shape_cast %509 : vector<1x2x2xf32> to vector<2x2xf32>
    %c7_488 = arith.constant 7 : index
    %c0_489 = arith.constant 0 : index
    %c0_490 = arith.constant 0 : index
    %511 = vector.load %arg1[%c7_488, %c0_489, %c0_490] : memref<8x2x64xf32, #tpu.memory_space<vmem>>, vector<1x2x64xf32>
    %512 = vector.shape_cast %511 : vector<1x2x64xf32> to vector<2x64xf32>
    %cst_491 = arith.constant dense<0.000000e+00> : vector<2x64xf32>
    %513 = tpu.matmul %510, %512, %cst_491 {dimension_numbers = #tpu.dot_dimension_numbers<[1], [0], [0], [1], [0, 0, 1, 1], [], []>} : vector<2x2xf32>, vector<2x64xf32>, vector<2x64xf32> -> vector<2x64xf32>
    %514 = arith.addf %508, %513 : vector<2x64xf32>
    %cst_492 = arith.constant 0.000000e+00 : f32
    %515 = vector.broadcast %cst_492 : f32 to vector<2x64xf32>
    %516 = arith.maximumf %514, %515 : vector<2x64xf32>
    %c0_493 = arith.constant 0 : index
    %c128_494 = arith.constant 128 : index
    %517 = vector.load %arg9[%c0_493, %c128_494] : memref<2x201xf32, #tpu.memory_space<vmem>>, vector<2x64xf32>
    tpu.vector_store %arg9[%c0_493, %c128_494], %516 {strides = array<i32>} : memref<2x201xf32, #tpu.memory_space<vmem>>, vector<2x64xf32>,
    %c0_495 = arith.constant 0 : index
    %c119_496 = arith.constant 119 : index
    %518 = vector.load %arg9[%c0_495, %c119_496] : memref<2x201xf32, #tpu.memory_space<vmem>>, vector<2x64xf32>
    %519 = vector.broadcast %2 : vector<1x64xf32> to vector<2x64xf32>
    %520 = arith.mulf %518, %519 : vector<2x64xf32>
    %c0_497 = arith.constant 0 : index
    %c0_498 = arith.constant 0 : index
    %c0_499 = arith.constant 0 : index
    %521 = vector.load %arg3[%c0_497, %c0_498, %c0_499] : memref<9x2x2xf32, #tpu.memory_space<vmem>>, vector<1x2x2xf32>
    %522 = vector.shape_cast %521 : vector<1x2x2xf32> to vector<2x2xf32>
    %cst_500 = arith.constant dense<0.000000e+00> : vector<2x64xf32>
    %523 = tpu.matmul %522, %520, %cst_500 {dimension_numbers = #tpu.dot_dimension_numbers<[1], [0], [0], [1], [0, 0, 1, 1], [], []>} : vector<2x2xf32>, vector<2x64xf32>, vector<2x64xf32> -> vector<2x64xf32>
    %c0_501 = arith.constant 0 : index
    %c120_502 = arith.constant 120 : index
    %524 = vector.load %arg9[%c0_501, %c120_502] : memref<2x201xf32, #tpu.memory_space<vmem>>, vector<2x64xf32>
    %c1_503 = arith.constant 1 : index
    %c0_504 = arith.constant 0 : index
    %c0_505 = arith.constant 0 : index
    %525 = vector.load %arg3[%c1_503, %c0_504, %c0_505] : memref<9x2x2xf32, #tpu.memory_space<vmem>>, vector<1x2x2xf32>
    %526 = vector.shape_cast %525 : vector<1x2x2xf32> to vector<2x2xf32>
    %cst_506 = arith.constant dense<0.000000e+00> : vector<2x64xf32>
    %527 = tpu.matmul %526, %524, %cst_506 {dimension_numbers = #tpu.dot_dimension_numbers<[1], [0], [0], [1], [0, 0, 1, 1], [], []>} : vector<2x2xf32>, vector<2x64xf32>, vector<2x64xf32> -> vector<2x64xf32>
    %528 = arith.addf %523, %527 : vector<2x64xf32>
    %c0_507 = arith.constant 0 : index
    %c121_508 = arith.constant 121 : index
    %529 = vector.load %arg9[%c0_507, %c121_508] : memref<2x201xf32, #tpu.memory_space<vmem>>, vector<2x64xf32>
    %530 = vector.broadcast %3 : vector<1x64xf32> to vector<2x64xf32>
    %531 = arith.mulf %529, %530 : vector<2x64xf32>
    %c2_509 = arith.constant 2 : index
    %c0_510 = arith.constant 0 : index
    %c0_511 = arith.constant 0 : index
    %532 = vector.load %arg3[%c2_509, %c0_510, %c0_511] : memref<9x2x2xf32, #tpu.memory_space<vmem>>, vector<1x2x2xf32>
    %533 = vector.shape_cast %532 : vector<1x2x2xf32> to vector<2x2xf32>
    %cst_512 = arith.constant dense<0.000000e+00> : vector<2x64xf32>
    %534 = tpu.matmul %533, %531, %cst_512 {dimension_numbers = #tpu.dot_dimension_numbers<[1], [0], [0], [1], [0, 0, 1, 1], [], []>} : vector<2x2xf32>, vector<2x64xf32>, vector<2x64xf32> -> vector<2x64xf32>
    %535 = arith.addf %528, %534 : vector<2x64xf32>
    %c0_513 = arith.constant 0 : index
    %c127_514 = arith.constant 127 : index
    %536 = vector.load %arg9[%c0_513, %c127_514] : memref<2x201xf32, #tpu.memory_space<vmem>>, vector<2x64xf32>
    %537 = vector.broadcast %2 : vector<1x64xf32> to vector<2x64xf32>
    %538 = arith.mulf %536, %537 : vector<2x64xf32>
    %c3_515 = arith.constant 3 : index
    %c0_516 = arith.constant 0 : index
    %c0_517 = arith.constant 0 : index
    %539 = vector.load %arg3[%c3_515, %c0_516, %c0_517] : memref<9x2x2xf32, #tpu.memory_space<vmem>>, vector<1x2x2xf32>
    %540 = vector.shape_cast %539 : vector<1x2x2xf32> to vector<2x2xf32>
    %cst_518 = arith.constant dense<0.000000e+00> : vector<2x64xf32>
    %541 = tpu.matmul %540, %538, %cst_518 {dimension_numbers = #tpu.dot_dimension_numbers<[1], [0], [0], [1], [0, 0, 1, 1], [], []>} : vector<2x2xf32>, vector<2x64xf32>, vector<2x64xf32> -> vector<2x64xf32>
    %542 = arith.addf %535, %541 : vector<2x64xf32>
    %c0_519 = arith.constant 0 : index
    %c128_520 = arith.constant 128 : index
    %543 = vector.load %arg9[%c0_519, %c128_520] : memref<2x201xf32, #tpu.memory_space<vmem>>, vector<2x64xf32>
    %c4_521 = arith.constant 4 : index
    %c0_522 = arith.constant 0 : index
    %c0_523 = arith.constant 0 : index
    %544 = vector.load %arg3[%c4_521, %c0_522, %c0_523] : memref<9x2x2xf32, #tpu.memory_space<vmem>>, vector<1x2x2xf32>
    %545 = vector.shape_cast %544 : vector<1x2x2xf32> to vector<2x2xf32>
    %cst_524 = arith.constant dense<0.000000e+00> : vector<2x64xf32>
    %546 = tpu.matmul %545, %543, %cst_524 {dimension_numbers = #tpu.dot_dimension_numbers<[1], [0], [0], [1], [0, 0, 1, 1], [], []>} : vector<2x2xf32>, vector<2x64xf32>, vector<2x64xf32> -> vector<2x64xf32>
    %547 = arith.addf %542, %546 : vector<2x64xf32>
    %c0_525 = arith.constant 0 : index
    %c129_526 = arith.constant 129 : index
    %548 = vector.load %arg9[%c0_525, %c129_526] : memref<2x201xf32, #tpu.memory_space<vmem>>, vector<2x64xf32>
    %549 = vector.broadcast %3 : vector<1x64xf32> to vector<2x64xf32>
    %550 = arith.mulf %548, %549 : vector<2x64xf32>
    %c5_527 = arith.constant 5 : index
    %c0_528 = arith.constant 0 : index
    %c0_529 = arith.constant 0 : index
    %551 = vector.load %arg3[%c5_527, %c0_528, %c0_529] : memref<9x2x2xf32, #tpu.memory_space<vmem>>, vector<1x2x2xf32>
    %552 = vector.shape_cast %551 : vector<1x2x2xf32> to vector<2x2xf32>
    %cst_530 = arith.constant dense<0.000000e+00> : vector<2x64xf32>
    %553 = tpu.matmul %552, %550, %cst_530 {dimension_numbers = #tpu.dot_dimension_numbers<[1], [0], [0], [1], [0, 0, 1, 1], [], []>} : vector<2x2xf32>, vector<2x64xf32>, vector<2x64xf32> -> vector<2x64xf32>
    %554 = arith.addf %547, %553 : vector<2x64xf32>
    %c0_531 = arith.constant 0 : index
    %c135_532 = arith.constant 135 : index
    %555 = vector.load %arg9[%c0_531, %c135_532] : memref<2x201xf32, #tpu.memory_space<vmem>>, vector<2x64xf32>
    %556 = vector.broadcast %2 : vector<1x64xf32> to vector<2x64xf32>
    %557 = arith.mulf %555, %556 : vector<2x64xf32>
    %c6_533 = arith.constant 6 : index
    %c0_534 = arith.constant 0 : index
    %c0_535 = arith.constant 0 : index
    %558 = vector.load %arg3[%c6_533, %c0_534, %c0_535] : memref<9x2x2xf32, #tpu.memory_space<vmem>>, vector<1x2x2xf32>
    %559 = vector.shape_cast %558 : vector<1x2x2xf32> to vector<2x2xf32>
    %cst_536 = arith.constant dense<0.000000e+00> : vector<2x64xf32>
    %560 = tpu.matmul %559, %557, %cst_536 {dimension_numbers = #tpu.dot_dimension_numbers<[1], [0], [0], [1], [0, 0, 1, 1], [], []>} : vector<2x2xf32>, vector<2x64xf32>, vector<2x64xf32> -> vector<2x64xf32>
    %561 = arith.addf %554, %560 : vector<2x64xf32>
    %c0_537 = arith.constant 0 : index
    %c136_538 = arith.constant 136 : index
    %562 = vector.load %arg9[%c0_537, %c136_538] : memref<2x201xf32, #tpu.memory_space<vmem>>, vector<2x64xf32>
    %c7_539 = arith.constant 7 : index
    %c0_540 = arith.constant 0 : index
    %c0_541 = arith.constant 0 : index
    %563 = vector.load %arg3[%c7_539, %c0_540, %c0_541] : memref<9x2x2xf32, #tpu.memory_space<vmem>>, vector<1x2x2xf32>
    %564 = vector.shape_cast %563 : vector<1x2x2xf32> to vector<2x2xf32>
    %cst_542 = arith.constant dense<0.000000e+00> : vector<2x64xf32>
    %565 = tpu.matmul %564, %562, %cst_542 {dimension_numbers = #tpu.dot_dimension_numbers<[1], [0], [0], [1], [0, 0, 1, 1], [], []>} : vector<2x2xf32>, vector<2x64xf32>, vector<2x64xf32> -> vector<2x64xf32>
    %566 = arith.addf %561, %565 : vector<2x64xf32>
    %c0_543 = arith.constant 0 : index
    %c137_544 = arith.constant 137 : index
    %567 = vector.load %arg9[%c0_543, %c137_544] : memref<2x201xf32, #tpu.memory_space<vmem>>, vector<2x64xf32>
    %568 = vector.broadcast %3 : vector<1x64xf32> to vector<2x64xf32>
    %569 = arith.mulf %567, %568 : vector<2x64xf32>
    %c8_545 = arith.constant 8 : index
    %c0_546 = arith.constant 0 : index
    %c0_547 = arith.constant 0 : index
    %570 = vector.load %arg3[%c8_545, %c0_546, %c0_547] : memref<9x2x2xf32, #tpu.memory_space<vmem>>, vector<1x2x2xf32>
    %571 = vector.shape_cast %570 : vector<1x2x2xf32> to vector<2x2xf32>
    %cst_548 = arith.constant dense<0.000000e+00> : vector<2x64xf32>
    %572 = tpu.matmul %571, %569, %cst_548 {dimension_numbers = #tpu.dot_dimension_numbers<[1], [0], [0], [1], [0, 0, 1, 1], [], []>} : vector<2x2xf32>, vector<2x64xf32>, vector<2x64xf32> -> vector<2x64xf32>
    %573 = arith.addf %566, %572 : vector<2x64xf32>
    %574 = vector.broadcast %4 : vector<2x1xf32> to vector<2x64xf32>
    %575 = arith.mulf %573, %574 : vector<2x64xf32>
    %576 = vector.broadcast %5 : vector<2x1xf32> to vector<2x64xf32>
    %577 = arith.addf %575, %576 : vector<2x64xf32>
    %c6_549 = arith.constant 6 : index
    %c0_550 = arith.constant 0 : index
    %c0_551 = arith.constant 0 : index
    %578 = vector.load %arg8[%c6_549, %c0_550, %c0_551] : memref<8x2x64xf32, #tpu.memory_space<vmem>>, vector<1x2x64xf32>
    %579 = vector.shape_cast %578 : vector<1x2x64xf32> to vector<2x64xf32>
    %580 = vector.shape_cast %577 : vector<2x64xf32> to vector<1x2x64xf32>
    tpu.vector_store %arg8[%c6_549, %c0_550, %c0_551], %580 {strides = array<i32>} : memref<8x2x64xf32, #tpu.memory_space<vmem>>, vector<1x2x64xf32>,
    %c1_552 = arith.constant 1 : index
    %c0_553 = arith.constant 0 : index
    %c0_554 = arith.constant 0 : index
    %581 = vector.load %arg2[%c1_552, %c0_553, %c0_554] : memref<3x2x2xf32, #tpu.memory_space<vmem>>, vector<1x2x2xf32>
    %582 = vector.shape_cast %581 : vector<1x2x2xf32> to vector<2x2xf32>
    %c7_555 = arith.constant 7 : index
    %c0_556 = arith.constant 0 : index
    %c0_557 = arith.constant 0 : index
    %583 = vector.load %arg1[%c7_555, %c0_556, %c0_557] : memref<8x2x64xf32, #tpu.memory_space<vmem>>, vector<1x2x64xf32>
    %584 = vector.shape_cast %583 : vector<1x2x64xf32> to vector<2x64xf32>
    %cst_558 = arith.constant dense<0.000000e+00> : vector<2x64xf32>
    %585 = tpu.matmul %582, %584, %cst_558 {dimension_numbers = #tpu.dot_dimension_numbers<[1], [0], [0], [1], [0, 0, 1, 1], [], []>} : vector<2x2xf32>, vector<2x64xf32>, vector<2x64xf32> -> vector<2x64xf32>
    %c0_559 = arith.constant 0 : index
    %c0_560 = arith.constant 0 : index
    %c0_561 = arith.constant 0 : index
    %586 = vector.load %arg2[%c0_559, %c0_560, %c0_561] : memref<3x2x2xf32, #tpu.memory_space<vmem>>, vector<1x2x2xf32>
    %587 = vector.shape_cast %586 : vector<1x2x2xf32> to vector<2x2xf32>
    %c6_562 = arith.constant 6 : index
    %c0_563 = arith.constant 0 : index
    %c0_564 = arith.constant 0 : index
    %588 = vector.load %arg1[%c6_562, %c0_563, %c0_564] : memref<8x2x64xf32, #tpu.memory_space<vmem>>, vector<1x2x64xf32>
    %589 = vector.shape_cast %588 : vector<1x2x64xf32> to vector<2x64xf32>
    %cst_565 = arith.constant dense<0.000000e+00> : vector<2x64xf32>
    %590 = tpu.matmul %587, %589, %cst_565 {dimension_numbers = #tpu.dot_dimension_numbers<[1], [0], [0], [1], [0, 0, 1, 1], [], []>} : vector<2x2xf32>, vector<2x64xf32>, vector<2x64xf32> -> vector<2x64xf32>
    %591 = arith.addf %585, %590 : vector<2x64xf32>
    %cst_566 = arith.constant 0.000000e+00 : f32
    %592 = vector.broadcast %cst_566 : f32 to vector<2x64xf32>
    %593 = arith.maximumf %591, %592 : vector<2x64xf32>
    %c0_567 = arith.constant 0 : index
    %c128_568 = arith.constant 128 : index
    %594 = vector.load %arg9[%c0_567, %c128_568] : memref<2x201xf32, #tpu.memory_space<vmem>>, vector<2x64xf32>
    tpu.vector_store %arg9[%c0_567, %c128_568], %593 {strides = array<i32>} : memref<2x201xf32, #tpu.memory_space<vmem>>, vector<2x64xf32>,
    %c0_569 = arith.constant 0 : index
    %c119_570 = arith.constant 119 : index
    %595 = vector.load %arg9[%c0_569, %c119_570] : memref<2x201xf32, #tpu.memory_space<vmem>>, vector<2x64xf32>
    %596 = vector.broadcast %2 : vector<1x64xf32> to vector<2x64xf32>
    %597 = arith.mulf %595, %596 : vector<2x64xf32>
    %c0_571 = arith.constant 0 : index
    %c0_572 = arith.constant 0 : index
    %c0_573 = arith.constant 0 : index
    %598 = vector.load %arg3[%c0_571, %c0_572, %c0_573] : memref<9x2x2xf32, #tpu.memory_space<vmem>>, vector<1x2x2xf32>
    %599 = vector.shape_cast %598 : vector<1x2x2xf32> to vector<2x2xf32>
    %cst_574 = arith.constant dense<0.000000e+00> : vector<2x64xf32>
    %600 = tpu.matmul %599, %597, %cst_574 {dimension_numbers = #tpu.dot_dimension_numbers<[1], [0], [0], [1], [0, 0, 1, 1], [], []>} : vector<2x2xf32>, vector<2x64xf32>, vector<2x64xf32> -> vector<2x64xf32>
    %c0_575 = arith.constant 0 : index
    %c120_576 = arith.constant 120 : index
    %601 = vector.load %arg9[%c0_575, %c120_576] : memref<2x201xf32, #tpu.memory_space<vmem>>, vector<2x64xf32>
    %c1_577 = arith.constant 1 : index
    %c0_578 = arith.constant 0 : index
    %c0_579 = arith.constant 0 : index
    %602 = vector.load %arg3[%c1_577, %c0_578, %c0_579] : memref<9x2x2xf32, #tpu.memory_space<vmem>>, vector<1x2x2xf32>
    %603 = vector.shape_cast %602 : vector<1x2x2xf32> to vector<2x2xf32>
    %cst_580 = arith.constant dense<0.000000e+00> : vector<2x64xf32>
    %604 = tpu.matmul %603, %601, %cst_580 {dimension_numbers = #tpu.dot_dimension_numbers<[1], [0], [0], [1], [0, 0, 1, 1], [], []>} : vector<2x2xf32>, vector<2x64xf32>, vector<2x64xf32> -> vector<2x64xf32>
    %605 = arith.addf %600, %604 : vector<2x64xf32>
    %c0_581 = arith.constant 0 : index
    %c121_582 = arith.constant 121 : index
    %606 = vector.load %arg9[%c0_581, %c121_582] : memref<2x201xf32, #tpu.memory_space<vmem>>, vector<2x64xf32>
    %607 = vector.broadcast %3 : vector<1x64xf32> to vector<2x64xf32>
    %608 = arith.mulf %606, %607 : vector<2x64xf32>
    %c2_583 = arith.constant 2 : index
    %c0_584 = arith.constant 0 : index
    %c0_585 = arith.constant 0 : index
    %609 = vector.load %arg3[%c2_583, %c0_584, %c0_585] : memref<9x2x2xf32, #tpu.memory_space<vmem>>, vector<1x2x2xf32>
    %610 = vector.shape_cast %609 : vector<1x2x2xf32> to vector<2x2xf32>
    %cst_586 = arith.constant dense<0.000000e+00> : vector<2x64xf32>
    %611 = tpu.matmul %610, %608, %cst_586 {dimension_numbers = #tpu.dot_dimension_numbers<[1], [0], [0], [1], [0, 0, 1, 1], [], []>} : vector<2x2xf32>, vector<2x64xf32>, vector<2x64xf32> -> vector<2x64xf32>
    %612 = arith.addf %605, %611 : vector<2x64xf32>
    %c0_587 = arith.constant 0 : index
    %c127_588 = arith.constant 127 : index
    %613 = vector.load %arg9[%c0_587, %c127_588] : memref<2x201xf32, #tpu.memory_space<vmem>>, vector<2x64xf32>
    %614 = vector.broadcast %2 : vector<1x64xf32> to vector<2x64xf32>
    %615 = arith.mulf %613, %614 : vector<2x64xf32>
    %c3_589 = arith.constant 3 : index
    %c0_590 = arith.constant 0 : index
    %c0_591 = arith.constant 0 : index
    %616 = vector.load %arg3[%c3_589, %c0_590, %c0_591] : memref<9x2x2xf32, #tpu.memory_space<vmem>>, vector<1x2x2xf32>
    %617 = vector.shape_cast %616 : vector<1x2x2xf32> to vector<2x2xf32>
    %cst_592 = arith.constant dense<0.000000e+00> : vector<2x64xf32>
    %618 = tpu.matmul %617, %615, %cst_592 {dimension_numbers = #tpu.dot_dimension_numbers<[1], [0], [0], [1], [0, 0, 1, 1], [], []>} : vector<2x2xf32>, vector<2x64xf32>, vector<2x64xf32> -> vector<2x64xf32>
    %619 = arith.addf %612, %618 : vector<2x64xf32>
    %c0_593 = arith.constant 0 : index
    %c128_594 = arith.constant 128 : index
    %620 = vector.load %arg9[%c0_593, %c128_594] : memref<2x201xf32, #tpu.memory_space<vmem>>, vector<2x64xf32>
    %c4_595 = arith.constant 4 : index
    %c0_596 = arith.constant 0 : index
    %c0_597 = arith.constant 0 : index
    %621 = vector.load %arg3[%c4_595, %c0_596, %c0_597] : memref<9x2x2xf32, #tpu.memory_space<vmem>>, vector<1x2x2xf32>
    %622 = vector.shape_cast %621 : vector<1x2x2xf32> to vector<2x2xf32>
    %cst_598 = arith.constant dense<0.000000e+00> : vector<2x64xf32>
    %623 = tpu.matmul %622, %620, %cst_598 {dimension_numbers = #tpu.dot_dimension_numbers<[1], [0], [0], [1], [0, 0, 1, 1], [], []>} : vector<2x2xf32>, vector<2x64xf32>, vector<2x64xf32> -> vector<2x64xf32>
    %624 = arith.addf %619, %623 : vector<2x64xf32>
    %c0_599 = arith.constant 0 : index
    %c129_600 = arith.constant 129 : index
    %625 = vector.load %arg9[%c0_599, %c129_600] : memref<2x201xf32, #tpu.memory_space<vmem>>, vector<2x64xf32>
    %626 = vector.broadcast %3 : vector<1x64xf32> to vector<2x64xf32>
    %627 = arith.mulf %625, %626 : vector<2x64xf32>
    %c5_601 = arith.constant 5 : index
    %c0_602 = arith.constant 0 : index
    %c0_603 = arith.constant 0 : index
    %628 = vector.load %arg3[%c5_601, %c0_602, %c0_603] : memref<9x2x2xf32, #tpu.memory_space<vmem>>, vector<1x2x2xf32>
    %629 = vector.shape_cast %628 : vector<1x2x2xf32> to vector<2x2xf32>
    %cst_604 = arith.constant dense<0.000000e+00> : vector<2x64xf32>
    %630 = tpu.matmul %629, %627, %cst_604 {dimension_numbers = #tpu.dot_dimension_numbers<[1], [0], [0], [1], [0, 0, 1, 1], [], []>} : vector<2x2xf32>, vector<2x64xf32>, vector<2x64xf32> -> vector<2x64xf32>
    %631 = arith.addf %624, %630 : vector<2x64xf32>
    %c0_605 = arith.constant 0 : index
    %c135_606 = arith.constant 135 : index
    %632 = vector.load %arg9[%c0_605, %c135_606] : memref<2x201xf32, #tpu.memory_space<vmem>>, vector<2x64xf32>
    %633 = vector.broadcast %2 : vector<1x64xf32> to vector<2x64xf32>
    %634 = arith.mulf %632, %633 : vector<2x64xf32>
    %c6_607 = arith.constant 6 : index
    %c0_608 = arith.constant 0 : index
    %c0_609 = arith.constant 0 : index
    %635 = vector.load %arg3[%c6_607, %c0_608, %c0_609] : memref<9x2x2xf32, #tpu.memory_space<vmem>>, vector<1x2x2xf32>
    %636 = vector.shape_cast %635 : vector<1x2x2xf32> to vector<2x2xf32>
    %cst_610 = arith.constant dense<0.000000e+00> : vector<2x64xf32>
    %637 = tpu.matmul %636, %634, %cst_610 {dimension_numbers = #tpu.dot_dimension_numbers<[1], [0], [0], [1], [0, 0, 1, 1], [], []>} : vector<2x2xf32>, vector<2x64xf32>, vector<2x64xf32> -> vector<2x64xf32>
    %638 = arith.addf %631, %637 : vector<2x64xf32>
    %c0_611 = arith.constant 0 : index
    %c136_612 = arith.constant 136 : index
    %639 = vector.load %arg9[%c0_611, %c136_612] : memref<2x201xf32, #tpu.memory_space<vmem>>, vector<2x64xf32>
    %c7_613 = arith.constant 7 : index
    %c0_614 = arith.constant 0 : index
    %c0_615 = arith.constant 0 : index
    %640 = vector.load %arg3[%c7_613, %c0_614, %c0_615] : memref<9x2x2xf32, #tpu.memory_space<vmem>>, vector<1x2x2xf32>
    %641 = vector.shape_cast %640 : vector<1x2x2xf32> to vector<2x2xf32>
    %cst_616 = arith.constant dense<0.000000e+00> : vector<2x64xf32>
    %642 = tpu.matmul %641, %639, %cst_616 {dimension_numbers = #tpu.dot_dimension_numbers<[1], [0], [0], [1], [0, 0, 1, 1], [], []>} : vector<2x2xf32>, vector<2x64xf32>, vector<2x64xf32> -> vector<2x64xf32>
    %643 = arith.addf %638, %642 : vector<2x64xf32>
    %c0_617 = arith.constant 0 : index
    %c137_618 = arith.constant 137 : index
    %644 = vector.load %arg9[%c0_617, %c137_618] : memref<2x201xf32, #tpu.memory_space<vmem>>, vector<2x64xf32>
    %645 = vector.broadcast %3 : vector<1x64xf32> to vector<2x64xf32>
    %646 = arith.mulf %644, %645 : vector<2x64xf32>
    %c8_619 = arith.constant 8 : index
    %c0_620 = arith.constant 0 : index
    %c0_621 = arith.constant 0 : index
    %647 = vector.load %arg3[%c8_619, %c0_620, %c0_621] : memref<9x2x2xf32, #tpu.memory_space<vmem>>, vector<1x2x2xf32>
    %648 = vector.shape_cast %647 : vector<1x2x2xf32> to vector<2x2xf32>
    %cst_622 = arith.constant dense<0.000000e+00> : vector<2x64xf32>
    %649 = tpu.matmul %648, %646, %cst_622 {dimension_numbers = #tpu.dot_dimension_numbers<[1], [0], [0], [1], [0, 0, 1, 1], [], []>} : vector<2x2xf32>, vector<2x64xf32>, vector<2x64xf32> -> vector<2x64xf32>
    %650 = arith.addf %643, %649 : vector<2x64xf32>
    %651 = vector.broadcast %4 : vector<2x1xf32> to vector<2x64xf32>
    %652 = arith.mulf %650, %651 : vector<2x64xf32>
    %653 = vector.broadcast %5 : vector<2x1xf32> to vector<2x64xf32>
    %654 = arith.addf %652, %653 : vector<2x64xf32>
    %c7_623 = arith.constant 7 : index
    %c0_624 = arith.constant 0 : index
    %c0_625 = arith.constant 0 : index
    %655 = vector.load %arg8[%c7_623, %c0_624, %c0_625] : memref<8x2x64xf32, #tpu.memory_space<vmem>>, vector<1x2x64xf32>
    %656 = vector.shape_cast %655 : vector<1x2x64xf32> to vector<2x64xf32>
    %657 = vector.shape_cast %654 : vector<2x64xf32> to vector<1x2x64xf32>
    tpu.vector_store %arg8[%c7_623, %c0_624, %c0_625], %657 {strides = array<i32>} : memref<8x2x64xf32, #tpu.memory_space<vmem>>, vector<1x2x64xf32>,
    return
  }
  func.func @transform_0(%arg0: i32) -> (i32, i32, i32) {
    %c0_i32 = arith.constant 0 : i32
    %c0_i32_0 = arith.constant 0 : i32
    %c0_i32_1 = arith.constant 0 : i32
    return %arg0, %c0_i32, %c0_i32_0 : i32, i32, i32
  }
  func.func @transform_1(%arg0: i32) -> (i32, i32, i32) {
    %c0_i32 = arith.constant 0 : i32
    %c0_i32_0 = arith.constant 0 : i32
    %c0_i32_1 = arith.constant 0 : i32
    %c0_i32_2 = arith.constant 0 : i32
    return %c0_i32, %c0_i32_0, %c0_i32_1 : i32, i32, i32
  }
  func.func @transform_2(%arg0: i32) -> (i32, i32, i32) {
    %c0_i32 = arith.constant 0 : i32
    %c0_i32_0 = arith.constant 0 : i32
    %c0_i32_1 = arith.constant 0 : i32
    %c0_i32_2 = arith.constant 0 : i32
    return %c0_i32, %c0_i32_0, %c0_i32_1 : i32, i32, i32
  }
  func.func @transform_3(%arg0: i32) -> (i32, i32) {
    %c0_i32 = arith.constant 0 : i32
    %c0_i32_0 = arith.constant 0 : i32
    %c0_i32_1 = arith.constant 0 : i32
    return %c0_i32, %c0_i32_0 : i32, i32
  }
  func.func @transform_4(%arg0: i32) -> (i32, i32) {
    %c0_i32 = arith.constant 0 : i32
    %c0_i32_0 = arith.constant 0 : i32
    %c0_i32_1 = arith.constant 0 : i32
    return %c0_i32, %c0_i32_0 : i32, i32
  }
  func.func @transform_5(%arg0: i32) -> (i32, i32) {
    %c0_i32 = arith.constant 0 : i32
    %c0_i32_0 = arith.constant 0 : i32
    %c0_i32_1 = arith.constant 0 : i32
    return %c0_i32, %c0_i32_0 : i32, i32
  }
  func.func @transform_6(%arg0: i32) -> (i32, i32) {
    %c0_i32 = arith.constant 0 : i32
    %c0_i32_0 = arith.constant 0 : i32
    %c0_i32_1 = arith.constant 0 : i32
    return %c0_i32, %c0_i32_0 : i32, i32
  }
  func.func @transform_7(%arg0: i32) -> (i32, i32, i32) {
    %c0_i32 = arith.constant 0 : i32
    %c0_i32_0 = arith.constant 0 : i32
    %c0_i32_1 = arith.constant 0 : i32
    return %arg0, %c0_i32, %c0_i32_0 : i32, i32, i32
  }
}

</mosaic_0001>

<bundles_post_ra>
// kernel: ste_forward.3
= control target key start
LH: loop header
LB: loop body
LE: loop exit
PB: predicated region body
PF: predicated region fallthrough
CT: control target
= control target key end

     0   :  { %s1190_s15 = smov 0   ;;  %s1322_s0 = inlined_call_operand.vmem [shape: f32[16,32,64], index: 0, kind: input, shape index: {}]   ;;  %s1323_s1 = inlined_call_operand.vmem [shape: f32[2,32], index: 1, kind: input, shape index: {}]   ;;  %s1324_s2 = inlined_call_operand.vmem [shape: f32[2,1], index: 2, kind: input, shape index: {}]   ;;  %s1325_s3 = inlined_call_operand.vmem [shape: f32[2,1], index: 3, kind: input, shape index: {}]   ;;  %s1326_s4 = inlined_call_operand.vmem [shape: f32[16,2,64], index: 4, kind: output, shape index: {}]  }
   0x1 LB: > { %s908_s16 = sadd.s32 4294967295, %s1159_s15   ;;  %p912_p0 = scmp.ge.s32.totalorder %s1159_s15, 1  ;;  %s1159_s15 = sphi %s1190_s15, %s14_s15  }
   0x2   : > { %p164_p1 = scmp.lt.s32.totalorder %s1159_s15, 3 }
   0x4   : > { %p165_p2 = pnand %p912_p0, %p164_p1 }
   0x5   : > { %s913_s17 = sshll.u32 (!%p165_p2), %s908_s16, 3  ;;  %v1161_v0 = vmov (!%p165_p2), 0.0|0.0   ;;  %v205_v1 = vld [vmem:[%s1324_s2] sm:$0x3] (!%p165_p2)  ;;  %vm1162_vm0 = vmmov (!%p165_p2), 0   ;;  %v1163_v2 = vmov (!%p165_p2), 0.0  }
   0x6   : > { %168 = sbr.rel (%p165_p2) target bundleno = 268 (0x10c), region = 36  ;;  %1092 = vmatprep.subr.bf16.mxu0 (!%p165_p2), %v1161_v0  ;;  %1098 = vmatprep.subr.bf16.mxu1 (!%p165_p2), %v1161_v0  ;;  %p192_p3 = scmp.lt.s32.totalorder (!%p165_p2), %s913_s17, 15  ;;  %v1164_v3 = vmov (!%p165_p2), 0   ;;  %v206_v4 = vld [vmem:[%s1325_s3] sm:$0x3] (!%p165_p2)  ;;  %vm211_vm1 = vcmask (!%p165_p2), 261120  }
   0x7   : > { %1012 = vmatprep.mubr.msk.f32.mxu0 (!%p165_p2), %vm1162_vm0, %v1163_v2  ;;  %1023 = vmatprep.mubr.msk.f32.mxu1 (!%p165_p2), %vm1162_vm0, %v1163_v2  ;;  %v1235_v21 = vld [vmem:[%s1323_s1] sm:$0x3] (!%p165_p2)  ;;  %vm297_vm2 = vcmask (!%p165_p2), 517120  }
   0x8   : > { %1152 = vset.pattern.permute.xlu0 (!%p165_p2), %v1164_v3 }
   0x9   : > { %287 = vperm.xlu0 (!%p165_p2), %1152, %v205_v1  }
   0xd   : > { %s1328_s17 = smov (!%p192_p3, %s913_s17), 15  ;;  %293 = vperm.xlu0 %1152, %v206_v4  }
   0xe   : > { %s963_s20 = sshll.u32 %s1328_s17, 5  ;;  %s917_s28 = sshll.u32 %s1328_s17, 1 }
   0xf   : > { %s1216_s25 = scalar_lea.vmem %s1322_s0, %s963_s20  ;;  %s1301_s5 = scalar_lea.vmem %s1326_s4, %s917_s28 }
  0x10   : > { %v207_v5 = vld [vmem:[%s1216_s25] sm:$0xff]  ;;  %v208_v6 = vld [vmem:[%s1216_s25 + $0x8] sm:$0xff]  ;;  %v209_v10 = vld [vmem:[%s1216_s25 + $0x10] sm:$0xff] }
  0x11   : > { %v919_v7 = vld [vmem:[%s1216_s25 + $0x20] sm:$0xff]  ;;  %v1093_v8 = vpack.c.bf16 %v208_v6, %v207_v5  ;;  %v920_v9 = vld [vmem:[%s1216_s25 + $0x28] sm:$0xff]  ;;  %v210_v11 = vld [vmem:[%s1216_s25 + $0x18] sm:$0xff] }
  0x12   : > { %v1099_v12 = vpack.c.bf16 %v920_v9, %v919_v7  ;;  %v921_v13 = vld [vmem:[%s1216_s25 + $0x30] sm:$0xff]  ;;  %v922_v14 = vld [vmem:[%s1216_s25 + $0x38] sm:$0xff]  ;;  %v1096_v15 = vpack.c.bf16 %v210_v11, %v209_v10  ;;  %v925_v17 = vld [vmem:[%s1216_s25 + $0x40] sm:$0xff] }
  0x13   : > { %1094 = vmatpush3.bf16.msra.mxu0 %v1093_v8  ;;  %v1102_v16 = vpack.c.bf16 %v922_v14, %v921_v13  ;;  %v926_v18 = vld [vmem:[%s1216_s25 + $0x48] sm:$0xff]  ;;  %v931_v19 = vld [vmem:[%s1216_s25 + $0x60] sm:$0xff]  ;;  %v927_v24 = vld [vmem:[%s1216_s25 + $0x50] sm:$0xff] }
  0x14   : > { %1100 = vmatpush3.bf16.msra.mxu1 %v1099_v12  ;;  %1095 = vmatprep.subr.bf16.mxu0 %v1161_v0  ;;  %v932_v20 = vld [vmem:[%s1216_s25 + $0x68] sm:$0xff]  ;;  %v1105_v22 = vpack.c.bf16 %v926_v18, %v925_v17  ;;  %v928_v25 = vld [vmem:[%s1216_s25 + $0x58] sm:$0xff]  ;;  %v933_v26 = vld [vmem:[%s1216_s25 + $0x70] sm:$0xff] }
  0x15   : > { %1101 = vmatprep.subr.bf16.mxu1 %v1161_v0  ;;  %v1111_v23 = vpack.c.bf16 %v932_v20, %v931_v19  ;;  %v934_v27 = vld [vmem:[%s1216_s25 + $0x78] sm:$0xff]  ;;  %v1108_v28 = vpack.c.bf16 %v928_v25, %v927_v24  ;;  %v937_v30 = vld [vmem:[%s1216_s25 + $0x80] sm:$0xff]  ;;  %v938_v31 = vld [vmem:[%s1216_s25 + $0x88] sm:$0xff] }
  0x16   : > { %v1114_v29 = vpack.c.bf16 %v934_v27, %v933_v26  ;;  %v943_v32 = vld [vmem:[%s1216_s25 + $0xa0] sm:$0xff]  ;;  %v944_v33 = vld [vmem:[%s1216_s25 + $0xa8] sm:$0xff]  ;;  %v1117_v34 = vpack.c.bf16 %v938_v31, %v937_v30  ;;  %v939_v36 = vld [vmem:[%s1216_s25 + $0x90] sm:$0xff] }
  0x17   : > { %1097 = vmatpush3.bf16.msra.mxu0 %v1096_v15  ;;  %v1123_v35 = vpack.c.bf16 %v944_v33, %v943_v32  ;;  %v940_v37 = vld [vmem:[%s1216_s25 + $0x98] sm:$0xff]  ;;  %v945_v38 = vld [vmem:[%s1216_s25 + $0xb0] sm:$0xff]  ;;  %v949_v42 = vld [vmem:[%s1216_s25 + $0xc0] sm:$0xff] }
  0x18   : > { %1103 = vmatpush3.bf16.msra.mxu1 %v1102_v16  ;;  %1104 = vmatprep.subr.bf16.mxu0 %v1161_v0  ;;  %v946_v39 = vld [vmem:[%s1216_s25 + $0xb8] sm:$0xff]  ;;  %v1120_v40 = vpack.c.bf16 %v940_v37, %v939_v36  ;;  %v950_v43 = vld [vmem:[%s1216_s25 + $0xc8] sm:$0xff]  ;;  %v955_v44 = vld [vmem:[%s1216_s25 + $0xe0] sm:$0xff] }
  0x19   : > { %1110 = vmatprep.subr.bf16.mxu1 %v1161_v0  ;;  %v1126_v41 = vpack.c.bf16 %v946_v39, %v945_v38  ;;  %v956_v45 = vld [vmem:[%s1216_s25 + $0xe8] sm:$0xff]  ;;  %v1129_v46 = vpack.c.bf16 %v950_v43, %v949_v42  ;;  %v951_v48 = vld [vmem:[%s1216_s25 + $0xd0] sm:$0xff]  ;;  %v952_v49 = vld [vmem:[%s1216_s25 + $0xd8] sm:$0xff] }
  0x1a   : > { %1013 = vmatmul.mubr.msk.f32.vlgmr.msra.gmra.mrb[0].mxu0 %vm211_vm1, %v1235_v21  ;;  %v1135_v47 = vpack.c.bf16 %v956_v45, %v955_v44  ;;  %v957_v50 = vld [vmem:[%s1216_s25 + $0xf0] sm:$0xff]  ;;  %v958_v51 = vld [vmem:[%s1216_s25 + $0xf8] sm:$0xff]  ;;  %v1132_v52 = vpack.c.bf16 %v952_v49, %v951_v48 }
  0x1b   : > { %1024 = vmatmul.mubr.msk.f32.vlgmr.msra.gmra.mrb[0].mxu1 %vm211_vm1, %v1235_v21  ;;  %1106 = vmatpush3.bf16.msra.mxu0 %v1105_v22  ;;  %v1138_v53 = vpack.c.bf16 %v958_v51, %v957_v50 }
  0x1c   : > { %1112 = vmatpush3.bf16.msra.mxu1 %v1111_v23  ;;  %1107 = vmatprep.subr.bf16.mxu0 %v1161_v0 }
  0x1d   : > { %1113 = vmatprep.subr.bf16.mxu1 %v1161_v0  ;;  %1034 = vmatprep.mubr.msk.f32.mxu0 %vm1162_vm0, %v1163_v2 }
  0x1e   : > { %1045 = vmatprep.mubr.msk.f32.mxu1 %vm1162_vm0, %v1163_v2 }
  0x1f   : > { %1109 = vmatpush3.bf16.msra.mxu0 %v1108_v28 }
  0x20   : > { %1115 = vmatpush3.bf16.msra.mxu1 %v1114_v29  ;;  %1116 = vmatprep.subr.bf16.mxu0 %v1161_v0 }
  0x21   : > { %1122 = vmatprep.subr.bf16.mxu1 %v1161_v0 }
  0x22   : > { %1035 = vmatmul.mubr.msk.f32.vlgmr.msra.gmra.mrb[2].mxu0 %vm211_vm1, %v1235_v21 }
  0x23   : > { %1046 = vmatmul.mubr.msk.f32.vlgmr.msra.gmra.mrb[2].mxu1 %vm211_vm1, %v1235_v21  ;;  %1118 = vmatpush3.bf16.msra.mxu0 %v1117_v34 }
  0x24   : > { %1124 = vmatpush3.bf16.msra.mxu1 %v1123_v35  ;;  %1119 = vmatprep.subr.bf16.mxu0 %v1161_v0 }
  0x25   : > { %1125 = vmatprep.subr.bf16.mxu1 %v1161_v0  ;;  %1056 = vmatprep.mubr.msk.f32.mxu0 %vm1162_vm0, %v1163_v2 }
  0x26   : > { %1067 = vmatprep.mubr.msk.f32.mxu1 %vm1162_vm0, %v1163_v2 }
  0x27   : > { %1121 = vmatpush3.bf16.msra.mxu0 %v1120_v40 }
  0x28   : > { %1127 = vmatpush3.bf16.msra.mxu1 %v1126_v41  ;;  %1128 = vmatprep.subr.bf16.mxu0 %v1161_v0 }
  0x29   : > { %1134 = vmatprep.subr.bf16.mxu1 %v1161_v0 }
  0x2a   : > { %1057 = vmatmul.mubr.msk.f32.vlgmr.msra.gmra.mrb[4].mxu0 %vm211_vm1, %v1235_v21 }
  0x2b   : > { %1068 = vmatmul.mubr.msk.f32.vlgmr.msra.gmra.mrb[4].mxu1 %vm211_vm1, %v1235_v21  ;;  %1130 = vmatpush3.bf16.msra.mxu0 %v1129_v46 }
  0x2c   : > { %1136 = vmatpush3.bf16.msra.mxu1 %v1135_v47  ;;  %1131 = vmatprep.subr.bf16.mxu0 %v1161_v0 }
  0x2d   : > { %1137 = vmatprep.subr.bf16.mxu1 %v1161_v0  ;;  %1078 = vmatprep.mubr.msk.f32.mxu0 %vm1162_vm0, %v1163_v2 }
  0x2e   : > { %1089 = vmatprep.mubr.msk.f32.mxu1 %vm1162_vm0, %v1163_v2 }
  0x2f   : > { %1133 = vmatpush3.bf16.msra.mxu0 %v1132_v52 }
  0x30   : > { %1139 = vmatpush3.bf16.msra.mxu1 %v1138_v53 }
  0x32   : > { %1079 = vmatmul.mubr.msk.f32.vlgmr.msra.gmra.mrb[6].mxu0 %vm211_vm1, %v1235_v21 }
  0x33   : > { %1090 = vmatmul.mubr.msk.f32.vlgmr.msra.gmra.mrb[6].mxu1 %vm211_vm1, %v1235_v21 }
  0x88   : > { %v288_v54 = vpop.permute.xlu0 %287 }
  0x8c   : > { %v294_v56 = vpop.permute.xlu0 %293 }
  0xed   : > { %v281_v55 = vpop.f32.mrb[0].mxu0 }
  0xee   : > { %v290_v57 = vmul.f32 %v288_v54, %v281_v55  ;;  %v370_v58 = vpop.f32.mrb[0].mxu1  ;;  %v1014_v59 = vpop.f32.mrb[1].mxu0 }
  0xef   : > { %v374_v60 = vmul.f32 %v370_v58, %v288_v54  ;;  %v1025_v61 = vpop.f32.mrb[1].mxu1 }
  0xf0   : > { %v296_v62 = vadd.f32 %v294_v56, %v290_v57 }
  0xf1   : > { %v375_v63 = vadd.f32 %v374_v60, %v294_v56 }
  0xf2   : > { %298 = vst.msk [vmem:[%s1301_s5] sm:$0x3] %vm297_vm2, %v296_v62 }
  0xf3   : > { %924 = vst.msk [vmem:[%s1301_s5 + $0x2] sm:$0x3] %vm297_vm2, %v375_v63 }
  0xf5   : > { %v449_v0 = vpop.f32.mrb[2].mxu0 }
  0xf6   : > { %v453_v1 = vmul.f32 %v449_v0, %v288_v54  ;;  %v528_v2 = vpop.f32.mrb[2].mxu1  ;;  %v1036_v3 = vpop.f32.mrb[3].mxu0 }
  0xf7   : > { %v532_v4 = vmul.f32 %v528_v2, %v288_v54  ;;  %v1047_v5 = vpop.f32.mrb[3].mxu1 }
  0xf8   : > { %v454_v6 = vadd.f32 %v453_v1, %v294_v56 }
  0xf9   : > { %v533_v7 = vadd.f32 %v532_v4, %v294_v56 }
  0xfa   : > { %930 = vst.msk [vmem:[%s1301_s5 + $0x4] sm:$0x3] %vm297_vm2, %v454_v6 }
  0xfb   : > { %936 = vst.msk [vmem:[%s1301_s5 + $0x6] sm:$0x3] %vm297_vm2, %v533_v7 }
  0xfd   : > { %v607_v8 = vpop.f32.mrb[4].mxu0 }
  0xfe   : > { %v611_v9 = vmul.f32 %v607_v8, %v288_v54  ;;  %v686_v10 = vpop.f32.mrb[4].mxu1  ;;  %v1058_v11 = vpop.f32.mrb[5].mxu0 }
  0xff   : > { %v690_v12 = vmul.f32 %v686_v10, %v288_v54  ;;  %v1069_v13 = vpop.f32.mrb[5].mxu1 }
 0x100   : > { %v612_v14 = vadd.f32 %v611_v9, %v294_v56 }
 0x101   : > { %v691_v15 = vadd.f32 %v690_v12, %v294_v56 }
 0x102   : > { %942 = vst.msk [vmem:[%s1301_s5 + $0x8] sm:$0x3] %vm297_vm2, %v612_v14 }
 0x103   : > { %948 = vst.msk [vmem:[%s1301_s5 + $0xa] sm:$0x3] %vm297_vm2, %v691_v15 }
 0x105   : > { %v765_v16 = vpop.f32.mrb[6].mxu0 }
 0x106   : > { %v769_v17 = vmul.f32 %v765_v16, %v288_v54  ;;  %v844_v18 = vpop.f32.mrb[6].mxu1  ;;  %v1080_v19 = vpop.f32.mrb[7].mxu0 }
 0x107   : > { %v848_v20 = vmul.f32 %v844_v18, %v288_v54  ;;  %v1091_v21 = vpop.f32.mrb[7].mxu1 }
 0x108   : > { %v770_v22 = vadd.f32 %v769_v17, %v294_v56 }
 0x109   : > { %v849_v23 = vadd.f32 %v848_v20, %v294_v56 }
 0x10a   : > { %954 = vst.msk [vmem:[%s1301_s5 + $0xc] sm:$0x3] %vm297_vm2, %v770_v22 }
 0x10b   : > { %960 = vst.msk [vmem:[%s1301_s5 + $0xe] sm:$0x3] %vm297_vm2, %v849_v23 }
 0x10c PF: > { %s14_s15 = sadd.s32 1, %s1159_s15  }
 0x10d   : > { %p11_p4 = scmp.ge.s32.totalorder %s14_s15, 4  }
 0x10f   :  { %13 = sbr.rel (!%p11_p4) target bundleno = 1 (0x1), region = 80 }

// kernel: ste_forward.5
= control target key start
LH: loop header
LB: loop body
LE: loop exit
PB: predicated region body
PF: predicated region fallthrough
CT: control target
= control target key end

     0   :  { %s1879_s18 = smov 0   ;;  %s2251_s0 = inlined_call_operand.vmem [shape: f32[16,2,64], index: 0, kind: input, shape index: {}]   ;;  %s2252_s1 = inlined_call_operand.vmem [shape: f32[16,32,64], index: 1, kind: input, shape index: {}, may-alias: {1,5}]   ;;  %s2253_s2 = inlined_call_operand.vmem [shape: f32[32,2], index: 2, kind: input, shape index: {}]   ;;  %s2254_s3 = inlined_call_operand.vmem [shape: f32[32,1], index: 3, kind: input, shape index: {}]   ;;  %s2255_s4 = inlined_call_operand.vmem [shape: f32[32,1], index: 4, kind: input, shape index: {}]   ;;  %s2256_s5 = inlined_call_operand.vmem [shape: f32[16,32,64], index: 5, kind: output, shape index: {}, may-alias: {1,5}]  }
   0x1 LB: > { %s1477_s19 = sadd.s32 4294967295, %s1846_s18   ;;  %p1481_p0 = scmp.ge.s32.totalorder %s1846_s18, 1  ;;  %s1846_s18 = sphi %s1879_s18, %s15_s18  }
   0x2   : > { %p200_p1 = scmp.lt.s32.totalorder %s1846_s18, 3 }
   0x4   : > { %p201_p2 = pnand %p1481_p0, %p200_p1 }
   0x5   : > { %s1482_s20 = sshll.u32 (!%p201_p2), %s1477_s19, 3  ;;  %v1890_v0 = vld [vmem:[%s2253_s2] sm:$0xff] (!%p201_p2)  ;;  %vm268_vm0 = vcmask (!%p201_p2), 15360   ;;  %v261_v1 = vld [vmem:[%s2254_s3 + $0x10] sm:$0xff] (!%p201_p2)  ;;  %v1848_v3 = vmov (!%p201_p2), 0   ;;  %v262_v4 = vld [vmem:[%s2254_s3 + $0x18] sm:$0xff] (!%p201_p2) }
   0x6   : > { %204 = sbr.rel (%p201_p2) target bundleno = 351 (0x15f), region = 40  ;;  %p236_p3 = scmp.lt.s32.totalorder (!%p201_p2), %s1482_s20, 15  ;;  %1639 = vmatprep.mubr.msk.f32.mxu0 (!%p201_p2), %vm268_vm0, %v1890_v0  ;;  %1647 = vmatprep.mubr.msk.f32.mxu1 (!%p201_p2), %vm268_vm0, %v1890_v0  ;;  %v259_v2 = vld [vmem:[%s2254_s3] sm:$0xff] (!%p201_p2)  ;;  %v260_v5 = vld [vmem:[%s2254_s3 + $0x8] sm:$0xff] (!%p201_p2)  ;;  %vm281_vm1 = vcmask (!%p201_p2), 1041408   ;;  %v257_v9 = vld [vmem:[%s2253_s2 + $0x10] sm:$0xff] (!%p201_p2) }
   0x7   : > { %1711 = vset.pattern.permute.xlu1 (!%p201_p2), %v1848_v3  ;;  %1710 = vset.pattern.permute.xlu0 (!%p201_p2), %v1848_v3  ;;  %v256_v8 = vld [vmem:[%s2253_s2 + $0x8] sm:$0xff] (!%p201_p2)  ;;  %v258_v12 = vld [vmem:[%s2253_s2 + $0x18] sm:$0xff] (!%p201_p2)  ;;  %v263_v16 = vld [vmem:[%s2255_s4] sm:$0xff] (!%p201_p2)  ;;  %vm450_vm2 = vcmask (!%p201_p2), 523264  }
   0x8   : > { %382 = vperm.xlu1 (!%p201_p2), %1711, %v261_v1   ;;  %372 = vperm.xlu0 (!%p201_p2), %1710, %v259_v2   ;;  %v264_v15 = vld [vmem:[%s2255_s4 + $0x8] sm:$0xff] (!%p201_p2)  ;;  %v266_v19 = vld [vmem:[%s2255_s4 + $0x18] sm:$0xff] (!%p201_p2)  ;;  %v265_v20 = vld [vmem:[%s2255_s4 + $0x10] sm:$0xff] (!%p201_p2) }
   0xc   : > { %387 = vperm.xlu1 (!%p201_p2), %1711, %v262_v4   ;;  %377 = vperm.xlu0 (!%p201_p2), %1710, %v260_v5  }
   0xd   : > { %s2258_s20 = smov (!%p236_p3, %s1482_s20), 15 }
   0xe   : > { %s1483_s6 = sshll.u32 %s2258_s20, 1  ;;  %s1595_s26 = sshll.u32 %s2258_s20, 5 }
   0xf   : > { %s1914_s9 = scalar_lea.vmem %s2251_s0, %s1483_s6  ;;  %s2078_s29 = scalar_lea.vmem %s2252_s1, %s1595_s26 }
  0x10   : > { %v267_v6 = vld [vmem:[%s1914_s9] sm:$0x3]  ;;  %v1495_v7 = vld [vmem:[%s1914_s9 + $0x2] sm:$0x3]  ;;  %v1509_v10 = vld [vmem:[%s1914_s9 + $0x4] sm:$0x3]  ;;  %401 = vperm.xlu1 %1711, %v264_v15   ;;  %396 = vperm.xlu0 %1710, %v263_v16   ;;  %s2095_s7 = scalar_lea.vmem %s2256_s5, %s1595_s26 }
  0x11   : > { %1637 = vmatprep.subr.msk.mxu0 %vm281_vm1, %v267_v6  ;;  %1645 = vmatprep.subr.msk.mxu1 %vm281_vm1, %v1495_v7  ;;  %v1523_v11 = vld [vmem:[%s1914_s9 + $0x6] sm:$0x3]  ;;  %v1537_v13 = vld [vmem:[%s1914_s9 + $0x8] sm:$0x3]  ;;  %v1551_v14 = vld [vmem:[%s1914_s9 + $0xa] sm:$0x3] }
  0x12   : > { %1638 = vmatpush3.msk.msra.mxu0 %vm281_vm1, %v267_v6  ;;  %1646 = vmatpush3.msk.msra.mxu1 %vm281_vm1, %v1495_v7  ;;  %v1565_v17 = vld [vmem:[%s1914_s9 + $0xc] sm:$0x3]  ;;  %v1579_v18 = vld [vmem:[%s1914_s9 + $0xe] sm:$0x3] }
  0x13   : > { %1640 = vmatmul.mubr.msk.f32.vlgmr.msra.gmra.mrb[0].mxu0 %vm268_vm0, %v256_v8  ;;  %1648 = vmatmul.mubr.msk.f32.vlgmr.msra.gmra.mrb[0].mxu1 %vm268_vm0, %v256_v8 }
  0x14   : > { %1642 = vmatprep.mubr.msk.f32.mxu0 %vm268_vm0, %v257_v9  ;;  %1650 = vmatprep.mubr.msk.f32.mxu1 %vm268_vm0, %v257_v9 }
  0x15   : > { %1653 = vmatprep.subr.msk.mxu0 %vm281_vm1, %v1509_v10  ;;  %1661 = vmatprep.subr.msk.mxu1 %vm281_vm1, %v1523_v11 }
  0x16   : > { %1654 = vmatpush3.msk.msra.mxu0 %vm281_vm1, %v1509_v10  ;;  %1662 = vmatpush3.msk.msra.mxu1 %vm281_vm1, %v1523_v11 }
  0x17   : > { %1643 = vmatmul.mubr.msk.f32.gmra.mrb[2].mxu0 %vm268_vm0, %v258_v12  ;;  %1651 = vmatmul.mubr.msk.f32.gmra.mrb[2].mxu1 %vm268_vm0, %v258_v12 }
  0x18   : > { %1655 = vmatprep.mubr.msk.f32.mxu0 %vm268_vm0, %v1890_v0  ;;  %1663 = vmatprep.mubr.msk.f32.mxu1 %vm268_vm0, %v1890_v0 }
  0x19   : > { %1669 = vmatprep.subr.msk.mxu0 %vm281_vm1, %v1537_v13  ;;  %1677 = vmatprep.subr.msk.mxu1 %vm281_vm1, %v1551_v14 }
  0x1a   : > { %411 = vperm.xlu1 %1711, %v266_v19   ;;  %406 = vperm.xlu0 %1710, %v265_v20  }
  0x1b   : > { %1656 = vmatmul.mubr.msk.f32.vlgmr.msra.gmra.mrb[4].mxu0 %vm268_vm0, %v256_v8  ;;  %1664 = vmatmul.mubr.msk.f32.vlgmr.msra.gmra.mrb[4].mxu1 %vm268_vm0, %v256_v8 }
  0x1c   : > { %1658 = vmatprep.mubr.msk.f32.mxu0 %vm268_vm0, %v257_v9  ;;  %1666 = vmatprep.mubr.msk.f32.mxu1 %vm268_vm0, %v257_v9 }
  0x1d   : > { %1670 = vmatpush3.msk.msra.mxu0 %vm281_vm1, %v1537_v13  ;;  %1678 = vmatpush3.msk.msra.mxu1 %vm281_vm1, %v1551_v14 }
  0x1e   : > { %1685 = vmatprep.subr.msk.mxu0 %vm281_vm1, %v1565_v17  ;;  %1693 = vmatprep.subr.msk.mxu1 %vm281_vm1, %v1579_v18 }
  0x1f   : > { %1659 = vmatmul.mubr.msk.f32.gmra.mrb[6].mxu0 %vm268_vm0, %v258_v12  ;;  %1667 = vmatmul.mubr.msk.f32.gmra.mrb[6].mxu1 %vm268_vm0, %v258_v12 }
  0x20   : > { %1671 = vmatprep.mubr.msk.f32.mxu0 %vm268_vm0, %v1890_v0  ;;  %1679 = vmatprep.mubr.msk.f32.mxu1 %vm268_vm0, %v1890_v0 }
  0x23   : > { %1672 = vmatmul.mubr.msk.f32.vlgmr.msra.gmra.mrb[8].mxu0 %vm268_vm0, %v256_v8  ;;  %1680 = vmatmul.mubr.msk.f32.vlgmr.msra.gmra.mrb[8].mxu1 %vm268_vm0, %v256_v8 }
  0x24   : > { %1674 = vmatprep.mubr.msk.f32.mxu0 %vm268_vm0, %v257_v9  ;;  %1682 = vmatprep.mubr.msk.f32.mxu1 %vm268_vm0, %v257_v9 }
  0x25   : > { %1686 = vmatpush3.msk.msra.mxu0 %vm281_vm1, %v1565_v17  ;;  %1694 = vmatpush3.msk.msra.mxu1 %vm281_vm1, %v1579_v18 }
  0x27   : > { %1675 = vmatmul.mubr.msk.f32.gmra.mrb[10].mxu0 %vm268_vm0, %v258_v12  ;;  %1683 = vmatmul.mubr.msk.f32.gmra.mrb[10].mxu1 %vm268_vm0, %v258_v12 }
  0x28   : > { %1687 = vmatprep.mubr.msk.f32.mxu0 %vm268_vm0, %v1890_v0  ;;  %1695 = vmatprep.mubr.msk.f32.mxu1 %vm268_vm0, %v1890_v0 }
  0x2b   : > { %1688 = vmatmul.mubr.msk.f32.vlgmr.msra.gmra.mrb[12].mxu0 %vm268_vm0, %v256_v8  ;;  %1696 = vmatmul.mubr.msk.f32.vlgmr.msra.gmra.mrb[12].mxu1 %vm268_vm0, %v256_v8 }
  0x2c   : > { %1690 = vmatprep.mubr.msk.f32.mxu0 %vm268_vm0, %v257_v9  ;;  %1698 = vmatprep.mubr.msk.f32.mxu1 %vm268_vm0, %v257_v9 }
  0x2f   : > { %1691 = vmatmul.mubr.msk.f32.gmra.mrb[14].mxu0 %vm268_vm0, %v258_v12  ;;  %1699 = vmatmul.mubr.msk.f32.gmra.mrb[14].mxu1 %vm268_vm0, %v258_v12 }
  0x87   : > { %v1997_v21 = vpop.permute.xlu1 %382  ;;  %v1999_v22 = vpop.permute.xlu0 %372 }
  0x8b   : > { %v2001_v23 = vpop.permute.xlu1 %387  ;;  %v2003_v24 = vpop.permute.xlu0 %377 }
  0x8f   : > { %v2005_v25 = vpop.permute.xlu1 %401  ;;  %v2007_v26 = vpop.permute.xlu0 %396 }
  0x99   : > { %v2019_v47 = vpop.permute.xlu1 %411  ;;  %v2023_v52 = vpop.permute.xlu0 %406 }
  0xe6   : > { %v1641_v27 = vpop.f32.mrb[0].mxu0  ;;  %v1649_v28 = vpop.f32.mrb[0].mxu1 }
  0xe7   : > { %v391_v29 = vmul.f32 %v1641_v27, %v2003_v24  ;;  %v546_v30 = vmul.f32 %v1649_v28, %v2003_v24  ;;  %v351_v31 = vpop.f32.mrb[1].mxu0  ;;  %v526_v32 = vpop.f32.mrb[1].mxu1 }
  0xe8   : > { %v390_v33 = vmul.f32 %v1999_v22, %v351_v31  ;;  %v545_v34 = vmul.f32 %v526_v32, %v1999_v22 }
  0xe9   : > { %v415_v35 = vadd.f32 %v2005_v25, %v391_v29  ;;  %v550_v36 = vadd.f32 %v546_v30, %v2005_v25 }
  0xea   : > { %v414_v37 = vadd.f32 %v2007_v26, %v390_v33  ;;  %v549_v38 = vadd.f32 %v545_v34, %v2007_v26  ;;  %v1644_v39 = vpop.f32.mrb[2].mxu0  ;;  %v1652_v40 = vpop.f32.mrb[2].mxu1 }
  0xeb   : > { %v419_v41 = vsub.f32 0.0, %v415_v35  ;;  %v554_v42 = vsub.f32 0.0, %v550_v36  ;;  %v393_v43 = vmul.f32 %v1644_v39, %v2001_v23  ;;  %v548_v44 = vmul.f32 %v1652_v40, %v2001_v23  ;;  %v361_v45 = vpop.f32.mrb[3].mxu0  ;;  %v536_v46 = vpop.f32.mrb[3].mxu1 }
  0xec   : > { %v418_v48 = vsub.f32 0.0, %v414_v37  ;;  %v553_v49 = vsub.f32 0.0, %v549_v38  ;;  %v392_v50 = vmul.f32 %v1997_v21, %v361_v45  ;;  %v547_v51 = vmul.f32 %v536_v46, %v1997_v21 }
  0xed   : > { %v424_v53 = vmul.f32 1.442695, %v419_v41  ;;  %v417_v54 = vadd.f32 %v2019_v47, %v393_v43  ;;  %v552_v55 = vadd.f32 %v548_v44, %v2019_v47  ;;  %v559_v56 = vmul.f32 1.442695, %v554_v42 }
  0xee   : > { %v422_v57 = vmul.f32 1.442695, %v418_v48  ;;  %v416_v58 = vadd.f32 %v2023_v52, %v392_v50  ;;  %v551_v59 = vadd.f32 %v547_v51, %v2023_v52  ;;  %v1657_v60 = vpop.f32.mrb[4].mxu0  ;;  %v1665_v61 = vpop.f32.mrb[4].mxu1  ;;  %v557_v2 = vmul.f32 1.442695, %v553_v49 }
  0xef   : > { %1712 = vpow2.f32 %v424_v53  ;;  %v421_v62 = vsub.f32 0.0, %v417_v54  ;;  %v556_v63 = vsub.f32 0.0, %v552_v55  ;;  %v662_v0 = vpop.f32.mrb[5].mxu0  ;;  %v798_v1 = vpop.f32.mrb[5].mxu1  ;;  %v682_v6 = vmul.f32 %v1657_v60, %v2003_v24 }
  0xf0   : > { %v420_v3 = vsub.f32 0.0, %v416_v58  ;;  %v555_v4 = vsub.f32 0.0, %v551_v59  ;;  %1714 = vpow2.f32 %v422_v57  ;;  %v681_v14 = vmul.f32 %v662_v0, %v1999_v22 }
  0xf1   : > { %v428_v5 = vmul.f32 1.442695, %v421_v62  ;;  %1716 = vpow2.f32 %v559_v56  ;;  %v563_v10 = vmul.f32 1.442695, %v556_v63  ;;  %v686_v15 = vadd.f32 %v682_v6, %v2005_v25 }
  0xf2   : > { %v426_v7 = vmul.f32 1.442695, %v420_v3  ;;  %v1660_v8 = vpop.f32.mrb[6].mxu0  ;;  %v1668_v9 = vpop.f32.mrb[6].mxu1  ;;  %v561_v13 = vmul.f32 1.442695, %v555_v4  ;;  %v685_v27 = vadd.f32 %v681_v14, %v2007_v26  ;;  %v818_v43 = vmul.f32 %v1665_v61, %v2003_v24 }
  0xf3   : > { %1718 = vpow2.f32 %v428_v5  ;;  %v672_v11 = vpop.f32.mrb[7].mxu0  ;;  %v808_v12 = vpop.f32.mrb[7].mxu1  ;;  %v684_v18 = vmul.f32 %v1660_v8, %v2001_v23  ;;  %v690_v29 = vsub.f32 0.0, %v686_v15  ;;  %v817_v44 = vmul.f32 %v798_v1, %v1999_v22  ;;  %v439_v15 = vld [vmem:[%s2078_s29 + $0x8] sm:$0xff] }
  0xf4   : > { %1720 = vpow2.f32 %v557_v2  ;;  %v683_v31 = vmul.f32 %v672_v11, %v1997_v21  ;;  %v689_v39 = vsub.f32 0.0, %v685_v27  ;;  %v820_v48 = vmul.f32 %v1668_v9, %v2001_v23 }
  0xf5   : > { %1722 = vpow2.f32 %v426_v7  ;;  %v688_v34 = vadd.f32 %v684_v18, %v2019_v47  ;;  %v695_v42 = vmul.f32 1.442695, %v690_v29  ;;  %v819_v59 = vmul.f32 %v808_v12, %v1997_v21 }
  0xf6   : > { %v2032_v16 = vpop.f32.mrb[8].mxu0  ;;  %v2034_v17 = vpop.f32.mrb[8].mxu1  ;;  %1724 = vpow2.f32 %v563_v10  ;;  %v687_v49 = vadd.f32 %v683_v31, %v2023_v52  ;;  %v693_v58 = vmul.f32 1.442695, %v689_v39  ;;  %v822_v62 = vadd.f32 %v818_v43, %v2005_v25 }
  0xf7   : > { %v2037_v19 = vpop.f32.mrb[9].mxu0  ;;  %v2039_v20 = vpop.f32.mrb[9].mxu1  ;;  %1726 = vpow2.f32 %v561_v13  ;;  %v692_v54 = vsub.f32 0.0, %v688_v34  ;;  %v821_v63 = vadd.f32 %v817_v44, %v2007_v26  ;;  %v824_v2 = vadd.f32 %v820_v48, %v2019_v47  ;;  %v440_v34 = vld [vmem:[%s2078_s29 + $0x10] sm:$0xff] }
  0xf8   : > { %v691_v3 = vsub.f32 0.0, %v687_v49  ;;  %v823_v10 = vadd.f32 %v819_v59, %v2023_v52  ;;  %v826_v12 = vsub.f32 0.0, %v822_v62 }
  0xf9   : > { %v1713_v28 = vpop.eup %1712  ;;  %v699_v6 = vmul.f32 1.442695, %v692_v54  ;;  %v825_v13 = vsub.f32 0.0, %v821_v63  ;;  %v828_v18 = vsub.f32 0.0, %v824_v2 }
  0xfa   : > { %v431_v30 = vadd.f32 1.0, %v1713_v28  ;;  %v2043_v32 = vpop.f32.mrb[10].mxu0  ;;  %v1715_v33 = vpop.eup %1714  ;;  %v697_v27 = vmul.f32 1.442695, %v691_v3  ;;  %v954_v28 = vmul.f32 %v2032_v16, %v2003_v24 }
  0xfb   : > { %v2046_v35 = vpop.f32.mrb[10].mxu1  ;;  %v2048_v36 = vpop.f32.mrb[11].mxu0  ;;  %v430_v38 = vadd.f32 1.0, %v1715_v33  ;;  %v438_v33 = vld [vmem:[%s2078_s29] sm:$0xff]  ;;  %v956_v16 = vmul.f32 %v2043_v32, %v2001_v23  ;;  %v829_v43 = vmul.f32 1.442695, %v825_v13 }
  0xfc   : > { %v1717_v37 = vpop.eup %1716  ;;  %1728 = vrcp.f32 %v431_v30  ;;  %v2050_v40 = vpop.f32.mrb[11].mxu1  ;;  %v953_v30 = vmul.f32 %v2037_v19, %v1999_v22  ;;  %v831_v19 = vmul.f32 1.442695, %v826_v12  ;;  %v835_v44 = vmul.f32 1.442695, %v828_v18 }
  0xfd   : > { %v1719_v41 = vpop.eup %1718  ;;  %1730 = vrcp.f32 %v430_v38  ;;  %v566_v61 = vadd.f32 1.0, %v1717_v37  ;;  %v441_v37 = vld [vmem:[%s2078_s29 + $0x18] sm:$0xff]  ;;  %v827_v38 = vsub.f32 0.0, %v823_v10  ;;  %v955_v32 = vmul.f32 %v2048_v36, %v1997_v21 }
  0xfe   : > { %v1721_v45 = vpop.eup %1720  ;;  %v433_v46 = vadd.f32 1.0, %v1719_v41  ;;  %v2056_v50 = vpop.f32.mrb[12].mxu0  ;;  %v1089_v36 = vmul.f32 %v2039_v20, %v1999_v22 }
  0xff   : > { %v2058_v51 = vpop.f32.mrb[12].mxu1  ;;  %v1723_v53 = vpop.eup %1722  ;;  %v565_v1 = vadd.f32 1.0, %v1721_v45  ;;  %v958_v45 = vadd.f32 %v954_v28, %v2005_v25 }
 0x100   : > { %v2060_v55 = vpop.f32.mrb[13].mxu0  ;;  %v2062_v56 = vpop.f32.mrb[13].mxu1  ;;  %1732 = vrcp.f32 %v433_v46  ;;  %v432_v57 = vadd.f32 1.0, %v1723_v53  ;;  %v957_v53 = vadd.f32 %v953_v30, %v2007_v26  ;;  %v1093_v28 = vadd.f32 %v1089_v36, %v2007_v26 }
 0x101   : > { %v1725_v60 = vpop.eup %1724  ;;  %1734 = vpow2.f32 %v695_v42 }
 0x102   : > { %v1727_v0 = vpop.eup %1726  ;;  %1736 = vrcp.f32 %v432_v57  ;;  %v2069_v4 = vpop.f32.mrb[14].mxu0  ;;  %v568_v9 = vadd.f32 1.0, %v1725_v60  ;;  %v833_v57 = vmul.f32 1.442695, %v827_v38  ;;  %v961_v3 = vsub.f32 0.0, %v957_v53 }
 0x103   : > { %v2071_v5 = vpop.f32.mrb[14].mxu1  ;;  %v2080_v7 = vpop.f32.mrb[15].mxu0  ;;  %1738 = vpow2.f32 %v693_v58  ;;  %v567_v11 = vadd.f32 1.0, %v1727_v0  ;;  %v960_v58 = vadd.f32 %v956_v16, %v2019_v47  ;;  %v962_v0 = vsub.f32 0.0, %v958_v45 }
 0x104   : > { %v2082_v8 = vpop.f32.mrb[15].mxu1  ;;  %1740 = vrcp.f32 %v566_v61  ;;  %v1090_v61 = vmul.f32 %v2034_v17, %v2003_v24  ;;  %v1092_v17 = vmul.f32 %v2046_v35, %v2001_v23  ;;  %v1091_v35 = vmul.f32 %v2050_v40, %v1997_v21 }
 0x105   : > { %1742 = vrcp.f32 %v565_v1  ;;  %v964_v10 = vsub.f32 0.0, %v960_v58  ;;  %v1364_v16 = vmul.f32 %v2071_v5, %v2001_v23  ;;  %v1227_v40 = vmul.f32 %v2080_v7, %v1997_v21 }
 0x106   : > { %v1729_v14 = vpop.eup %1728  ;;  %1744 = vpow2.f32 %v699_v6  ;;  %v959_v6 = vadd.f32 %v955_v32, %v2023_v52 }
 0x107   : > { %v443_v29 = vadd.f32 1.0, %v1729_v14  ;;  %v1731_v31 = vpop.eup %1730  ;;  %1746 = vrcp.f32 %v568_v9  ;;  %v967_v14 = vmul.f32 1.442695, %v962_v0  ;;  %v2144_v7 = vadd.f32 %v1227_v40, %v2023_v52 }
 0x108   : > { %v442_v41 = vadd.f32 1.0, %v1731_v31  ;;  %1748 = vrcp.f32 %v567_v11  ;;  %v971_v31 = vmul.f32 1.442695, %v964_v10  ;;  %v1363_v0 = vmul.f32 %v2082_v8, %v1997_v21 }
 0x109   : > { %v447_v39 = vmul.f32 %v443_v29, %v439_v15  ;;  %1750 = vpow2.f32 %v697_v27  ;;  %v1094_v15 = vadd.f32 %v1090_v61, %v2005_v25  ;;  %v965_v27 = vmul.f32 1.442695, %v961_v3 }
 0x10a   : > { %v1733_v42 = vpop.eup %1732  ;;  %v446_v48 = vmul.f32 %v442_v41, %v438_v33  ;;  %1752 = vpow2.f32 %v831_v19  ;;  %v963_v29 = vsub.f32 0.0, %v959_v6  ;;  %v1096_v33 = vadd.f32 %v1092_v17, %v2019_v47 }
 0x10b   : > { %v1735_v46 = vpop.eup %1734  ;;  %452 = vst.msk [vmem:[%s2095_s7 + $0x8] sm:$0xff] %vm450_vm2, %v447_v39  ;;  %v445_v49 = vadd.f32 1.0, %v1733_v42  ;;  %1754 = vpow2.f32 %v829_v43  ;;  %v2137_v43 = vadd.f32 %v1364_v16, %v2019_v47  ;;  %v1098_v61 = vsub.f32 0.0, %v1094_v15 }
 0x10c   : > { %v1737_v54 = vpop.eup %1736  ;;  %451 = vst.msk [vmem:[%s2095_s7] sm:$0xff] %vm450_vm2, %v446_v48  ;;  %v702_v63 = vadd.f32 1.0, %v1735_v46  ;;  %1756 = vpow2.f32 %v835_v44  ;;  %v969_v42 = vmul.f32 1.442695, %v963_v29  ;;  %v1095_v48 = vadd.f32 %v1091_v35, %v2023_v52 }
 0x10d   : > { %v449_v59 = vmul.f32 %v445_v49, %v441_v37  ;;  %v444_v60 = vadd.f32 1.0, %v1737_v54  ;;  %v1739_v62 = vpop.eup %1738  ;;  %1758 = vpow2.f32 %v833_v57  ;;  %v1226_v6 = vmul.f32 %v2056_v50, %v2003_v24 }
 0x10e   : > { %v1741_v1 = vpop.eup %1740  ;;  %v701_v12 = vadd.f32 1.0, %v1739_v62  ;;  %1760 = vrcp.f32 %v702_v63  ;;  %v1097_v63 = vsub.f32 0.0, %v1093_v28  ;;  %v1099_v3 = vsub.f32 0.0, %v1095_v48 }
 0x10f   : > { %454 = vst.msk [vmem:[%s2095_s7 + $0x18] sm:$0xff] %vm450_vm2, %v449_v59  ;;  %v448_v2 = vmul.f32 %v444_v60, %v440_v34  ;;  %v1743_v9 = vpop.eup %1742  ;;  %v1228_v34 = vmul.f32 %v2069_v4, %v2001_v23  ;;  %v579_v37 = vadd.f32 1.0, %v1741_v1  ;;  %v1103_v17 = vmul.f32 1.442695, %v1098_v61 }
 0x110   : > { %v1745_v11 = vpop.eup %1744  ;;  %1762 = vrcp.f32 %v701_v12  ;;  %v578_v39 = vadd.f32 1.0, %v1743_v9  ;;  %v2160_v9 = vadd.f32 %v1363_v0, %v2023_v52  ;;  %v1101_v8 = vmul.f32 1.442695, %v1097_v63 }
 0x111   : > { %453 = vst.msk [vmem:[%s2095_s7 + $0x10] sm:$0xff] %vm450_vm2, %v448_v2  ;;  %v1747_v13 = vpop.eup %1746  ;;  %v704_v20 = vadd.f32 1.0, %v1745_v11  ;;  %v2132_v41 = vadd.f32 %v1228_v34, %v2019_v47  ;;  %v1100_v2 = vsub.f32 0.0, %v1096_v33  ;;  %v1225_v11 = vmul.f32 %v2060_v55, %v1999_v22 }
 0x112   : > { %v1749_v18 = vpop.eup %1748  ;;  %v581_v45 = vadd.f32 1.0, %v1747_v13  ;;  %v1105_v50 = vmul.f32 1.442695, %v1099_v3 }
 0x113   : > { %v1751_v30 = vpop.eup %1750  ;;  %1764 = vrcp.f32 %v704_v20  ;;  %v580_v4 = vadd.f32 1.0, %v1749_v18  ;;  %v1107_v13 = vmul.f32 1.442695, %v1100_v2  ;;  %v1230_v18 = vadd.f32 %v1226_v6, %v2005_v25 }
 0x114   : > { %v703_v38 = vadd.f32 1.0, %v1751_v30  ;;  %v1753_v19 = vpop.eup %1752 }
 0x115   : > { %v1755_v44 = vpop.eup %1754  ;;  %v838_v59 = vadd.f32 1.0, %v1753_v19 }
 0x116   : > { %1766 = vrcp.f32 %v703_v38  ;;  %v1757_v49 = vpop.eup %1756  ;;  %v837_v60 = vadd.f32 1.0, %v1755_v44 }
 0x117   : > { %1768 = vpow2.f32 %v967_v14  ;;  %v1759_v57 = vpop.eup %1758  ;;  %v840_v62 = vadd.f32 1.0, %v1757_v49  ;;  %v1235_v49 = vsub.f32 0.0, %v2144_v7 }
 0x118   : > { %v1501_v46 = vld [vmem:[%s2078_s29 + $0x20] sm:$0xff]  ;;  %v1502_v23 = vld [vmem:[%s2078_s29 + $0x28] sm:$0xff]  ;;  %v1503_v5 = vld [vmem:[%s2078_s29 + $0x30] sm:$0xff]  ;;  %1770 = vpow2.f32 %v965_v27  ;;  %v1761_v36 = vpop.eup %1760  ;;  %v839_v1 = vadd.f32 1.0, %v1759_v57 }
 0x119   : > { %v1504_v53 = vld [vmem:[%s2078_s29 + $0x38] sm:$0xff]  ;;  %v582_v32 = vmul.f32 %v1501_v46, %v578_v39  ;;  %v583_v47 = vmul.f32 %v1502_v23, %v579_v37  ;;  %v584_v54 = vmul.f32 %v1503_v5, %v580_v4  ;;  %1772 = vpow2.f32 %v971_v31 }
 0x11a   : > { %v585_v58 = vmul.f32 %v1504_v53, %v581_v45  ;;  %1774 = vpow2.f32 %v969_v42  ;;  %v1763_v10 = vpop.eup %1762  ;;  %v715_v52 = vadd.f32 1.0, %v1761_v36  ;;  %v1229_v31 = vadd.f32 %v1225_v11, %v2007_v26 }
 0x11b   : > { %1505 = vst.msk [vmem:[%s2095_s7 + $0x20] sm:$0xff] %vm450_vm2, %v582_v32  ;;  %1506 = vst.msk [vmem:[%s2095_s7 + $0x28] sm:$0xff] %vm450_vm2, %v583_v47  ;;  %1776 = vrcp.f32 %v838_v59  ;;  %v714_v14 = vadd.f32 1.0, %v1763_v10  ;;  %v1234_v4 = vsub.f32 0.0, %v1230_v18  ;;  %v1362_v23 = vmul.f32 %v2058_v51, %v2003_v24 }
 0x11c   : > { %1507 = vst.msk [vmem:[%s2095_s7 + $0x30] sm:$0xff] %vm450_vm2, %v584_v54  ;;  %1508 = vst.msk [vmem:[%s2095_s7 + $0x38] sm:$0xff] %vm450_vm2, %v585_v58  ;;  %1778 = vrcp.f32 %v837_v60  ;;  %v1233_v44 = vsub.f32 0.0, %v1229_v31  ;;  %v1236_v5 = vsub.f32 0.0, %v2132_v41  ;;  %v1361_v47 = vmul.f32 %v2062_v56, %v1999_v22 }
 0x11d   : > { %v1765_v21 = vpop.eup %1764  ;;  %1780 = vrcp.f32 %v840_v62  ;;  %v1239_v32 = vmul.f32 1.442695, %v1234_v4  ;;  %v1366_v24 = vadd.f32 %v1362_v23, %v2005_v25  ;;  %v1241_v60 = vmul.f32 1.442695, %v1235_v49 }
 0x11e   : > { %1782 = vrcp.f32 %v839_v1  ;;  %v717_v30 = vadd.f32 1.0, %v1765_v21  ;;  %v1237_v57 = vmul.f32 1.442695, %v1233_v44  ;;  %v1243_v51 = vmul.f32 1.442695, %v1236_v5 }
 0x11f   : > { %1784 = vpow2.f32 %v1103_v17  ;;  %v1365_v56 = vadd.f32 %v1361_v47, %v2007_v26  ;;  %v1370_v21 = vsub.f32 0.0, %v1366_v24 }
 0x120   : > { %v1767_v12 = vpop.eup %1766  ;;  %1786 = vpow2.f32 %v1101_v8 }
 0x121   : > { %v1769_v20 = vpop.eup %1768  ;;  %v716_v15 = vadd.f32 1.0, %v1767_v12  ;;  %1788 = vpow2.f32 %v1107_v13  ;;  %v1369_v8 = vsub.f32 0.0, %v1365_v56 }
 0x122   : > { %v1771_v27 = vpop.eup %1770  ;;  %v974_v40 = vadd.f32 1.0, %v1769_v20  ;;  %1790 = vpow2.f32 %v1105_v50  ;;  %v1372_v50 = vsub.f32 0.0, %v2137_v43 }
 0x123   : > { %v1515_v28 = vld [vmem:[%s2078_s29 + $0x40] sm:$0xff]  ;;  %v1516_v29 = vld [vmem:[%s2078_s29 + $0x48] sm:$0xff]  ;;  %v1517_v55 = vld [vmem:[%s2078_s29 + $0x50] sm:$0xff]  ;;  %v1773_v33 = vpop.eup %1772  ;;  %v973_v19 = vadd.f32 1.0, %v1771_v27  ;;  %v1373_v27 = vmul.f32 1.442695, %v1369_v8 }
 0x124   : > { %v1518_v35 = vld [vmem:[%s2078_s29 + $0x58] sm:$0xff]  ;;  %v719_v34 = vmul.f32 %v1516_v29, %v715_v52  ;;  %v718_v37 = vmul.f32 %v1515_v28, %v714_v14  ;;  %v720_v38 = vmul.f32 %v1517_v55, %v716_v15  ;;  %v1775_v16 = vpop.eup %1774  ;;  %v976_v42 = vadd.f32 1.0, %v1773_v33 }
 0x125   : > { %v721_v39 = vmul.f32 %v1518_v35, %v717_v30  ;;  %v1777_v45 = vpop.eup %1776  ;;  %v975_v46 = vadd.f32 1.0, %v1775_v16  ;;  %1792 = vrcp.f32 %v974_v40  ;;  %v1371_v52 = vsub.f32 0.0, %v2160_v9 }
 0x126   : > { %1520 = vst.msk [vmem:[%s2095_s7 + $0x48] sm:$0xff] %vm450_vm2, %v719_v34  ;;  %1519 = vst.msk [vmem:[%s2095_s7 + $0x40] sm:$0xff] %vm450_vm2, %v718_v37  ;;  %v1779_v48 = vpop.eup %1778  ;;  %1794 = vrcp.f32 %v973_v19  ;;  %v851_v58 = vadd.f32 1.0, %v1777_v45  ;;  %v1375_v15 = vmul.f32 1.442695, %v1370_v21 }
 0x127   : > { %1521 = vst.msk [vmem:[%s2095_s7 + $0x50] sm:$0xff] %vm450_vm2, %v720_v38  ;;  %1522 = vst.msk [vmem:[%s2095_s7 + $0x58] sm:$0xff] %vm450_vm2, %v721_v39  ;;  %v1781_v53 = vpop.eup %1780  ;;  %1796 = vrcp.f32 %v976_v42  ;;  %v850_v7 = vadd.f32 1.0, %v1779_v48  ;;  %v1379_v28 = vmul.f32 1.442695, %v1372_v50 }
 0x128   : > { %v1783_v54 = vpop.eup %1782  ;;  %1798 = vrcp.f32 %v975_v46  ;;  %v853_v59 = vadd.f32 1.0, %v1781_v53  ;;  %v1377_v31 = vmul.f32 1.442695, %v1371_v52 }
 0x129   : > { %v1785_v41 = vpop.eup %1784  ;;  %v852_v22 = vadd.f32 1.0, %v1783_v54  ;;  %1800 = vpow2.f32 %v1239_v32 }
 0x12a   : > { %v1787_v61 = vpop.eup %1786  ;;  %1802 = vpow2.f32 %v1237_v57  ;;  %v1110_v17 = vadd.f32 1.0, %v1785_v41 }
 0x12b   : > { %v1789_v36 = vpop.eup %1788  ;;  %1804 = vpow2.f32 %v1243_v51  ;;  %v1109_v11 = vadd.f32 1.0, %v1787_v61 }
 0x12c   : > { %v1791_v6 = vpop.eup %1790  ;;  %1806 = vpow2.f32 %v1241_v60  ;;  %v1112_v26 = vadd.f32 1.0, %v1789_v36 }
 0x12d   : > { %v1111_v13 = vadd.f32 1.0, %v1791_v6  ;;  %1808 = vrcp.f32 %v1110_v17 }
 0x12e   : > { %v1529_v62 = vld [vmem:[%s2078_s29 + $0x60] sm:$0xff]  ;;  %v1530_v63 = vld [vmem:[%s2078_s29 + $0x68] sm:$0xff]  ;;  %v1532_v0 = vld [vmem:[%s2078_s29 + $0x78] sm:$0xff]  ;;  %1810 = vrcp.f32 %v1109_v11 }
 0x12f   : > { %v1531_v25 = vld [vmem:[%s2078_s29 + $0x70] sm:$0xff]  ;;  %v854_v1 = vmul.f32 %v1529_v62, %v850_v7  ;;  %v855_v2 = vmul.f32 %v1530_v63, %v851_v58  ;;  %v857_v3 = vmul.f32 %v1532_v0, %v853_v59  ;;  %v1793_v12 = vpop.eup %1792  ;;  %1812 = vrcp.f32 %v1112_v26 }
 0x130   : > { %v856_v10 = vmul.f32 %v1531_v25, %v852_v22  ;;  %v1795_v20 = vpop.eup %1794  ;;  %1814 = vrcp.f32 %v1111_v13  ;;  %v987_v55 = vadd.f32 1.0, %v1793_v12 }
 0x131   : > { %1533 = vst.msk [vmem:[%s2095_s7 + $0x60] sm:$0xff] %vm450_vm2, %v854_v1  ;;  %1534 = vst.msk [vmem:[%s2095_s7 + $0x68] sm:$0xff] %vm450_vm2, %v855_v2  ;;  %v1797_v14 = vpop.eup %1796  ;;  %v986_v30 = vadd.f32 1.0, %v1795_v20  ;;  %1816 = vpow2.f32 %v1375_v15 }
 0x132   : > { %1536 = vst.msk [vmem:[%s2095_s7 + $0x78] sm:$0xff] %vm450_vm2, %v857_v3  ;;  %1535 = vst.msk [vmem:[%s2095_s7 + $0x70] sm:$0xff] %vm450_vm2, %v856_v10  ;;  %v1799_v18 = vpop.eup %1798  ;;  %v989_v43 = vadd.f32 1.0, %v1797_v14  ;;  %1818 = vpow2.f32 %v1373_v27 }
 0x133   : > { %v1801_v29 = vpop.eup %1800  ;;  %v988_v37 = vadd.f32 1.0, %v1799_v18  ;;  %1820 = vpow2.f32 %v1379_v28 }
 0x134   : > { %v1803_v33 = vpop.eup %1802  ;;  %v1246_v44 = vadd.f32 1.0, %v1801_v29  ;;  %1822 = vpow2.f32 %v1377_v31 }
 0x135   : > { %v1805_v38 = vpop.eup %1804  ;;  %v1245_v45 = vadd.f32 1.0, %v1803_v33 }
 0x136   : > { %v1807_v4 = vpop.eup %1806  ;;  %v1248_v46 = vadd.f32 1.0, %v1805_v38  ;;  %1824 = vrcp.f32 %v1246_v44 }
 0x137   : > { %v1809_v23 = vpop.eup %1808  ;;  %v1247_v5 = vadd.f32 1.0, %v1807_v4  ;;  %1826 = vrcp.f32 %v1245_v45 }
 0x138   : > { %v1811_v48 = vpop.eup %1810  ;;  %1828 = vrcp.f32 %v1248_v46  ;;  %v1123_v47 = vadd.f32 1.0, %v1809_v23 }
 0x139   : > { %v1544_v35 = vld [vmem:[%s2078_s29 + $0x88] sm:$0xff]  ;;  %v1543_v9 = vld [vmem:[%s2078_s29 + $0x80] sm:$0xff]  ;;  %v1546_v34 = vld [vmem:[%s2078_s29 + $0x98] sm:$0xff]  ;;  %v1813_v49 = vpop.eup %1812  ;;  %1830 = vrcp.f32 %v1247_v5  ;;  %v1122_v54 = vadd.f32 1.0, %v1811_v48 }
 0x13a   : > { %v991_v16 = vmul.f32 %v1544_v35, %v987_v55  ;;  %v990_v39 = vmul.f32 %v1543_v9, %v986_v30  ;;  %v993_v40 = vmul.f32 %v1546_v34, %v989_v43  ;;  %v1545_v19 = vld [vmem:[%s2078_s29 + $0x90] sm:$0xff]  ;;  %v1815_v53 = vpop.eup %1814  ;;  %v1125_v57 = vadd.f32 1.0, %v1813_v49 }
 0x13b   : > { %v992_v42 = vmul.f32 %v1545_v19, %v988_v37  ;;  %v1817_v32 = vpop.eup %1816  ;;  %v1124_v7 = vadd.f32 1.0, %v1815_v53 }
 0x13c   : > { %1547 = vst.msk [vmem:[%s2095_s7 + $0x80] sm:$0xff] %vm450_vm2, %v990_v39  ;;  %1548 = vst.msk [vmem:[%s2095_s7 + $0x88] sm:$0xff] %vm450_vm2, %v991_v16  ;;  %v1819_v24 = vpop.eup %1818  ;;  %v1382_v56 = vadd.f32 1.0, %v1817_v32 }
 0x13d   : > { %1550 = vst.msk [vmem:[%s2095_s7 + $0x98] sm:$0xff] %vm450_vm2, %v993_v40  ;;  %1549 = vst.msk [vmem:[%s2095_s7 + $0x90] sm:$0xff] %vm450_vm2, %v992_v42  ;;  %v1821_v59 = vpop.eup %1820  ;;  %v1381_v36 = vadd.f32 1.0, %v1819_v24 }
 0x13e   : > { %v1823_v0 = vpop.eup %1822  ;;  %v1384_v25 = vadd.f32 1.0, %v1821_v59  ;;  %1832 = vrcp.f32 %v1382_v56 }
 0x13f   : > { %v1383_v2 = vadd.f32 1.0, %v1823_v0  ;;  %1834 = vrcp.f32 %v1381_v36 }
 0x140   : > { %v1825_v1 = vpop.eup %1824  ;;  %1836 = vrcp.f32 %v1384_v25 }
 0x141   : > { %v1827_v3 = vpop.eup %1826  ;;  %1838 = vrcp.f32 %v1383_v2  ;;  %v1259_v17 = vadd.f32 1.0, %v1825_v1 }
 0x142   : > { %v1829_v6 = vpop.eup %1828  ;;  %v1258_v11 = vadd.f32 1.0, %v1827_v3 }
 0x143   : > { %v1831_v10 = vpop.eup %1830  ;;  %v1261_v21 = vadd.f32 1.0, %v1829_v6 }
 0x144   : > { %v1557_v51 = vld [vmem:[%s2078_s29 + $0xa0] sm:$0xff]  ;;  %v1558_v41 = vld [vmem:[%s2078_s29 + $0xa8] sm:$0xff]  ;;  %v1560_v58 = vld [vmem:[%s2078_s29 + $0xb8] sm:$0xff]  ;;  %v1260_v13 = vadd.f32 1.0, %v1831_v10 }
 0x145   : > { %v1126_v60 = vmul.f32 %v1557_v51, %v1122_v54  ;;  %v1127_v61 = vmul.f32 %v1558_v41, %v1123_v47  ;;  %v1129_v62 = vmul.f32 %v1560_v58, %v1125_v57  ;;  %v1559_v63 = vld [vmem:[%s2078_s29 + $0xb0] sm:$0xff] }
 0x146   : > { %v1128_v22 = vmul.f32 %v1559_v63, %v1124_v7 }
 0x147   : > { %1561 = vst.msk [vmem:[%s2095_s7 + $0xa0] sm:$0xff] %vm450_vm2, %v1126_v60  ;;  %1562 = vst.msk [vmem:[%s2095_s7 + $0xa8] sm:$0xff] %vm450_vm2, %v1127_v61 }
 0x148   : > { %1564 = vst.msk [vmem:[%s2095_s7 + $0xb8] sm:$0xff] %vm450_vm2, %v1129_v62  ;;  %1563 = vst.msk [vmem:[%s2095_s7 + $0xb0] sm:$0xff] %vm450_vm2, %v1128_v22  ;;  %v1833_v18 = vpop.eup %1832 }
 0x149   : > { %v1835_v27 = vpop.eup %1834  ;;  %v1395_v55 = vadd.f32 1.0, %v1833_v18 }
 0x14a   : > { %v1837_v28 = vpop.eup %1836  ;;  %v1394_v30 = vadd.f32 1.0, %v1835_v27 }
 0x14b   : > { %v1839_v29 = vpop.eup %1838  ;;  %v1397_v43 = vadd.f32 1.0, %v1837_v28 }
 0x14c   : > { %v1396_v9 = vadd.f32 1.0, %v1839_v29 }
 0x14f   : > { %v1572_v26 = vld [vmem:[%s2078_s29 + $0xc8] sm:$0xff]  ;;  %v1571_v8 = vld [vmem:[%s2078_s29 + $0xc0] sm:$0xff]  ;;  %v1574_v12 = vld [vmem:[%s2078_s29 + $0xd8] sm:$0xff] }
 0x150   : > { %v1263_v50 = vmul.f32 %v1572_v26, %v1259_v17  ;;  %v1262_v20 = vmul.f32 %v1571_v8, %v1258_v11  ;;  %v1265_v52 = vmul.f32 %v1574_v12, %v1261_v21  ;;  %v1573_v14 = vld [vmem:[%s2078_s29 + $0xd0] sm:$0xff] }
 0x151   : > { %v1264_v15 = vmul.f32 %v1573_v14, %v1260_v13 }
 0x152   : > { %1575 = vst.msk [vmem:[%s2095_s7 + $0xc0] sm:$0xff] %vm450_vm2, %v1262_v20  ;;  %1576 = vst.msk [vmem:[%s2095_s7 + $0xc8] sm:$0xff] %vm450_vm2, %v1263_v50 }
 0x153   : > { %1578 = vst.msk [vmem:[%s2095_s7 + $0xd8] sm:$0xff] %vm450_vm2, %v1265_v52  ;;  %1577 = vst.msk [vmem:[%s2095_s7 + $0xd0] sm:$0xff] %vm450_vm2, %v1264_v15 }
 0x15a   : > { %v1585_v31 = vld [vmem:[%s2078_s29 + $0xe0] sm:$0xff]  ;;  %v1586_v33 = vld [vmem:[%s2078_s29 + $0xe8] sm:$0xff]  ;;  %v1588_v35 = vld [vmem:[%s2078_s29 + $0xf8] sm:$0xff] }
 0x15b   : > { %v1398_v34 = vmul.f32 %v1585_v31, %v1394_v30  ;;  %v1399_v37 = vmul.f32 %v1586_v33, %v1395_v55  ;;  %v1401_v38 = vmul.f32 %v1588_v35, %v1397_v43  ;;  %v1587_v16 = vld [vmem:[%s2078_s29 + $0xf0] sm:$0xff] }
 0x15c   : > { %v1400_v39 = vmul.f32 %v1587_v16, %v1396_v9 }
 0x15d   : > { %1589 = vst.msk [vmem:[%s2095_s7 + $0xe0] sm:$0xff] %vm450_vm2, %v1398_v34  ;;  %1590 = vst.msk [vmem:[%s2095_s7 + $0xe8] sm:$0xff] %vm450_vm2, %v1399_v37 }
 0x15e   : > { %1592 = vst.msk [vmem:[%s2095_s7 + $0xf8] sm:$0xff] %vm450_vm2, %v1401_v38  ;;  %1591 = vst.msk [vmem:[%s2095_s7 + $0xf0] sm:$0xff] %vm450_vm2, %v1400_v39 }
 0x15f PF: > { %s15_s18 = sadd.s32 1, %s1846_s18  }
 0x160   : > { %p12_p4 = scmp.ge.s32.totalorder %s15_s18, 4  }
 0x162   :  { %14 = sbr.rel (!%p12_p4) target bundleno = 1 (0x1), region = 94 }

// kernel: ste_forward.4
= control target key start
LH: loop header
LB: loop body
LE: loop exit
PB: predicated region body
PF: predicated region fallthrough
CT: control target
= control target key end

     0   :  { %s9818_s24 = smov 0   ;;  %s10968_s0 = inlined_call_operand.vmem [shape: f32[16,2,64], index: 0, kind: input, shape index: {}]   ;;  %s10969_s1 = inlined_call_operand.vmem [shape: f32[3,2,2], index: 1, kind: input, shape index: {}]   ;;  %s10970_s2 = inlined_call_operand.vmem [shape: f32[9,2,2], index: 2, kind: input, shape index: {}]   ;;  %s10971_s3 = inlined_call_operand.vmem [shape: f32[2,1], index: 3, kind: input, shape index: {}]   ;;  %s10972_s4 = inlined_call_operand.vmem [shape: f32[2,1], index: 4, kind: input, shape index: {}]   ;;  %s10973_s5 = inlined_call_operand.vmem [shape: f32[1,64], index: 5, kind: input, shape index: {}]   ;;  %s10974_s6 = inlined_call_operand.vmem [shape: f32[1,64], index: 6, kind: input, shape index: {}]   ;;  %s10975_s7 = inlined_call_operand.vmem [shape: f32[16,2,64], index: 7, kind: output, shape index: {}]  }
   0x1 LB: > { %s8607_s25 = sadd.s32 4294967295, %s9764_s24   ;;  %p8611_p0 = scmp.ge.s32.totalorder %s9764_s24, 1  ;;  %s9764_s24 = sphi %s9818_s24, %s17_s24  }
   0x2   : > { %p238_p1 = scmp.lt.s32.totalorder %s9764_s24, 3 }
   0x4   : > { %p239_p2 = pnand %p8611_p0, %p238_p1 }
   0x5   : > { %s8612_s26 = sshll.u32 (!%p239_p2), %s8607_s25, 3  ;;  %v462_v0 = vlaneseq (!%p239_p2)  ;;  %v9766_v1 = vmov (!%p239_p2), 0.0   ;;  %vm9767_vm0 = vmmov (!%p239_p2), 0   ;;  %vm282_vm1 = vcmask (!%p239_p2), 1041408   ;;  %v8617_v5 = vld [vmem:[%s10969_s1 + $0x4] sm:$0x3] (!%p239_p2) }
   0x6   : > { %242 = sbr.rel (%p239_p2) target bundleno = 2006 (0x7d6), region = 48  ;;  %9110 = vmatprep.subr.mxu1 (!%p239_p2), %v9766_v1  ;;  %p271_p3 = scmp.lt.s32.totalorder (!%p239_p2), %s8612_s26, 15  ;;  %9112 = vmatprep.mubr.msk.f32.mxu1 (!%p239_p2), %vm9767_vm0, %v9766_v1  ;;  %v9768_v2 = vmov (!%p239_p2), 1983009808   ;;  %vm283_vm2 = vcmask (!%p239_p2), 592898   ;;  %vm297_vm4 = vcmask (!%p239_p2), 15360  }
   0x7   : > { %9165 = vmatprep.subr.mxu0 (!%p239_p2), %v9766_v1  ;;  %9167 = vmatprep.mubr.msk.f32.mxu0 (!%p239_p2), %vm9767_vm0, %v9766_v1  ;;  %v460_v3 = vunpack.c.l.s4 (!%p239_p2), %v9768_v2  ;;  %v463_v4 = vshrl.u32 (!%p239_p2), %v462_v0, 7  ;;  %vm284_vm3 = vmor (!%p239_p2), %vm283_vm2, %vm282_vm1  ;;  %v1332_v6 = vld [vmem:[%s10969_s1] sm:$0x3] (!%p239_p2)  ;;  %s9769_s16 = smov (!%p239_p2), 119   ;;  %v8616_v17 = vld [vmem:[%s10969_s1 + $0x2] sm:$0x3] (!%p239_p2) }
   0x8   : > { %v8623_v7 = vld [vmem:[%s10973_s5] ss:$0 sm:$0xff] (!%p239_p2)  ;;  %285 = vst.msk [vmem:[#allocation2] sm:$0xf] (!%p239_p2), %vm284_vm3, %v9766_v1  ;;  %s9770_s19 = smov (!%p239_p2), 127   ;;  %s9771_s22 = smov (!%p239_p2), 121  }
   0x9   : > { %v461_v8 = vunpack.c.0.s8 (!%p239_p2), %v460_v3  ;;  %v8629_v15 = vld [vmem:[%s10974_s6] ss:$0 sm:$0xff] (!%p239_p2)  ;;  %v8652_v18 = vld [vmem:[%s10969_s1 + $0x2] sm:$0x3] (!%p239_p2)  ;;  %s9772_s23 = smov (!%p239_p2), 1   ;;  %s9773_s25 = smov (!%p239_p2), 7  }
   0xa   : > { %v8658_v20 = vld [vmem:[%s10969_s1 + $0x4] sm:$0x3] (!%p239_p2)  ;;  %vm451_vm5 = vcmask (!%p239_p2), 517120   ;;  %vm469_vm6 = vcmask (!%p239_p2), 973824   ;;  %vm672_vm7 = vcmask (!%p239_p2), 990208   ;;  %s9774_s30 = smov (!%p239_p2), 8  }
   0xb   : > { %v9858_v12 = vsub.s32 (!%p239_p2), %v461_v8, %v463_v4  ;;  %vm773_vm8 = vcmask (!%p239_p2), 1039360   ;;  %s9775_s8 = smov (!%p239_p2), 9   ;;  %s9776_s10 = smov (!%p239_p2), 120   ;;  %vm489_vm9 = vcmask (!%p239_p2), 64512   ;;  %vm579_vm10 = vcmask (!%p239_p2), 72704  }
   0xc   : > { %vm691_vm11 = vcmask (!%p239_p2), 56320   ;;  %vm792_vm12 = vcmask (!%p239_p2), 7168  }
   0xd   : > { %s10977_s26 = smov (!%p271_p3, %s8612_s26), 15  ;;  %v465_v14 = vrot.slane %v8623_v7, %v9858_v12  ;;  %v668_v16 = vrot.slane %v8629_v15, %v9858_v12 }
   0xe   : > { %s8613_s27 = sshll.u32 %s10977_s26, 1 }
   0xf   : > { %s9844_s9 = scalar_lea.vmem %s10968_s0, %s8613_s27  ;;  %466 = vrot.lane.b32.xlu0 %v465_v14, %s9769_s16  ;;  %770 = vrot.lane.b32.xlu1 %v465_v14, %s9770_s19 }
  0x10   : > { %v8618_v9 = vld [vmem:[%s9844_s9 + $0x2] sm:$0x3]  ;;  %v1333_v10 = vld [vmem:[%s9844_s9] sm:$0x3]  ;;  %v8659_v19 = vld [vmem:[%s9844_s9 + $0x4] sm:$0x3] }
  0x11   : > { %v292_v11 = vld [vmem:[%s9844_s9] sm:$0x3]  ;;  %9111 = vmatpush3.msk.msra.mxu1 %vm282_vm1, %v8618_v9  ;;  %9166 = vmatpush3.msk.msra.mxu0 %vm282_vm1, %v1333_v10  ;;  %v8653_v13 = vld [vmem:[%s9844_s9 + $0x2] sm:$0x3] }
  0x12   : > { %9113 = vmatmul.mubr.msk.f32.vlgmr.msra.gmra.mrb[0].mxu1 %vm297_vm4, %v8617_v5  ;;  %9115 = vmatprep.subr.mxu1 %v9766_v1 }
  0x13   : > { %9168 = vmatmul.mubr.msk.f32.vlgmr.msra.gmra.mrb[0].mxu0 %vm297_vm4, %v1332_v6  ;;  %9116 = vmatpush3.msk.msra.mxu1 %vm282_vm1, %v292_v11 }
  0x14   : > { %9117 = vmatprep.mubr.msk.f32.mxu1 %vm9767_vm0, %v9766_v1  ;;  %9170 = vmatprep.subr.mxu0 %v9766_v1 }
  0x15   : > { %9171 = vmatpush3.msk.msra.mxu0 %vm282_vm1, %v8653_v13  ;;  %9172 = vmatprep.mubr.msk.f32.mxu0 %vm9767_vm0, %v9766_v1 }
  0x16   : > { %9175 = vmatprep.subr.mxu0 %v9766_v1  ;;  %9120 = vmatprep.subr.mxu1 %v9766_v1 }
  0x17   : > { %669 = vrot.lane.b32.xlu0 %v668_v16, %s9771_s22  ;;  %950 = vrot.lane.b32.xlu1 %v668_v16, %s9772_s23 }
  0x1a   : > { %9118 = vmatmul.mubr.msk.f32.vlgmr.msra.gmra.mrb[0].mxu1 %vm297_vm4, %v8616_v17 }
  0x1b   : > { %9173 = vmatmul.mubr.msk.f32.vlgmr.msra.gmra.mrb[0].mxu0 %vm297_vm4, %v8652_v18  ;;  %9122 = vmatprep.mubr.msk.f32.mxu1 %vm9767_vm0, %v9766_v1 }
  0x1c   : > { %9176 = vmatpush3.msk.msra.mxu0 %vm282_vm1, %v8659_v19  ;;  %9177 = vmatprep.mubr.msk.f32.mxu0 %vm9767_vm0, %v9766_v1 }
  0x1d   : > { %9180 = vmatprep.subr.mxu0 %v9766_v1  ;;  %1043 = vrot.lane.b32.xlu0 %v465_v14, %s9773_s25 }
  0x23   : > { %9178 = vmatmul.mubr.msk.f32.vlgmr.msra.gmra.mrb[0].mxu0 %vm297_vm4, %v8658_v20  ;;  %v8624_v20 = vld [vmem:[%s10970_s2 + $0x2] sm:$0x3] }
  0x24   : > { %9182 = vmatprep.mubr.msk.f32.mxu0 %vm9767_vm0, %v9766_v1 }
  0x81   : > { %v467_v24 = vpop.permute.xlu0 %466  ;;  %v771_v42 = vpop.permute.xlu1 %770 }
  0x82   : > { %v468_v25 = vrot.slane %v467_v24, 6  ;;  %v772_v46 = vrot.slane %v771_v42, 6 }
  0x84   : > { %v9905_v28 = vsel %vm469_vm6, %v468_v25, %v467_v24  ;;  %v9925_v50 = vsel %vm773_vm8, %v772_v46, %v771_v42 }
  0x89   : > { %v670_v26 = vpop.permute.xlu0 %669  ;;  %v9945_v4 = vpop.permute.xlu1 %950 }
  0x8a   : > { %v671_v29 = vrot.slane %v670_v26, 6 }
  0x8c   : > { %v9915_v41 = vsel %vm672_vm7, %v671_v29, %v670_v26 }
  0x8f   : > { %v9948_v5 = vpop.permute.xlu0 %1043 }
  0xed   : > { %v446_v21 = vpop.f32.mrb[0].mxu1 }
  0xee   : > { %v450_v22 = vmax.f32 %v446_v21, 0.0  ;;  %v9119_v23 = vpop.f32.mrb[1].mxu1 }
  0xf0   : > { %452 = vst.msk [vmem:[#allocation2 + $0x2] sm:$0x3] %vm451_vm5, %v450_v22 }
  0xf6   : > { %v1561_v27 = vpop.f32.mrb[0].mxu0 }
  0xf7   : > { %v769_v30 = vld [vmem:[#allocation2] sm:$0xf]  ;;  %v1566_v34 = vmax.f32 %v1561_v27, 0.0  ;;  %v9179_v35 = vpop.f32.mrb[1].mxu0 }
  0xf8   : > { %v9907_v31 = vld.sshfl [vmem:[#allocation2 + $0x2] sm:$0x3 pattern:$0x76325410]  ;;  %v776_v53 = vmul.f32 %v9925_v50, %v769_v30 }
  0xf9   : > { %v9909_v32 = vld [vmem:[#allocation2 + $0x2] sm:$0x3] }
  0xfa   : > { %v453_v33 = vld [vmem:[#allocation2] sm:$0xf]  ;;  %v786_v57 = vrot.slane %v776_v53, %v9858_v12  ;;  %v953_v7 = vmul.f32 %v9945_v4, %v9909_v32  ;;  %v8633_v53 = vld [vmem:[%s10970_s2 + $0x6] sm:$0x3] }
  0xfb   : > { %v1042_v36 = vld [vmem:[#allocation2 + $0x2] sm:$0x3]  ;;  %v483_v38 = vrot.slane %v453_v33, %v9858_v12  ;;  %v472_v39 = vmul.f32 %v9905_v28, %v453_v33 }
  0xfc   : > { %v9911_v37 = vld [vmem:[#allocation2 + $0x2] sm:$0x3]  ;;  %v787_v61 = vcombine.high %v786_v57, %v786_v57  ;;  %v1046_v9 = vmul.f32 %v9948_v5, %v1042_v36  ;;  %v963_v10 = vrot.slane %v953_v7, %v9858_v12  ;;  %v8676_v7 = vld [vmem:[%s10970_s2 + $0xa] sm:$0x3] }
  0xfd   : > { %v656_v40 = vld [vmem:[#allocation2] sm:$0xf]  ;;  %485 = vrot.lane.b32.xlu1 %v483_v38, %s9774_s30  ;;  %v484_v43 = vcombine.high %v483_v38, %v483_v38  ;;  %v573_v44 = vrot.slane %v472_v39, %v9858_v12 }
  0xfe   : > { %1567 = vst.msk [vmem:[#allocation2 + $0x2] sm:$0x3] %vm451_vm5, %v1566_v34  ;;  %v675_v45 = vmul.f32 %v9915_v41, %v656_v40  ;;  %v1056_v14 = vrot.slane %v1046_v9, %v9858_v12  ;;  %v473_v34 = vld [vmem:[%s10970_s2] sm:$0x3]  ;;  %v8662_v40 = vld [vmem:[%s10970_s2 + $0x2] sm:$0x3] }
  0xff   : > { %487 = vrot.lane.b32.xlu0 %v484_v43, %s9774_s30  ;;  %v574_v47 = vcombine.high %v573_v44, %v573_v44  ;;  %v8645_v9 = vld [vmem:[%s10970_s2 + $0xe] sm:$0x3] }
 0x100   : > { %v685_v48 = vrot.slane %v675_v45, %v9858_v12 }
 0x101   : > { %1225 = vrot.lane.b32.xlu1 %v668_v16, %s9775_s8 }
 0x102   : > { %v686_v52 = vcombine.high %v685_v48, %v685_v48 }
 0x103   : > { %575 = vrot.lane.b32.xlu0 %v573_v44, %s9775_s8  ;;  %v8630_v44 = vld [vmem:[%s10970_s2 + $0x4] sm:$0x3] }
 0x105   : > { %v1568_v49 = vld [vmem:[#allocation2] sm:$0xf]  ;;  %577 = vrot.lane.b32.xlu1 %v574_v47, %s9775_s8 }
 0x106   : > { %v1579_v51 = vrot.slane %v1568_v49, %v9858_v12  ;;  %v1569_v55 = vmul.f32 %v1568_v49, %v9905_v28  ;;  %v1750_v56 = vld [vmem:[#allocation2] sm:$0xf] }
 0x107   : > { %687 = vrot.lane.b32.xlu0 %v685_v48, %s9773_s25  ;;  %v1751_v59 = vmul.f32 %v1750_v56, %v9915_v41  ;;  %v1843_v60 = vld [vmem:[#allocation2] sm:$0xf] }
 0x108   : > { %v1580_v54 = vcombine.high %v1579_v51, %v1579_v51  ;;  %v1668_v58 = vrot.slane %v1569_v55, %v9858_v12  ;;  %v1844_v0 = vmul.f32 %v1843_v60, %v9925_v50  ;;  %v9953_v8 = vld [vmem:[#allocation2 + $0x2] sm:$0x3]  ;;  %v1570_v49 = vld [vmem:[%s10970_s2] sm:$0x3] }
 0x109   : > { %689 = vrot.lane.b32.xlu1 %v686_v52, %s9773_s25  ;;  %v1760_v63 = vrot.slane %v1751_v59, %v9858_v12  ;;  %v2015_v11 = vmul.f32 %v9953_v8, %v9945_v4  ;;  %v2103_v13 = vld [vmem:[#allocation2 + $0x2] sm:$0x3] }
 0x10a   : > { %v1669_v62 = vcombine.high %v1668_v58, %v1668_v58  ;;  %v1853_v3 = vrot.slane %v1844_v0, %v9858_v12  ;;  %v2104_v16 = vmul.f32 %v2103_v13, %v9948_v5  ;;  %v2280_v23 = vld [vmem:[#allocation2 + $0x2] sm:$0x3]  ;;  %v8673_v0 = vld [vmem:[%s10970_s2 + $0x8] sm:$0x3] }
 0x10b   : > { %1581 = vrot.lane.b32.xlu0 %v1579_v51, %s9774_s30  ;;  %v1761_v2 = vcombine.high %v1760_v63, %v1760_v63  ;;  %v2024_v15 = vrot.slane %v2015_v11, %v9858_v12  ;;  %v8683_v36 = vld.sshfl [vmem:[#allocation2 + $0x2] sm:$0x3 pattern:$0x76325410]  ;;  %v8649_v11 = vld [vmem:[%s10970_s2 + $0x10] sm:$0x3] }
 0x10c   : > { %v1854_v6 = vcombine.high %v1853_v3, %v1853_v3  ;;  %v2113_v17 = vrot.slane %v2104_v16, %v9858_v12 }
 0x10d   : > { %1583 = vrot.lane.b32.xlu1 %v1580_v54, %s9774_s30 }
 0x10f   : > { %788 = vrot.lane.b32.xlu0 %v786_v57, %s9772_s23 }
 0x111   : > { %790 = vrot.lane.b32.xlu1 %v787_v61, %s9772_s23  ;;  %v8670_v61 = vld [vmem:[%s10970_s2 + $0x6] sm:$0x3] }
 0x113   : > { %1670 = vrot.lane.b32.xlu0 %v1668_v58, %s9775_s8  ;;  %v8667_v58 = vld [vmem:[%s10970_s2 + $0x4] sm:$0x3] }
 0x115   : > { %1672 = vrot.lane.b32.xlu1 %v1669_v62, %s9775_s8  ;;  %v8639_v62 = vld [vmem:[%s10970_s2 + $0xa] sm:$0x3] }
 0x117   : > { %1762 = vrot.lane.b32.xlu0 %v1760_v63, %s9773_s25 }
 0x119   : > { %1764 = vrot.lane.b32.xlu1 %v1761_v2, %s9773_s25  ;;  %v8642_v2 = vld [vmem:[%s10970_s2 + $0xc] sm:$0x3] }
 0x11b   : > { %1855 = vrot.lane.b32.xlu0 %v1853_v3, %s9772_s23 }
 0x11d   : > { %1857 = vrot.lane.b32.xlu1 %v1854_v6, %s9772_s23 }
 0x11f   : > { %964 = vrot.lane.b32.xlu0 %v963_v10, %s9770_s19  ;;  %v8679_v10 = vld [vmem:[%s10970_s2 + $0xc] sm:$0x3] }
 0x121   : > { %1057 = vrot.lane.b32.xlu1 %v1056_v14, %s9771_s22  ;;  %v8692_v14 = vld [vmem:[%s9844_s9 + $0x2] sm:$0x3] }
 0x123   : > { %1146 = vrot.lane.b32.xlu0 %v9907_v31, %s9776_s10 }
 0x125   : > { %2025 = vrot.lane.b32.xlu1 %v2024_v15, %s9770_s19  ;;  %v8682_v15 = vld [vmem:[%s10970_s2 + $0xe] sm:$0x3] }
 0x129   : > { %2114 = vrot.lane.b32.xlu1 %v2113_v17, %s9771_s22  ;;  %v2375_v17 = vld [vmem:[%s10969_s1] sm:$0x3] }
 0x16f   : > { %v486_v18 = vpop.permute.xlu1 %485 }
 0x171   : > { %v488_v19 = vpop.permute.xlu0 %487 }
 0x172   : > { %v490_v21 = vsel %vm489_vm9, %v486_v18, %v488_v19  ;;  %v8691_v18 = vld [vmem:[%s9844_s9 + $0x4] sm:$0x3] }
 0x173   : > { %v9975_v22 = vpop.permute.xlu1 %1225  ;;  %9121 = vmatpush3.msk.msra.mxu1 %vm282_vm1, %v490_v21  ;;  %v8690_v21 = vld [vmem:[%s10969_s1 + $0x2] sm:$0x3] }
 0x174   : > { %9123 = vmatmul.mubr.msk.f32.vlgmr.msra.gmra.mrb[2].mxu1 %vm297_vm4, %v8624_v20  ;;  %9125 = vmatprep.subr.mxu1 %v9766_v1  ;;  %v1228_v24 = vmul.f32 %v9975_v22, %v9911_v37  ;;  %v2281_v25 = vmul.f32 %v2280_v23, %v9975_v22  ;;  %v8686_v20 = vld [vmem:[%s10970_s2 + $0x10] sm:$0x3]  ;;  %v8731_v23 = vld [vmem:[%s9844_s9 + $0x4] sm:$0x3] }
 0x175   : > { %v576_v26 = vpop.permute.xlu0 %575  ;;  %9127 = vmatprep.mubr.msk.f32.mxu1 %vm9767_vm0, %v9766_v1 }
 0x176   : > { %v1238_v27 = vrot.slane %v1228_v24, %v9858_v12  ;;  %v2290_v29 = vrot.slane %v2281_v25, %v9858_v12  ;;  %v8698_v24 = vld [vmem:[%s9844_s9 + $0x6] sm:$0x3]  ;;  %v3418_v25 = vld [vmem:[%s10969_s1] sm:$0x3] }
 0x177   : > { %v578_v30 = vpop.permute.xlu1 %577 }
 0x178   : > { %v580_v31 = vsel %vm579_vm10, %v576_v26, %v578_v30  ;;  %1239 = vrot.lane.b32.xlu0 %v1238_v27, %s9769_s16  ;;  %2291 = vrot.lane.b32.xlu1 %v2290_v29, %s9769_s16  ;;  %v8730_v26 = vld [vmem:[%s9844_s9 + $0x6] sm:$0x3]  ;;  %v8697_v27 = vld [vmem:[%s10969_s1 + $0x4] sm:$0x3] }
 0x179   : > { %v688_v33 = vpop.permute.xlu0 %687  ;;  %9126 = vmatpush3.msk.msra.mxu1 %vm282_vm1, %v580_v31  ;;  %v8729_v29 = vld [vmem:[%s10969_s1 + $0x2] sm:$0x3]  ;;  %v8737_v30 = vld [vmem:[%s9844_s9 + $0x8] sm:$0x3]  ;;  %v8736_v31 = vld [vmem:[%s10969_s1 + $0x4] sm:$0x3] }
 0x17a   : > { %9130 = vmatprep.subr.mxu1 %v9766_v1 }
 0x17b   : > { %v690_v35 = vpop.permute.xlu1 %689 }
 0x17c   : > { %v692_v37 = vsel %vm691_vm11, %v688_v33, %v690_v35  ;;  %2202 = vrot.lane.b32.xlu0 %v8683_v36, %s9776_s10  ;;  %9128 = vmatmul.mubr.msk.f32.vlgmr.msra.gmra.mrb[2].mxu1 %vm297_vm4, %v473_v34 }
 0x17d   : > { %v1582_v38 = vpop.permute.xlu0 %1581  ;;  %9131 = vmatpush3.msk.msra.mxu1 %vm282_vm1, %v692_v37  ;;  %9132 = vmatprep.mubr.msk.f32.mxu1 %vm9767_vm0, %v9766_v1 }
 0x17e   : > { %9135 = vmatprep.subr.mxu1 %v9766_v1 }
 0x17f   : > { %v1584_v39 = vpop.permute.xlu1 %1583 }
 0x180   : > { %v1585_v42 = vsel %vm489_vm9, %v1582_v38, %v1584_v39 }
 0x181   : > { %v789_v43 = vpop.permute.xlu0 %788  ;;  %9181 = vmatpush3.msk.msra.mxu0 %vm282_vm1, %v1585_v42 }
 0x182   : > { %9183 = vmatmul.mubr.msk.f32.vlgmr.msra.gmra.mrb[2].mxu0 %vm297_vm4, %v8662_v40  ;;  %9185 = vmatprep.subr.mxu0 %v9766_v1 }
 0x183   : > { %v791_v45 = vpop.permute.xlu1 %790  ;;  %9187 = vmatprep.mubr.msk.f32.mxu0 %vm9767_vm0, %v9766_v1 }
 0x184   : > { %v793_v46 = vsel %vm792_vm12, %v789_v43, %v791_v45  ;;  %9133 = vmatmul.mubr.msk.f32.vlgmr.msra.gmra.mrb[2].mxu1 %vm297_vm4, %v8630_v44 }
 0x185   : > { %v1671_v47 = vpop.permute.xlu0 %1670  ;;  %9136 = vmatpush3.msk.msra.mxu1 %vm282_vm1, %v793_v46  ;;  %9137 = vmatprep.mubr.msk.f32.mxu1 %vm9767_vm0, %v9766_v1 }
 0x186   : > { %9140 = vmatprep.subr.mxu1 %v9766_v1 }
 0x187   : > { %v1673_v48 = vpop.permute.xlu1 %1672 }
 0x188   : > { %v1674_v51 = vsel %vm579_vm10, %v1671_v47, %v1673_v48 }
 0x189   : > { %v1763_v52 = vpop.permute.xlu0 %1762  ;;  %9186 = vmatpush3.msk.msra.mxu0 %vm282_vm1, %v1674_v51 }
 0x18a   : > { %9188 = vmatmul.mubr.msk.f32.vlgmr.msra.gmra.mrb[2].mxu0 %vm297_vm4, %v1570_v49  ;;  %9190 = vmatprep.subr.mxu0 %v9766_v1 }
 0x18b   : > { %v1765_v54 = vpop.permute.xlu1 %1764  ;;  %9192 = vmatprep.mubr.msk.f32.mxu0 %vm9767_vm0, %v9766_v1 }
 0x18c   : > { %v1766_v55 = vsel %vm691_vm11, %v1763_v52, %v1765_v54  ;;  %9138 = vmatmul.mubr.msk.f32.vlgmr.msra.gmra.mrb[2].mxu1 %vm297_vm4, %v8633_v53 }
 0x18d   : > { %9141 = vmatpush3.msk.msra.mxu1 %vm282_vm1, %v9909_v32  ;;  %9191 = vmatpush3.msk.msra.mxu0 %vm282_vm1, %v1766_v55  ;;  %v1856_v56 = vpop.permute.xlu0 %1855  ;;  %v8636_v32 = vld [vmem:[%s10970_s2 + $0x8] sm:$0x3] }
 0x18e   : > { %9142 = vmatprep.mubr.msk.f32.mxu1 %vm9767_vm0, %v9766_v1  ;;  %9145 = vmatprep.subr.mxu1 %v9766_v1 }
 0x18f   : > { %v1858_v57 = vpop.permute.xlu1 %1857  ;;  %9195 = vmatprep.subr.mxu0 %v9766_v1 }
 0x190   : > { %v1859_v59 = vsel %vm792_vm12, %v1856_v56, %v1858_v57 }
 0x191   : > { %v965_v60 = vpop.permute.xlu0 %964 }
 0x192   : > { %9193 = vmatmul.mubr.msk.f32.vlgmr.msra.gmra.mrb[2].mxu0 %vm297_vm4, %v8667_v58 }
 0x193   : > { %9196 = vmatpush3.msk.msra.mxu0 %vm282_vm1, %v1859_v59  ;;  %9197 = vmatprep.mubr.msk.f32.mxu0 %vm9767_vm0, %v9766_v1  ;;  %v1058_v63 = vpop.permute.xlu1 %1057 }
 0x194   : > { %9143 = vmatmul.mubr.msk.f32.vlgmr.msra.gmra.mrb[2].mxu1 %vm297_vm4, %v8636_v32  ;;  %9200 = vmatprep.subr.mxu0 %v9766_v1 }
 0x195   : > { %9146 = vmatpush3.msk.msra.mxu1 %vm282_vm1, %v965_v60  ;;  %9147 = vmatprep.mubr.msk.f32.mxu1 %vm9767_vm0, %v9766_v1  ;;  %v1147_v6 = vpop.permute.xlu0 %1146 }
 0x196   : > { %9150 = vmatprep.subr.mxu1 %v9766_v1 }
 0x197   : > { %v2026_v3 = vpop.permute.xlu1 %2025 }
 0x19a   : > { %9198 = vmatmul.mubr.msk.f32.vlgmr.msra.gmra.mrb[2].mxu0 %vm297_vm4, %v8670_v61 }
 0x19b   : > { %9201 = vmatpush3.msk.msra.mxu0 %vm282_vm1, %v9953_v8  ;;  %9202 = vmatprep.mubr.msk.f32.mxu0 %vm9767_vm0, %v9766_v1  ;;  %v2115_v8 = vpop.permute.xlu1 %2114 }
 0x19c   : > { %9148 = vmatmul.mubr.msk.f32.vlgmr.msra.gmra.mrb[2].mxu1 %vm297_vm4, %v8639_v62  ;;  %9205 = vmatprep.subr.mxu0 %v9766_v1 }
 0x19d   : > { %9151 = vmatpush3.msk.msra.mxu1 %vm282_vm1, %v1058_v63  ;;  %9152 = vmatprep.mubr.msk.f32.mxu1 %vm9767_vm0, %v9766_v1 }
 0x19e   : > { %9155 = vmatprep.subr.mxu1 %v9766_v1 }
 0x1a2   : > { %9203 = vmatmul.mubr.msk.f32.vlgmr.msra.gmra.mrb[2].mxu0 %vm297_vm4, %v8673_v0 }
 0x1a3   : > { %9206 = vmatpush3.msk.msra.mxu0 %vm282_vm1, %v2026_v3  ;;  %9207 = vmatprep.mubr.msk.f32.mxu0 %vm9767_vm0, %v9766_v1 }
 0x1a4   : > { %9153 = vmatmul.mubr.msk.f32.vlgmr.msra.gmra.mrb[2].mxu1 %vm297_vm4, %v8642_v2  ;;  %9210 = vmatprep.subr.mxu0 %v9766_v1 }
 0x1a5   : > { %9156 = vmatpush3.msk.msra.mxu1 %vm282_vm1, %v1147_v6  ;;  %9157 = vmatprep.mubr.msk.f32.mxu1 %vm9767_vm0, %v9766_v1 }
 0x1a6   : > { %9160 = vmatprep.subr.mxu1 %v9766_v1 }
 0x1aa   : > { %9208 = vmatmul.mubr.msk.f32.vlgmr.msra.gmra.mrb[2].mxu0 %vm297_vm4, %v8676_v7 }
 0x1ab   : > { %9211 = vmatpush3.msk.msra.mxu0 %vm282_vm1, %v2115_v8  ;;  %9212 = vmatprep.mubr.msk.f32.mxu0 %vm9767_vm0, %v9766_v1 }
 0x1ac   : > { %9158 = vmatmul.mubr.msk.f32.vlgmr.msra.gmra.mrb[2].mxu1 %vm297_vm4, %v8645_v9  ;;  %9215 = vmatprep.subr.mxu0 %v9766_v1 }
 0x1ad   : > { %9162 = vmatprep.mubr.msk.f32.mxu1 %vm9767_vm0, %v9766_v1 }
 0x1b2   : > { %9213 = vmatmul.mubr.msk.f32.vlgmr.msra.gmra.mrb[2].mxu0 %vm297_vm4, %v8679_v10 }
 0x1b3   : > { %9217 = vmatprep.mubr.msk.f32.mxu0 %vm9767_vm0, %v9766_v1 }
 0x1ea   : > { %v1240_v13 = vpop.permute.xlu0 %1239  ;;  %v2292_v19 = vpop.permute.xlu1 %2291 }
 0x1eb   : > { %9161 = vmatpush3.msk.msra.mxu1 %vm282_vm1, %v1240_v13 }
 0x1ec   : > { %9163 = vmatmul.mubr.msk.f32.vlgmr.msra.gmra.mrb[2].mxu1 %vm297_vm4, %v8649_v11  ;;  %9225 = vmatprep.subr.mxu1 %v9766_v1 }
 0x1ed   : > { %9226 = vmatpush3.msk.msra.mxu1 %vm282_vm1, %v8692_v14  ;;  %9227 = vmatprep.mubr.msk.f32.mxu1 %vm9767_vm0, %v9766_v1 }
 0x1ee   : > { %v2203_v16 = vpop.permute.xlu0 %2202  ;;  %9230 = vmatprep.subr.mxu1 %v9766_v1 }
 0x1ef   : > { %9216 = vmatpush3.msk.msra.mxu0 %vm282_vm1, %v2203_v16 }
 0x1f0   : > { %9218 = vmatmul.mubr.msk.f32.vlgmr.msra.gmra.mrb[2].mxu0 %vm297_vm4, %v8682_v15  ;;  %9220 = vmatprep.subr.mxu0 %v9766_v1 }
 0x1f1   : > { %9228 = vmatmul.mubr.msk.f32.vlgmr.msra.gmra.mrb[4].mxu1 %vm297_vm4, %v2375_v17  ;;  %9221 = vmatpush3.msk.msra.mxu0 %vm282_vm1, %v2292_v19 }
 0x1f2   : > { %9222 = vmatprep.mubr.msk.f32.mxu0 %vm9767_vm0, %v9766_v1  ;;  %9231 = vmatpush3.msk.msra.mxu1 %vm282_vm1, %v8691_v18 }
 0x1f3   : > { %9232 = vmatprep.mubr.msk.f32.mxu1 %vm9767_vm0, %v9766_v1  ;;  %9285 = vmatprep.subr.mxu0 %v9766_v1 }
 0x1f4   : > { %9235 = vmatprep.subr.mxu1 %v9766_v1 }
 0x1f8   : > { %9223 = vmatmul.mubr.msk.f32.vlgmr.msra.gmra.mrb[2].mxu0 %vm297_vm4, %v8686_v20 }
 0x1f9   : > { %9233 = vmatmul.mubr.msk.f32.vlgmr.msra.gmra.mrb[4].mxu1 %vm297_vm4, %v8690_v21  ;;  %9286 = vmatpush3.msk.msra.mxu0 %vm282_vm1, %v8731_v23 }
 0x1fa   : > { %9287 = vmatprep.mubr.msk.f32.mxu0 %vm9767_vm0, %v9766_v1  ;;  %9236 = vmatpush3.msk.msra.mxu1 %vm282_vm1, %v8698_v24 }
 0x1fb   : > { %9237 = vmatprep.mubr.msk.f32.mxu1 %vm9767_vm0, %v9766_v1  ;;  %9290 = vmatprep.subr.mxu0 %v9766_v1 }
 0x1fc   : > { %9288 = vmatmul.mubr.msk.f32.vlgmr.msra.gmra.mrb[4].mxu0 %vm297_vm4, %v3418_v25  ;;  %9240 = vmatprep.subr.mxu1 %v9766_v1 }
 0x1fd   : > { %9291 = vmatpush3.msk.msra.mxu0 %vm282_vm1, %v8730_v26  ;;  %9292 = vmatprep.mubr.msk.f32.mxu0 %vm9767_vm0, %v9766_v1 }
 0x1fe   : > { %9295 = vmatprep.subr.mxu0 %v9766_v1 }
 0x201   : > { %9238 = vmatmul.mubr.msk.f32.vlgmr.msra.gmra.mrb[4].mxu1 %vm297_vm4, %v8697_v27 }
 0x202   : > { %9242 = vmatprep.mubr.msk.f32.mxu1 %vm9767_vm0, %v9766_v1 }
 0x204   : > { %9293 = vmatmul.mubr.msk.f32.vlgmr.msra.gmra.mrb[4].mxu0 %vm297_vm4, %v8729_v29 }
 0x205   : > { %9296 = vmatpush3.msk.msra.mxu0 %vm282_vm1, %v8737_v30  ;;  %9297 = vmatprep.mubr.msk.f32.mxu0 %vm9767_vm0, %v9766_v1 }
 0x206   : > { %9300 = vmatprep.subr.mxu0 %v9766_v1 }
 0x20c   : > { %9298 = vmatmul.mubr.msk.f32.vlgmr.msra.gmra.mrb[4].mxu0 %vm297_vm4, %v8736_v31 }
 0x20d   : > { %9302 = vmatprep.mubr.msk.f32.mxu0 %vm9767_vm0, %v9766_v1 }
 0x2bf   : > { %v10189_v33 = vpop.f32.mrb[2].mxu1 }
 0x2c0   : > { %v9164_v34 = vpop.f32.mrb[3].mxu1 }
 0x2cb   : > { %v10191_v35 = vpop.f32.mrb[2].mxu0 }
 0x2cc   : > { %v9224_v36 = vpop.f32.mrb[3].mxu0 }
 0x2d4   : > { %v2604_v37 = vpop.f32.mrb[4].mxu1 }
 0x2d5   : > { %v2609_v38 = vmax.f32 %v2604_v37, 0.0  ;;  %v9239_v39 = vpop.f32.mrb[5].mxu1 }
 0x2d6   : > { %v8701_v39 = vld [vmem:[%s10970_s2 + $0x2] sm:$0x3] }
 0x2d7   : > { %2610 = vst.msk [vmem:[#allocation2 + $0x2] sm:$0x3] %vm451_vm5, %v2609_v38 }
 0x2de   : > { %v2886_v40 = vld [vmem:[#allocation2] sm:$0xf] }
 0x2df   : > { %v3647_v42 = vpop.f32.mrb[4].mxu0  ;;  %v2611_v43 = vld [vmem:[#allocation2] sm:$0xf]  ;;  %v2887_v61 = vmul.f32 %v2886_v40, %v9925_v50 }
 0x2e0   : > { %v2793_v44 = vld [vmem:[#allocation2] sm:$0xf]  ;;  %v3652_v47 = vmax.f32 %v3647_v42, 0.0  ;;  %v9299_v48 = vpop.f32.mrb[5].mxu0  ;;  %v2622_v49 = vrot.slane %v2611_v43, %v9858_v12  ;;  %v2612_v51 = vmul.f32 %v2611_v43, %v9905_v28 }
 0x2e1   : > { %v10194_v45 = vld [vmem:[#allocation2 + $0x2] sm:$0x3]  ;;  %v2794_v56 = vmul.f32 %v2793_v44, %v9915_v41  ;;  %v2896_v63 = vrot.slane %v2887_v61, %v9858_v12  ;;  %v2613_v48 = vld [vmem:[%s10970_s2] sm:$0x3] }
 0x2e2   : > { %v3146_v46 = vld [vmem:[#allocation2 + $0x2] sm:$0x3]  ;;  %2624 = vrot.lane.b32.xlu0 %v2622_v49, %s9774_s30  ;;  %v2623_v54 = vcombine.high %v2622_v49, %v2622_v49  ;;  %v2711_v55 = vrot.slane %v2612_v51, %v9858_v12  ;;  %v3058_v15 = vmul.f32 %v10194_v45, %v9945_v4 }
 0x2e3   : > { %v8722_v52 = vld.sshfl [vmem:[#allocation2 + $0x2] sm:$0x3 pattern:$0x76325410]  ;;  %v2803_v58 = vrot.slane %v2794_v56, %v9858_v12  ;;  %v2897_v3 = vcombine.high %v2896_v63, %v2896_v63  ;;  %v3147_v17 = vmul.f32 %v3146_v46, %v9948_v5 }
 0x2e4   : > { %v3323_v53 = vld [vmem:[#allocation2 + $0x2] sm:$0x3]  ;;  %2626 = vrot.lane.b32.xlu1 %v2623_v54, %s9774_s30  ;;  %v2712_v57 = vcombine.high %v2711_v55, %v2711_v55  ;;  %v3067_v19 = vrot.slane %v3058_v15, %v9858_v12 }
 0x2e5   : > { %3653 = vst.msk [vmem:[#allocation2 + $0x2] sm:$0x3] %vm451_vm5, %v3652_v47  ;;  %v2804_v32 = vcombine.high %v2803_v58, %v2803_v58  ;;  %v3156_v20 = vrot.slane %v3147_v17, %v9858_v12  ;;  %v3324_v24 = vmul.f32 %v3323_v53, %v9975_v22  ;;  %v8740_v53 = vld [vmem:[%s10970_s2 + $0x2] sm:$0x3] }
 0x2e6   : > { %2713 = vrot.lane.b32.xlu0 %v2711_v55, %s9775_s8 }
 0x2e7   : > { %v3333_v29 = vrot.slane %v3324_v24, %v9858_v12 }
 0x2e8   : > { %2715 = vrot.lane.b32.xlu1 %v2712_v57, %s9775_s8  ;;  %v8706_v57 = vld [vmem:[%s10970_s2 + $0x4] sm:$0x3] }
 0x2ea   : > { %2805 = vrot.lane.b32.xlu0 %v2803_v58, %s9773_s25 }
 0x2ec   : > { %v3654_v59 = vld [vmem:[#allocation2] sm:$0xf]  ;;  %2807 = vrot.lane.b32.xlu1 %v2804_v32, %s9773_s25 }
 0x2ed   : > { %v3665_v60 = vrot.slane %v3654_v59, %v9858_v12  ;;  %v3655_v0 = vmul.f32 %v3654_v59, %v9905_v28  ;;  %v3836_v2 = vld [vmem:[#allocation2] sm:$0xf] }
 0x2ee   : > { %v3837_v7 = vmul.f32 %v3836_v2, %v9915_v41  ;;  %v3929_v8 = vld [vmem:[#allocation2] sm:$0xf] }
 0x2ef   : > { %v3666_v62 = vcombine.high %v3665_v60, %v3665_v60  ;;  %3667 = vrot.lane.b32.xlu0 %v3665_v60, %s9774_s30  ;;  %v3754_v6 = vrot.slane %v3655_v0, %v9858_v12  ;;  %v3930_v11 = vmul.f32 %v3929_v8, %v9925_v50  ;;  %v10229_v18 = vld [vmem:[#allocation2 + $0x2] sm:$0x3]  ;;  %v3656_v60 = vld [vmem:[%s10970_s2] sm:$0x3]  ;;  %v8709_v0 = vld [vmem:[%s10970_s2 + $0x6] sm:$0x3] }
 0x2f0   : > { %v3846_v10 = vrot.slane %v3837_v7, %v9858_v12  ;;  %v4101_v21 = vmul.f32 %v10229_v18, %v9945_v4  ;;  %v4189_v23 = vld [vmem:[#allocation2 + $0x2] sm:$0x3]  ;;  %v8745_v7 = vld [vmem:[%s10970_s2 + $0x4] sm:$0x3] }
 0x2f1   : > { %3669 = vrot.lane.b32.xlu1 %v3666_v62, %s9774_s30  ;;  %v3755_v9 = vcombine.high %v3754_v6, %v3754_v6  ;;  %v3939_v14 = vrot.slane %v3930_v11, %v9858_v12  ;;  %v4190_v26 = vmul.f32 %v4189_v23, %v9948_v5  ;;  %v4366_v27 = vld [vmem:[#allocation2 + $0x2] sm:$0x3]  ;;  %v8715_v11 = vld [vmem:[%s10970_s2 + $0xa] sm:$0x3]  ;;  %v8757_v23 = vld [vmem:[%s10970_s2 + $0xc] sm:$0x3] }
 0x2f2   : > { %v3847_v13 = vcombine.high %v3846_v10, %v3846_v10  ;;  %v4110_v25 = vrot.slane %v4101_v21, %v9858_v12  ;;  %v4367_v31 = vmul.f32 %v4366_v27, %v9975_v22  ;;  %v8761_v34 = vld.sshfl [vmem:[#allocation2 + $0x2] sm:$0x3 pattern:$0x76325410]  ;;  %v8760_v27 = vld [vmem:[%s10970_s2 + $0xe] sm:$0x3] }
 0x2f3   : > { %2898 = vrot.lane.b32.xlu0 %v2896_v63, %s9772_s23  ;;  %v3940_v16 = vcombine.high %v3939_v14, %v3939_v14  ;;  %v4199_v30 = vrot.slane %v4190_v26, %v9858_v12  ;;  %v8770_v26 = vld [vmem:[%s9844_s9 + $0x6] sm:$0x3] }
 0x2f4   : > { %v4376_v36 = vrot.slane %v4367_v31, %v9858_v12 }
 0x2f5   : > { %2900 = vrot.lane.b32.xlu1 %v2897_v3, %s9772_s23 }
 0x2f7   : > { %3756 = vrot.lane.b32.xlu0 %v3754_v6, %s9775_s8 }
 0x2f9   : > { %3758 = vrot.lane.b32.xlu1 %v3755_v9, %s9775_s8 }
 0x2fb   : > { %3848 = vrot.lane.b32.xlu0 %v3846_v10, %s9773_s25  ;;  %v8748_v10 = vld [vmem:[%s10970_s2 + $0x6] sm:$0x3] }
 0x2fd   : > { %3850 = vrot.lane.b32.xlu1 %v3847_v13, %s9773_s25 }
 0x2ff   : > { %3941 = vrot.lane.b32.xlu0 %v3939_v14, %s9772_s23  ;;  %v8751_v14 = vld [vmem:[%s10970_s2 + $0x8] sm:$0x3] }
 0x301   : > { %3943 = vrot.lane.b32.xlu1 %v3940_v16, %s9772_s23  ;;  %v8718_v16 = vld [vmem:[%s10970_s2 + $0xc] sm:$0x3] }
 0x303   : > { %3068 = vrot.lane.b32.xlu0 %v3067_v19, %s9770_s19 }
 0x305   : > { %3157 = vrot.lane.b32.xlu1 %v3156_v20, %s9771_s22  ;;  %v8721_v20 = vld [vmem:[%s10970_s2 + $0xe] sm:$0x3] }
 0x307   : > { %3245 = vrot.lane.b32.xlu0 %v8722_v52, %s9776_s10 }
 0x309   : > { %4111 = vrot.lane.b32.xlu1 %v4110_v25, %s9770_s19  ;;  %v8725_v25 = vld [vmem:[%s10970_s2 + $0x10] sm:$0x3] }
 0x30b   : > { %3334 = vrot.lane.b32.xlu0 %v3333_v29, %s9769_s16  ;;  %v4461_v29 = vld [vmem:[%s10969_s1] sm:$0x3] }
 0x30d   : > { %4200 = vrot.lane.b32.xlu1 %v4199_v30, %s9771_s22  ;;  %v8769_v30 = vld [vmem:[%s9844_s9 + $0x8] sm:$0x3] }
 0x30f   : > { %4288 = vrot.lane.b32.xlu0 %v8761_v34, %s9776_s10  ;;  %v8764_v34 = vld [vmem:[%s10970_s2 + $0x10] sm:$0x3] }
 0x311   : > { %4377 = vrot.lane.b32.xlu1 %v4376_v36, %s9769_s16  ;;  %v8768_v36 = vld [vmem:[%s10969_s1 + $0x2] sm:$0x3] }
 0x354   : > { %v2625_v37 = vpop.permute.xlu0 %2624 }
 0x356   : > { %v2627_v38 = vpop.permute.xlu1 %2626 }
 0x357   : > { %v2628_v40 = vsel %vm489_vm9, %v2625_v37, %v2627_v38  ;;  %v8809_v37 = vld [vmem:[%s9844_s9 + $0x8] sm:$0x3]  ;;  %v8776_v38 = vld [vmem:[%s9844_s9 + $0xa] sm:$0x3] }
 0x358   : > { %9241 = vmatpush3.msk.msra.mxu1 %vm282_vm1, %v2628_v40  ;;  %v2714_v42 = vpop.permute.xlu0 %2713  ;;  %v8808_v40 = vld [vmem:[%s9844_s9 + $0xa] sm:$0x3] }
 0x359   : > { %9243 = vmatmul.mubr.msk.f32.vlgmr.msra.gmra.mrb[6].mxu1 %vm297_vm4, %v8701_v39  ;;  %9245 = vmatprep.subr.mxu1 %v9766_v1  ;;  %v5504_v39 = vld [vmem:[%s10969_s1] sm:$0x3] }
 0x35a   : > { %v2716_v43 = vpop.permute.xlu1 %2715  ;;  %9247 = vmatprep.mubr.msk.f32.mxu1 %vm9767_vm0, %v9766_v1 }
 0x35b   : > { %v2717_v44 = vsel %vm579_vm10, %v2714_v42, %v2716_v43  ;;  %v8775_v42 = vld [vmem:[%s10969_s1 + $0x4] sm:$0x3]  ;;  %v8807_v43 = vld [vmem:[%s10969_s1 + $0x2] sm:$0x3] }
 0x35c   : > { %v2806_v46 = vpop.permute.xlu0 %2805  ;;  %9246 = vmatpush3.msk.msra.mxu1 %vm282_vm1, %v2717_v44  ;;  %v8815_v44 = vld [vmem:[%s9844_s9 + $0xc] sm:$0x3] }
 0x35d   : > { %9250 = vmatprep.subr.mxu1 %v9766_v1 }
 0x35e   : > { %v2808_v47 = vpop.permute.xlu1 %2807 }
 0x35f   : > { %v2809_v49 = vsel %vm691_vm11, %v2806_v46, %v2808_v47  ;;  %v8814_v46 = vld [vmem:[%s10969_s1 + $0x4] sm:$0x3] }
 0x361   : > { %v3668_v51 = vpop.permute.xlu0 %3667  ;;  %9248 = vmatmul.mubr.msk.f32.vlgmr.msra.gmra.mrb[6].mxu1 %vm297_vm4, %v2613_v48 }
 0x362   : > { %9251 = vmatpush3.msk.msra.mxu1 %vm282_vm1, %v2809_v49  ;;  %9252 = vmatprep.mubr.msk.f32.mxu1 %vm9767_vm0, %v9766_v1 }
 0x363   : > { %v3670_v52 = vpop.permute.xlu1 %3669  ;;  %9255 = vmatprep.subr.mxu1 %v9766_v1 }
 0x364   : > { %v3671_v54 = vsel %vm489_vm9, %v3668_v51, %v3670_v52 }
 0x365   : > { %v2899_v55 = vpop.permute.xlu0 %2898  ;;  %9301 = vmatpush3.msk.msra.mxu0 %vm282_vm1, %v3671_v54 }
 0x366   : > { %9303 = vmatmul.mubr.msk.f32.vlgmr.msra.gmra.mrb[6].mxu0 %vm297_vm4, %v8740_v53  ;;  %9305 = vmatprep.subr.mxu0 %v9766_v1 }
 0x367   : > { %v2901_v56 = vpop.permute.xlu1 %2900  ;;  %9307 = vmatprep.mubr.msk.f32.mxu0 %vm9767_vm0, %v9766_v1 }
 0x368   : > { %v2902_v58 = vsel %vm792_vm12, %v2899_v55, %v2901_v56 }
 0x369   : > { %v3757_v59 = vpop.permute.xlu0 %3756  ;;  %9253 = vmatmul.mubr.msk.f32.vlgmr.msra.gmra.mrb[6].mxu1 %vm297_vm4, %v8706_v57 }
 0x36a   : > { %9256 = vmatpush3.msk.msra.mxu1 %vm282_vm1, %v2902_v58  ;;  %9257 = vmatprep.mubr.msk.f32.mxu1 %vm9767_vm0, %v9766_v1 }
 0x36b   : > { %v3759_v32 = vpop.permute.xlu1 %3758  ;;  %9260 = vmatprep.subr.mxu1 %v9766_v1 }
 0x36c   : > { %v3760_v61 = vsel %vm579_vm10, %v3757_v59, %v3759_v32 }
 0x36d   : > { %v3849_v62 = vpop.permute.xlu0 %3848  ;;  %9306 = vmatpush3.msk.msra.mxu0 %vm282_vm1, %v3760_v61 }
 0x36e   : > { %9308 = vmatmul.mubr.msk.f32.vlgmr.msra.gmra.mrb[6].mxu0 %vm297_vm4, %v3656_v60  ;;  %9310 = vmatprep.subr.mxu0 %v9766_v1 }
 0x36f   : > { %v3851_v63 = vpop.permute.xlu1 %3850  ;;  %9312 = vmatprep.mubr.msk.f32.mxu0 %vm9767_vm0, %v9766_v1 }
 0x370   : > { %v3852_v2 = vsel %vm691_vm11, %v3849_v62, %v3851_v63 }
 0x371   : > { %9311 = vmatpush3.msk.msra.mxu0 %vm282_vm1, %v3852_v2  ;;  %9258 = vmatmul.mubr.msk.f32.vlgmr.msra.gmra.mrb[6].mxu1 %vm297_vm4, %v8709_v0  ;;  %v3942_v3 = vpop.permute.xlu0 %3941 }
 0x372   : > { %9315 = vmatprep.subr.mxu0 %v9766_v1  ;;  %9261 = vmatpush3.msk.msra.mxu1 %vm282_vm1, %v10194_v45  ;;  %v8712_v45 = vld [vmem:[%s10970_s2 + $0x8] sm:$0x3] }
 0x373   : > { %v3944_v6 = vpop.permute.xlu1 %3943  ;;  %9262 = vmatprep.mubr.msk.f32.mxu1 %vm9767_vm0, %v9766_v1  ;;  %9265 = vmatprep.subr.mxu1 %v9766_v1 }
 0x374   : > { %v3945_v8 = vsel %vm792_vm12, %v3942_v3, %v3944_v6 }
 0x375   : > { %v3069_v9 = vpop.permute.xlu0 %3068 }
 0x376   : > { %9313 = vmatmul.mubr.msk.f32.vlgmr.msra.gmra.mrb[6].mxu0 %vm297_vm4, %v8745_v7 }
 0x377   : > { %9316 = vmatpush3.msk.msra.mxu0 %vm282_vm1, %v3945_v8  ;;  %9317 = vmatprep.mubr.msk.f32.mxu0 %vm9767_vm0, %v9766_v1  ;;  %v3158_v13 = vpop.permute.xlu1 %3157 }
 0x378   : > { %9320 = vmatprep.subr.mxu0 %v9766_v1 }
 0x379   : > { %9263 = vmatmul.mubr.msk.f32.vlgmr.msra.gmra.mrb[6].mxu1 %vm297_vm4, %v8712_v45  ;;  %v3246_v17 = vpop.permute.xlu0 %3245 }
 0x37a   : > { %9266 = vmatpush3.msk.msra.mxu1 %vm282_vm1, %v3069_v9  ;;  %9267 = vmatprep.mubr.msk.f32.mxu1 %vm9767_vm0, %v9766_v1 }
 0x37b   : > { %9270 = vmatprep.subr.mxu1 %v9766_v1  ;;  %v4112_v15 = vpop.permute.xlu1 %4111 }
 0x37d   : > { %v3335_v21 = vpop.permute.xlu0 %3334 }
 0x37e   : > { %9318 = vmatmul.mubr.msk.f32.vlgmr.msra.gmra.mrb[6].mxu0 %vm297_vm4, %v8748_v10 }
 0x37f   : > { %9321 = vmatpush3.msk.msra.mxu0 %vm282_vm1, %v10229_v18  ;;  %9322 = vmatprep.mubr.msk.f32.mxu0 %vm9767_vm0, %v9766_v1  ;;  %v8754_v18 = vld [vmem:[%s10970_s2 + $0xa] sm:$0x3]  ;;  %v4201_v19 = vpop.permute.xlu1 %4200 }
 0x380   : > { %9325 = vmatprep.subr.mxu0 %v9766_v1 }
 0x381   : > { %9268 = vmatmul.mubr.msk.f32.vlgmr.msra.gmra.mrb[6].mxu1 %vm297_vm4, %v8715_v11  ;;  %v4289_v24 = vpop.permute.xlu0 %4288 }
 0x382   : > { %9271 = vmatpush3.msk.msra.mxu1 %vm282_vm1, %v3158_v13  ;;  %9272 = vmatprep.mubr.msk.f32.mxu1 %vm9767_vm0, %v9766_v1 }
 0x383   : > { %9275 = vmatprep.subr.mxu1 %v9766_v1  ;;  %v4378_v31 = vpop.permute.xlu1 %4377 }
 0x386   : > { %9323 = vmatmul.mubr.msk.f32.vlgmr.msra.gmra.mrb[6].mxu0 %vm297_vm4, %v8751_v14 }
 0x387   : > { %9326 = vmatpush3.msk.msra.mxu0 %vm282_vm1, %v4112_v15  ;;  %9327 = vmatprep.mubr.msk.f32.mxu0 %vm9767_vm0, %v9766_v1 }
 0x388   : > { %9330 = vmatprep.subr.mxu0 %v9766_v1 }
 0x389   : > { %9273 = vmatmul.mubr.msk.f32.vlgmr.msra.gmra.mrb[6].mxu1 %vm297_vm4, %v8718_v16 }
 0x38a   : > { %9276 = vmatpush3.msk.msra.mxu1 %vm282_vm1, %v3246_v17  ;;  %9277 = vmatprep.mubr.msk.f32.mxu1 %vm9767_vm0, %v9766_v1 }
 0x38b   : > { %9280 = vmatprep.subr.mxu1 %v9766_v1 }
 0x38e   : > { %9328 = vmatmul.mubr.msk.f32.vlgmr.msra.gmra.mrb[6].mxu0 %vm297_vm4, %v8754_v18 }
 0x38f   : > { %9331 = vmatpush3.msk.msra.mxu0 %vm282_vm1, %v4201_v19  ;;  %9332 = vmatprep.mubr.msk.f32.mxu0 %vm9767_vm0, %v9766_v1 }
 0x390   : > { %9335 = vmatprep.subr.mxu0 %v9766_v1 }
 0x391   : > { %9278 = vmatmul.mubr.msk.f32.vlgmr.msra.gmra.mrb[6].mxu1 %vm297_vm4, %v8721_v20 }
 0x392   : > { %9281 = vmatpush3.msk.msra.mxu1 %vm282_vm1, %v3335_v21  ;;  %9282 = vmatprep.mubr.msk.f32.mxu1 %vm9767_vm0, %v9766_v1 }
 0x393   : > { %9345 = vmatprep.subr.mxu1 %v9766_v1 }
 0x396   : > { %9333 = vmatmul.mubr.msk.f32.vlgmr.msra.gmra.mrb[6].mxu0 %vm297_vm4, %v8757_v23 }
 0x397   : > { %9336 = vmatpush3.msk.msra.mxu0 %vm282_vm1, %v4289_v24  ;;  %9337 = vmatprep.mubr.msk.f32.mxu0 %vm9767_vm0, %v9766_v1 }
 0x398   : > { %9340 = vmatprep.subr.mxu0 %v9766_v1 }
 0x399   : > { %9283 = vmatmul.mubr.msk.f32.vlgmr.msra.gmra.mrb[6].mxu1 %vm297_vm4, %v8725_v25 }
 0x39a   : > { %9346 = vmatpush3.msk.msra.mxu1 %vm282_vm1, %v8770_v26  ;;  %9347 = vmatprep.mubr.msk.f32.mxu1 %vm9767_vm0, %v9766_v1 }
 0x39b   : > { %9350 = vmatprep.subr.mxu1 %v9766_v1 }
 0x39d   : > { %9348 = vmatmul.mubr.msk.f32.vlgmr.msra.gmra.mrb[8].mxu1 %vm297_vm4, %v4461_v29 }
 0x39e   : > { %9338 = vmatmul.mubr.msk.f32.vlgmr.msra.gmra.mrb[6].mxu0 %vm297_vm4, %v8760_v27  ;;  %9351 = vmatpush3.msk.msra.mxu1 %vm282_vm1, %v8769_v30 }
 0x39f   : > { %9341 = vmatpush3.msk.msra.mxu0 %vm282_vm1, %v4378_v31  ;;  %9342 = vmatprep.mubr.msk.f32.mxu0 %vm9767_vm0, %v9766_v1 }
 0x3a0   : > { %9352 = vmatprep.mubr.msk.f32.mxu1 %vm9767_vm0, %v9766_v1  ;;  %9405 = vmatprep.subr.mxu0 %v9766_v1 }
 0x3a1   : > { %9355 = vmatprep.subr.mxu1 %v9766_v1 }
 0x3a5   : > { %9353 = vmatmul.mubr.msk.f32.vlgmr.msra.gmra.mrb[8].mxu1 %vm297_vm4, %v8768_v36 }
 0x3a6   : > { %9343 = vmatmul.mubr.msk.f32.vlgmr.msra.gmra.mrb[6].mxu0 %vm297_vm4, %v8764_v34  ;;  %9356 = vmatpush3.msk.msra.mxu1 %vm282_vm1, %v8776_v38 }
 0x3a7   : > { %9406 = vmatpush3.msk.msra.mxu0 %vm282_vm1, %v8809_v37  ;;  %9407 = vmatprep.mubr.msk.f32.mxu0 %vm9767_vm0, %v9766_v1 }
 0x3a8   : > { %9357 = vmatprep.mubr.msk.f32.mxu1 %vm9767_vm0, %v9766_v1  ;;  %9410 = vmatprep.subr.mxu0 %v9766_v1 }
 0x3a9   : > { %9360 = vmatprep.subr.mxu1 %v9766_v1 }
 0x3aa   : > { %9408 = vmatmul.mubr.msk.f32.vlgmr.msra.gmra.mrb[8].mxu0 %vm297_vm4, %v5504_v39 }
 0x3ab   : > { %9411 = vmatpush3.msk.msra.mxu0 %vm282_vm1, %v8808_v40  ;;  %9412 = vmatprep.mubr.msk.f32.mxu0 %vm9767_vm0, %v9766_v1 }
 0x3ac   : > { %9415 = vmatprep.subr.mxu0 %v9766_v1 }
 0x3ad   : > { %9358 = vmatmul.mubr.msk.f32.vlgmr.msra.gmra.mrb[8].mxu1 %vm297_vm4, %v8775_v42 }
 0x3ae   : > { %9362 = vmatprep.mubr.msk.f32.mxu1 %vm9767_vm0, %v9766_v1 }
 0x3b2   : > { %9413 = vmatmul.mubr.msk.f32.vlgmr.msra.gmra.mrb[8].mxu0 %vm297_vm4, %v8807_v43 }
 0x3b3   : > { %9416 = vmatpush3.msk.msra.mxu0 %vm282_vm1, %v8815_v44  ;;  %9417 = vmatprep.mubr.msk.f32.mxu0 %vm9767_vm0, %v9766_v1 }
 0x3b4   : > { %9420 = vmatprep.subr.mxu0 %v9766_v1 }
 0x3ba   : > { %9418 = vmatmul.mubr.msk.f32.vlgmr.msra.gmra.mrb[8].mxu0 %vm297_vm4, %v8814_v46 }
 0x3bb   : > { %9422 = vmatprep.mubr.msk.f32.mxu0 %vm9767_vm0, %v9766_v1 }
 0x46c   : > { %v10459_v47 = vpop.f32.mrb[6].mxu1 }
 0x46d   : > { %v9284_v48 = vpop.f32.mrb[7].mxu1 }
 0x479   : > { %v10461_v49 = vpop.f32.mrb[6].mxu0 }
 0x47a   : > { %v9344_v51 = vpop.f32.mrb[7].mxu0 }
 0x480   : > { %v4690_v52 = vpop.f32.mrb[8].mxu1 }
 0x481   : > { %v4695_v53 = vmax.f32 %v4690_v52, 0.0  ;;  %v9359_v54 = vpop.f32.mrb[9].mxu1 }
 0x483   : > { %4696 = vst.msk [vmem:[#allocation2 + $0x2] sm:$0x3] %vm451_vm5, %v4695_v53 }
 0x48a   : > { %v4697_v55 = vld [vmem:[#allocation2] sm:$0xf] }
 0x48b   : > { %v4879_v56 = vld [vmem:[#allocation2] sm:$0xf]  ;;  %v4708_v57 = vrot.slane %v4697_v55, %v9858_v12  ;;  %v4698_v58 = vmul.f32 %v4697_v55, %v9905_v28 }
 0x48c   : > { %v4972_v32 = vld [vmem:[#allocation2] sm:$0xf]  ;;  %v4880_v0 = vmul.f32 %v4879_v56, %v9915_v41 }
 0x48d   : > { %v5733_v59 = vpop.f32.mrb[8].mxu0  ;;  %4710 = vrot.lane.b32.xlu0 %v4708_v57, %s9774_s30  ;;  %v4709_v62 = vcombine.high %v4708_v57, %v4708_v57  ;;  %v4797_v63 = vrot.slane %v4698_v58, %v9858_v12  ;;  %v10469_v2 = vld [vmem:[#allocation2 + $0x2] sm:$0x3]  ;;  %v4973_v10 = vmul.f32 %v4972_v32, %v9925_v50 }
 0x48e   : > { %v5738_v60 = vmax.f32 %v5733_v59, 0.0  ;;  %v9419_v61 = vpop.f32.mrb[9].mxu0  ;;  %v5232_v3 = vld [vmem:[#allocation2 + $0x2] sm:$0x3]  ;;  %v4889_v45 = vrot.slane %v4880_v0, %v9858_v12  ;;  %v5144_v29 = vmul.f32 %v10469_v2, %v9945_v4 }
 0x48f   : > { %v8800_v6 = vld.sshfl [vmem:[#allocation2 + $0x2] sm:$0x3 pattern:$0x76325410]  ;;  %4712 = vrot.lane.b32.xlu1 %v4709_v62, %s9774_s30  ;;  %v4798_v8 = vcombine.high %v4797_v63, %v4797_v63  ;;  %v4982_v15 = vrot.slane %v4973_v10, %v9858_v12  ;;  %v5233_v31 = vmul.f32 %v5232_v3, %v9948_v5  ;;  %v4699_v62 = vld [vmem:[%s10970_s2] sm:$0x3] }
 0x490   : > { %v5409_v7 = vld [vmem:[#allocation2 + $0x2] sm:$0x3]  ;;  %v4890_v9 = vcombine.high %v4889_v45, %v4889_v45  ;;  %v5153_v36 = vrot.slane %v5144_v29, %v9858_v12 }
 0x491   : > { %5739 = vst.msk [vmem:[#allocation2 + $0x2] sm:$0x3] %vm451_vm5, %v5738_v60  ;;  %4799 = vrot.lane.b32.xlu0 %v4797_v63, %s9775_s8  ;;  %v4983_v18 = vcombine.high %v4982_v15, %v4982_v15  ;;  %v5242_v37 = vrot.slane %v5233_v31, %v9858_v12  ;;  %v5410_v40 = vmul.f32 %v5409_v7, %v9975_v22  ;;  %v8779_v56 = vld [vmem:[%s10970_s2 + $0x2] sm:$0x3] }
 0x493   : > { %4801 = vrot.lane.b32.xlu1 %v4798_v8, %s9775_s8  ;;  %v5419_v46 = vrot.slane %v5410_v40, %v9858_v12 }
 0x495   : > { %4891 = vrot.lane.b32.xlu0 %v4889_v45, %s9773_s25 }
 0x497   : > { %4893 = vrot.lane.b32.xlu1 %v4890_v9, %s9773_s25  ;;  %v8784_v9 = vld [vmem:[%s10970_s2 + $0x4] sm:$0x3] }
 0x498   : > { %v5740_v11 = vld [vmem:[#allocation2] sm:$0xf] }
 0x499   : > { %v5751_v13 = vrot.slane %v5740_v11, %v9858_v12  ;;  %v5741_v16 = vmul.f32 %v5740_v11, %v9905_v28  ;;  %v5922_v17 = vld [vmem:[#allocation2] sm:$0xf] }
 0x49a   : > { %v5923_v20 = vmul.f32 %v5922_v17, %v9915_v41  ;;  %v6015_v21 = vld [vmem:[#allocation2] sm:$0xf] }
 0x49b   : > { %5753 = vrot.lane.b32.xlu0 %v5751_v13, %s9774_s30  ;;  %v5752_v14 = vcombine.high %v5751_v13, %v5751_v13  ;;  %v5840_v19 = vrot.slane %v5741_v16, %v9858_v12  ;;  %v6016_v25 = vmul.f32 %v6015_v21, %v9925_v50  ;;  %v10499_v34 = vld [vmem:[#allocation2 + $0x2] sm:$0x3] }
 0x49c   : > { %v5932_v24 = vrot.slane %v5923_v20, %v9858_v12  ;;  %v6187_v38 = vmul.f32 %v10499_v34, %v9945_v4  ;;  %v6275_v39 = vld [vmem:[#allocation2 + $0x2] sm:$0x3] }
 0x49d   : > { %5755 = vrot.lane.b32.xlu1 %v5752_v14, %s9774_s30  ;;  %v5841_v23 = vcombine.high %v5840_v19, %v5840_v19  ;;  %v6025_v27 = vrot.slane %v6016_v25, %v9858_v12  ;;  %v6276_v43 = vmul.f32 %v6275_v39, %v9948_v5  ;;  %v6452_v44 = vld [vmem:[#allocation2 + $0x2] sm:$0x3]  ;;  %v5742_v14 = vld [vmem:[%s10970_s2] sm:$0x3]  ;;  %v8799_v39 = vld [vmem:[%s10970_s2 + $0xe] sm:$0x3] }
 0x49e   : > { %v5933_v26 = vcombine.high %v5932_v24, %v5932_v24  ;;  %v6196_v42 = vrot.slane %v6187_v38, %v9858_v12  ;;  %v6453_v51 = vmul.f32 %v6452_v44, %v9975_v22  ;;  %v8839_v52 = vld.sshfl [vmem:[#allocation2 + $0x2] sm:$0x3 pattern:$0x76325410]  ;;  %v8803_v44 = vld [vmem:[%s10970_s2 + $0x10] sm:$0x3] }
 0x49f   : > { %4984 = vrot.lane.b32.xlu0 %v4982_v15, %s9772_s23  ;;  %v6026_v30 = vcombine.high %v6025_v27, %v6025_v27  ;;  %v6285_v48 = vrot.slane %v6276_v43, %v9858_v12 }
 0x4a0   : > { %v6462_v53 = vrot.slane %v6453_v51, %v9858_v12  ;;  %v6547_v51 = vld [vmem:[%s10969_s1] sm:$0x3] }
 0x4a1   : > { %4986 = vrot.lane.b32.xlu1 %v4983_v18, %s9772_s23  ;;  %v8787_v18 = vld [vmem:[%s10970_s2 + $0x6] sm:$0x3] }
 0x4a3   : > { %5842 = vrot.lane.b32.xlu0 %v5840_v19, %s9775_s8 }
 0x4a5   : > { %5844 = vrot.lane.b32.xlu1 %v5841_v23, %s9775_s8  ;;  %v8823_v23 = vld [vmem:[%s10970_s2 + $0x4] sm:$0x3] }
 0x4a7   : > { %5934 = vrot.lane.b32.xlu0 %v5932_v24, %s9773_s25 }
 0x4a9   : > { %5936 = vrot.lane.b32.xlu1 %v5933_v26, %s9773_s25  ;;  %v8826_v26 = vld [vmem:[%s10970_s2 + $0x6] sm:$0x3] }
 0x4ab   : > { %6027 = vrot.lane.b32.xlu0 %v6025_v27, %s9772_s23  ;;  %v8793_v27 = vld [vmem:[%s10970_s2 + $0xa] sm:$0x3] }
 0x4ad   : > { %6029 = vrot.lane.b32.xlu1 %v6026_v30, %s9772_s23  ;;  %v8829_v30 = vld [vmem:[%s10970_s2 + $0x8] sm:$0x3] }
 0x4af   : > { %5154 = vrot.lane.b32.xlu0 %v5153_v36, %s9770_s19 }
 0x4b1   : > { %5243 = vrot.lane.b32.xlu1 %v5242_v37, %s9771_s22  ;;  %v8832_v37 = vld [vmem:[%s10970_s2 + $0xa] sm:$0x3] }
 0x4b3   : > { %5331 = vrot.lane.b32.xlu0 %v8800_v6, %s9776_s10  ;;  %v8818_v6 = vld [vmem:[%s10970_s2 + $0x2] sm:$0x3] }
 0x4b5   : > { %6197 = vrot.lane.b32.xlu1 %v6196_v42, %s9770_s19  ;;  %v8835_v42 = vld [vmem:[%s10970_s2 + $0xc] sm:$0x3] }
 0x4b7   : > { %5420 = vrot.lane.b32.xlu0 %v5419_v46, %s9769_s16  ;;  %v8848_v46 = vld [vmem:[%s9844_s9 + $0xa] sm:$0x3] }
 0x4b9   : > { %6286 = vrot.lane.b32.xlu1 %v6285_v48, %s9771_s22  ;;  %v8838_v48 = vld [vmem:[%s10970_s2 + $0xe] sm:$0x3] }
 0x4bb   : > { %6374 = vrot.lane.b32.xlu0 %v8839_v52, %s9776_s10  ;;  %v8847_v52 = vld [vmem:[%s9844_s9 + $0xc] sm:$0x3] }
 0x4bd   : > { %6463 = vrot.lane.b32.xlu1 %v6462_v53, %s9769_s16 }
 0x4ff   : > { %v4711_v54 = vpop.permute.xlu0 %4710 }
 0x501   : > { %v4713_v55 = vpop.permute.xlu1 %4712 }
 0x502   : > { %v4714_v57 = vsel %vm489_vm9, %v4711_v54, %v4713_v55  ;;  %v8842_v54 = vld [vmem:[%s10970_s2 + $0x10] sm:$0x3]  ;;  %v8846_v55 = vld [vmem:[%s10969_s1 + $0x2] sm:$0x3] }
 0x503   : > { %9361 = vmatpush3.msk.msra.mxu1 %vm282_vm1, %v4714_v57  ;;  %v4800_v58 = vpop.permute.xlu0 %4799  ;;  %v8854_v57 = vld [vmem:[%s9844_s9 + $0xe] sm:$0x3] }
 0x504   : > { %9363 = vmatmul.mubr.msk.f32.vlgmr.msra.gmra.mrb[10].mxu1 %vm297_vm4, %v8779_v56  ;;  %9365 = vmatprep.subr.mxu1 %v9766_v1  ;;  %v8887_v56 = vld [vmem:[%s9844_s9 + $0xc] sm:$0x3] }
 0x505   : > { %v4802_v59 = vpop.permute.xlu1 %4801  ;;  %9367 = vmatprep.mubr.msk.f32.mxu1 %vm9767_vm0, %v9766_v1 }
 0x506   : > { %v4803_v32 = vsel %vm579_vm10, %v4800_v58, %v4802_v59  ;;  %v7590_v58 = vld [vmem:[%s10969_s1] sm:$0x3]  ;;  %v8886_v59 = vld [vmem:[%s9844_s9 + $0xe] sm:$0x3]  ;;  %s10933_s9 = scalar_lea.vmem %s10975_s7, %s8613_s27 }
 0x507   : > { %v4892_v60 = vpop.permute.xlu0 %4891  ;;  %9366 = vmatpush3.msk.msra.mxu1 %vm282_vm1, %v4803_v32  ;;  %v8853_v32 = vld [vmem:[%s10969_s1 + $0x4] sm:$0x3] }
 0x508   : > { %9370 = vmatprep.subr.mxu1 %v9766_v1 }
 0x509   : > { %v4894_v61 = vpop.permute.xlu1 %4893 }
 0x50a   : > { %v4895_v63 = vsel %vm691_vm11, %v4892_v60, %v4894_v61  ;;  %v8885_v60 = vld [vmem:[%s10969_s1 + $0x2] sm:$0x3]  ;;  %v9777_v61 = vmov 0  }
 0x50b   : > { %9756 = vset.pattern.permute.xlu0 %v9777_v61  ;;  %9757 = vset.pattern.permute.xlu1 %v9777_v61 }
 0x50c   : > { %9368 = vmatmul.mubr.msk.f32.vlgmr.msra.gmra.mrb[10].mxu1 %vm297_vm4, %v4699_v62 }
 0x50d   : > { %v5754_v0 = vpop.permute.xlu0 %5753  ;;  %9371 = vmatpush3.msk.msra.mxu1 %vm282_vm1, %v4895_v63  ;;  %9372 = vmatprep.mubr.msk.f32.mxu1 %vm9767_vm0, %v9766_v1 }
 0x50e   : > { %9375 = vmatprep.subr.mxu1 %v9766_v1 }
 0x50f   : > { %v5756_v3 = vpop.permute.xlu1 %5755 }
 0x510   : > { %v5757_v7 = vsel %vm489_vm9, %v5754_v0, %v5756_v3 }
 0x511   : > { %v4985_v8 = vpop.permute.xlu0 %4984  ;;  %9421 = vmatpush3.msk.msra.mxu0 %vm282_vm1, %v5757_v7 }
 0x512   : > { %9423 = vmatmul.mubr.msk.f32.vlgmr.msra.gmra.mrb[10].mxu0 %vm297_vm4, %v8818_v6  ;;  %9425 = vmatprep.subr.mxu0 %v9766_v1 }
 0x513   : > { %v4987_v45 = vpop.permute.xlu1 %4986  ;;  %9427 = vmatprep.mubr.msk.f32.mxu0 %vm9767_vm0, %v9766_v1 }
 0x514   : > { %v4988_v10 = vsel %vm792_vm12, %v4985_v8, %v4987_v45  ;;  %9373 = vmatmul.mubr.msk.f32.vlgmr.msra.gmra.mrb[10].mxu1 %vm297_vm4, %v8784_v9 }
 0x515   : > { %v5843_v11 = vpop.permute.xlu0 %5842  ;;  %9376 = vmatpush3.msk.msra.mxu1 %vm282_vm1, %v4988_v10  ;;  %9377 = vmatprep.mubr.msk.f32.mxu1 %vm9767_vm0, %v9766_v1 }
 0x516   : > { %9380 = vmatprep.subr.mxu1 %v9766_v1 }
 0x517   : > { %v5845_v13 = vpop.permute.xlu1 %5844 }
 0x518   : > { %v5846_v15 = vsel %vm579_vm10, %v5843_v11, %v5845_v13 }
 0x519   : > { %v5935_v16 = vpop.permute.xlu0 %5934  ;;  %9426 = vmatpush3.msk.msra.mxu0 %vm282_vm1, %v5846_v15 }
 0x51a   : > { %9428 = vmatmul.mubr.msk.f32.vlgmr.msra.gmra.mrb[10].mxu0 %vm297_vm4, %v5742_v14  ;;  %9430 = vmatprep.subr.mxu0 %v9766_v1 }
 0x51b   : > { %v5937_v17 = vpop.permute.xlu1 %5936  ;;  %9432 = vmatprep.mubr.msk.f32.mxu0 %vm9767_vm0, %v9766_v1 }
 0x51c   : > { %v5938_v19 = vsel %vm691_vm11, %v5935_v16, %v5937_v17  ;;  %9378 = vmatmul.mubr.msk.f32.vlgmr.msra.gmra.mrb[10].mxu1 %vm297_vm4, %v8787_v18 }
 0x51d   : > { %9431 = vmatpush3.msk.msra.mxu0 %vm282_vm1, %v5938_v19  ;;  %v6028_v20 = vpop.permute.xlu0 %6027  ;;  %9381 = vmatpush3.msk.msra.mxu1 %vm282_vm1, %v10469_v2  ;;  %v8790_v2 = vld [vmem:[%s10970_s2 + $0x8] sm:$0x3] }
 0x51e   : > { %9435 = vmatprep.subr.mxu0 %v9766_v1  ;;  %9382 = vmatprep.mubr.msk.f32.mxu1 %vm9767_vm0, %v9766_v1 }
 0x51f   : > { %v6030_v21 = vpop.permute.xlu1 %6029  ;;  %9385 = vmatprep.subr.mxu1 %v9766_v1 }
 0x520   : > { %v6031_v24 = vsel %vm792_vm12, %v6028_v20, %v6030_v21 }
 0x521   : > { %v5155_v25 = vpop.permute.xlu0 %5154 }
 0x522   : > { %9433 = vmatmul.mubr.msk.f32.vlgmr.msra.gmra.mrb[10].mxu0 %vm297_vm4, %v8823_v23 }
 0x523   : > { %9436 = vmatpush3.msk.msra.mxu0 %vm282_vm1, %v6031_v24  ;;  %9437 = vmatprep.mubr.msk.f32.mxu0 %vm9767_vm0, %v9766_v1  ;;  %v5244_v29 = vpop.permute.xlu1 %5243 }
 0x524   : > { %9440 = vmatprep.subr.mxu0 %v9766_v1  ;;  %9383 = vmatmul.mubr.msk.f32.vlgmr.msra.gmra.mrb[10].mxu1 %vm297_vm4, %v8790_v2 }
 0x525   : > { %9386 = vmatpush3.msk.msra.mxu1 %vm282_vm1, %v5155_v25  ;;  %9387 = vmatprep.mubr.msk.f32.mxu1 %vm9767_vm0, %v9766_v1  ;;  %v5332_v36 = vpop.permute.xlu0 %5331 }
 0x526   : > { %9390 = vmatprep.subr.mxu1 %v9766_v1 }
 0x527   : > { %v6198_v31 = vpop.permute.xlu1 %6197 }
 0x529   : > { %v5421_v40 = vpop.permute.xlu0 %5420 }
 0x52a   : > { %9438 = vmatmul.mubr.msk.f32.vlgmr.msra.gmra.mrb[10].mxu0 %vm297_vm4, %v8826_v26 }
 0x52b   : > { %9441 = vmatpush3.msk.msra.mxu0 %vm282_vm1, %v10499_v34  ;;  %9442 = vmatprep.mubr.msk.f32.mxu0 %vm9767_vm0, %v9766_v1  ;;  %v8796_v34 = vld [vmem:[%s10970_s2 + $0xc] sm:$0x3]  ;;  %v6287_v38 = vpop.permute.xlu1 %6286 }
 0x52c   : > { %9445 = vmatprep.subr.mxu0 %v9766_v1  ;;  %9388 = vmatmul.mubr.msk.f32.vlgmr.msra.gmra.mrb[10].mxu1 %vm297_vm4, %v8793_v27 }
 0x52d   : > { %9391 = vmatpush3.msk.msra.mxu1 %vm282_vm1, %v5244_v29  ;;  %9392 = vmatprep.mubr.msk.f32.mxu1 %vm9767_vm0, %v9766_v1  ;;  %v6375_v43 = vpop.permute.xlu0 %6374 }
 0x52e   : > { %9395 = vmatprep.subr.mxu1 %v9766_v1 }
 0x52f   : > { %v6464_v53 = vpop.permute.xlu1 %6463 }
 0x532   : > { %9443 = vmatmul.mubr.msk.f32.vlgmr.msra.gmra.mrb[10].mxu0 %vm297_vm4, %v8829_v30 }
 0x533   : > { %9446 = vmatpush3.msk.msra.mxu0 %vm282_vm1, %v6198_v31  ;;  %9447 = vmatprep.mubr.msk.f32.mxu0 %vm9767_vm0, %v9766_v1 }
 0x534   : > { %9450 = vmatprep.subr.mxu0 %v9766_v1  ;;  %9393 = vmatmul.mubr.msk.f32.vlgmr.msra.gmra.mrb[10].mxu1 %vm297_vm4, %v8796_v34 }
 0x535   : > { %9396 = vmatpush3.msk.msra.mxu1 %vm282_vm1, %v5332_v36  ;;  %9397 = vmatprep.mubr.msk.f32.mxu1 %vm9767_vm0, %v9766_v1 }
 0x536   : > { %9400 = vmatprep.subr.mxu1 %v9766_v1 }
 0x53a   : > { %9448 = vmatmul.mubr.msk.f32.vlgmr.msra.gmra.mrb[10].mxu0 %vm297_vm4, %v8832_v37 }
 0x53b   : > { %9451 = vmatpush3.msk.msra.mxu0 %vm282_vm1, %v6287_v38  ;;  %9452 = vmatprep.mubr.msk.f32.mxu0 %vm9767_vm0, %v9766_v1 }
 0x53c   : > { %9455 = vmatprep.subr.mxu0 %v9766_v1  ;;  %9398 = vmatmul.mubr.msk.f32.vlgmr.msra.gmra.mrb[10].mxu1 %vm297_vm4, %v8799_v39 }
 0x53d   : > { %9401 = vmatpush3.msk.msra.mxu1 %vm282_vm1, %v5421_v40  ;;  %9402 = vmatprep.mubr.msk.f32.mxu1 %vm9767_vm0, %v9766_v1 }
 0x53e   : > { %9465 = vmatprep.subr.mxu1 %v9766_v1 }
 0x542   : > { %9453 = vmatmul.mubr.msk.f32.vlgmr.msra.gmra.mrb[10].mxu0 %vm297_vm4, %v8835_v42 }
 0x543   : > { %9456 = vmatpush3.msk.msra.mxu0 %vm282_vm1, %v6375_v43  ;;  %9457 = vmatprep.mubr.msk.f32.mxu0 %vm9767_vm0, %v9766_v1 }
 0x544   : > { %9460 = vmatprep.subr.mxu0 %v9766_v1  ;;  %9403 = vmatmul.mubr.msk.f32.vlgmr.msra.gmra.mrb[10].mxu1 %vm297_vm4, %v8803_v44 }
 0x545   : > { %9466 = vmatpush3.msk.msra.mxu1 %vm282_vm1, %v8848_v46  ;;  %9467 = vmatprep.mubr.msk.f32.mxu1 %vm9767_vm0, %v9766_v1 }
 0x546   : > { %9470 = vmatprep.subr.mxu1 %v9766_v1 }
 0x548   : > { %9468 = vmatmul.mubr.msk.f32.vlgmr.msra.gmra.mrb[12].mxu1 %vm297_vm4, %v6547_v51 }
 0x549   : > { %9471 = vmatpush3.msk.msra.mxu1 %vm282_vm1, %v8847_v52  ;;  %9472 = vmatprep.mubr.msk.f32.mxu1 %vm9767_vm0, %v9766_v1 }
 0x54a   : > { %9458 = vmatmul.mubr.msk.f32.vlgmr.msra.gmra.mrb[10].mxu0 %vm297_vm4, %v8838_v48  ;;  %9475 = vmatprep.subr.mxu1 %v9766_v1 }
 0x54b   : > { %9461 = vmatpush3.msk.msra.mxu0 %vm282_vm1, %v6464_v53  ;;  %9462 = vmatprep.mubr.msk.f32.mxu0 %vm9767_vm0, %v9766_v1 }
 0x54c   : > { %9525 = vmatprep.subr.mxu0 %v9766_v1 }
 0x550   : > { %9473 = vmatmul.mubr.msk.f32.vlgmr.msra.gmra.mrb[12].mxu1 %vm297_vm4, %v8846_v55 }
 0x551   : > { %9476 = vmatpush3.msk.msra.mxu1 %vm282_vm1, %v8854_v57  ;;  %9477 = vmatprep.mubr.msk.f32.mxu1 %vm9767_vm0, %v9766_v1 }
 0x552   : > { %9463 = vmatmul.mubr.msk.f32.vlgmr.msra.gmra.mrb[10].mxu0 %vm297_vm4, %v8842_v54  ;;  %9480 = vmatprep.subr.mxu1 %v9766_v1 }
 0x553   : > { %9526 = vmatpush3.msk.msra.mxu0 %vm282_vm1, %v8887_v56  ;;  %9527 = vmatprep.mubr.msk.f32.mxu0 %vm9767_vm0, %v9766_v1 }
 0x554   : > { %9530 = vmatprep.subr.mxu0 %v9766_v1 }
 0x556   : > { %9528 = vmatmul.mubr.msk.f32.vlgmr.msra.gmra.mrb[12].mxu0 %vm297_vm4, %v7590_v58 }
 0x557   : > { %9531 = vmatpush3.msk.msra.mxu0 %vm282_vm1, %v8886_v59  ;;  %9532 = vmatprep.mubr.msk.f32.mxu0 %vm9767_vm0, %v9766_v1 }
 0x558   : > { %9535 = vmatprep.subr.mxu0 %v9766_v1  ;;  %9478 = vmatmul.mubr.msk.f32.vlgmr.msra.gmra.mrb[12].mxu1 %vm297_vm4, %v8853_v32 }
 0x559   : > { %9482 = vmatprep.mubr.msk.f32.mxu1 %vm9767_vm0, %v9766_v1 }
 0x55e   : > { %9533 = vmatmul.mubr.msk.f32.vlgmr.msra.gmra.mrb[12].mxu0 %vm297_vm4, %v8885_v60 }
 0x55f   : > { %9537 = vmatprep.mubr.msk.f32.mxu0 %vm9767_vm0, %v9766_v1 }
 0x617   : > { %v10720_v62 = vpop.f32.mrb[10].mxu1 }
 0x618   : > { %v9404_v63 = vpop.f32.mrb[11].mxu1 }
 0x625   : > { %v10722_v0 = vpop.f32.mrb[10].mxu0 }
 0x626   : > { %v9464_v3 = vpop.f32.mrb[11].mxu0 }
 0x627   : > { %v288_v3 = vld [vmem:[%s10971_s3] sm:$0x3] }
 0x62b   : > { %v6776_v6 = vpop.f32.mrb[12].mxu1 }
 0x62c   : > { %v6781_v7 = vmax.f32 %v6776_v6, 0.0  ;;  %v9479_v8 = vpop.f32.mrb[13].mxu1  ;;  %v289_v6 = vld [vmem:[%s10972_s4] sm:$0x3] }
 0x62d   : > { %v8857_v8 = vld [vmem:[%s10970_s2 + $0x2] sm:$0x3] }
 0x62e   : > { %6782 = vst.msk [vmem:[#allocation2 + $0x2] sm:$0x3] %vm451_vm5, %v6781_v7 }
 0x631   : > { %v7740_v45 = vpop.f32.mrb[12].mxu0 }
 0x632   : > { %v9534_v9 = vpop.f32.mrb[13].mxu0  ;;  %v7744_v10 = vmax.f32 %v7740_v45, 0.0 }
 0x635   : > { %v6783_v11 = vld [vmem:[#allocation2] sm:$0xf] }
 0x636   : > { %v6965_v13 = vld [vmem:[#allocation2] sm:$0xf]  ;;  %v6794_v15 = vrot.slane %v6783_v11, %v9858_v12  ;;  %v6784_v21 = vmul.f32 %v6783_v11, %v9905_v28 }
 0x637   : > { %v7058_v14 = vld [vmem:[#allocation2] sm:$0xf]  ;;  %v6966_v30 = vmul.f32 %v6965_v13, %v9915_v41 }
 0x638   : > { %v10726_v16 = vld [vmem:[#allocation2 + $0x2] sm:$0x3]  ;;  %6796 = vrot.lane.b32.xlu0 %v6794_v15, %s9774_s30  ;;  %v6795_v20 = vcombine.high %v6794_v15, %v6794_v15  ;;  %v6883_v25 = vrot.slane %v6784_v21, %v9858_v12  ;;  %v7059_v39 = vmul.f32 %v7058_v14, %v9925_v50  ;;  %v6785_v15 = vld [vmem:[%s10970_s2] sm:$0x3] }
 0x639   : > { %v7318_v17 = vld [vmem:[#allocation2 + $0x2] sm:$0x3]  ;;  %v6975_v36 = vrot.slane %v6966_v30, %v9858_v12  ;;  %v7230_v51 = vmul.f32 %v10726_v16, %v9945_v4 }
 0x63a   : > { %v7495_v18 = vld [vmem:[#allocation2 + $0x2] sm:$0x3]  ;;  %6798 = vrot.lane.b32.xlu1 %v6795_v20, %s9774_s30  ;;  %v6884_v27 = vcombine.high %v6883_v25, %v6883_v25  ;;  %v7068_v43 = vrot.slane %v7059_v39, %v9858_v12  ;;  %v7319_v55 = vmul.f32 %v7318_v17, %v9948_v5  ;;  %v7748_v20 = vld [vmem:[%s10970_s2] sm:$0x3]  ;;  %v8900_v39 = vld [vmem:[%s10970_s2 + $0x6] sm:$0x3] }
 0x63b   : > { %v8878_v19 = vld.sshfl [vmem:[#allocation2 + $0x2] sm:$0x3 pattern:$0x76325410]  ;;  %v7239_v54 = vrot.slane %v7230_v51, %v9858_v12  ;;  %v7496_v32 = vmul.f32 %v7495_v18, %v9975_v22 }
 0x63c   : > { %7745 = vst.msk [vmem:[#allocation2 + $0x2] sm:$0x3] %vm451_vm5, %v7744_v10  ;;  %v7328_v58 = vrot.slane %v7319_v55, %v9858_v12  ;;  %v8892_v10 = vld [vmem:[%s10970_s2 + $0x2] sm:$0x3] }
 0x643   : > { %v7746_v23 = vld [vmem:[#allocation2] sm:$0xf] }
 0x644   : > { %v7757_v24 = vrot.slane %v7746_v23, %v9858_v12  ;;  %v7747_v26 = vmul.f32 %v7746_v23, %v9905_v28  ;;  %v7928_v31 = vld [vmem:[#allocation2] sm:$0xf]  ;;  %v6976_v28 = vcombine.high %v6975_v36, %v6975_v36 }
 0x645   : > { %v7929_v37 = vmul.f32 %v7928_v31, %v9915_v41  ;;  %v8021_v40 = vld [vmem:[#allocation2] sm:$0xf]  ;;  %v7069_v41 = vcombine.high %v7068_v43, %v7068_v43 }
 0x646   : > { %7759 = vrot.lane.b32.xlu0 %v7757_v24, %s9774_s30  ;;  %v7758_v2 = vcombine.high %v7757_v24, %v7757_v24  ;;  %v7846_v29 = vrot.slane %v7747_v26, %v9858_v12  ;;  %v8022_v44 = vmul.f32 %v8021_v40, %v9925_v50  ;;  %v10755_v48 = vld [vmem:[#allocation2 + $0x2] sm:$0x3] }
 0x647   : > { %v7938_v38 = vrot.slane %v7929_v37, %v9858_v12  ;;  %v8193_v50 = vmul.f32 %v10755_v48, %v9945_v4  ;;  %v8281_v53 = vld [vmem:[#allocation2 + $0x2] sm:$0x3] }
 0x648   : > { %7761 = vrot.lane.b32.xlu1 %v7758_v2, %s9774_s30  ;;  %v7847_v34 = vcombine.high %v7846_v29, %v7846_v29  ;;  %v8031_v46 = vrot.slane %v8022_v44, %v9858_v12  ;;  %v8282_v57 = vmul.f32 %v8281_v53, %v9948_v5  ;;  %v8458_v59 = vld [vmem:[#allocation2 + $0x2] sm:$0x3]  ;;  %v7505_v5 = vrot.slane %v7496_v32, %v9858_v12  ;;  %v8862_v2 = vld [vmem:[%s10970_s2 + $0x4] sm:$0x3] }
 0x649   : > { %v7939_v42 = vcombine.high %v7938_v38, %v7938_v38  ;;  %v8202_v56 = vrot.slane %v8193_v50, %v9858_v12  ;;  %v8459_v60 = vmul.f32 %v8458_v59, %v9975_v22  ;;  %v8913_v61 = vld.sshfl [vmem:[#allocation2 + $0x2] sm:$0x3 pattern:$0x76325410] }
 0x64a   : > { %6885 = vrot.lane.b32.xlu0 %v6883_v25, %s9775_s8  ;;  %v8032_v52 = vcombine.high %v8031_v46, %v8031_v46  ;;  %v8291_v4 = vrot.slane %v8282_v57, %v9858_v12 }
 0x64b   : > { %v8468_v63 = vrot.slane %v8459_v60, %v9858_v12 }
 0x64c   : > { %6887 = vrot.lane.b32.xlu1 %v6884_v27, %s9775_s8 }
 0x64e   : > { %7848 = vrot.lane.b32.xlu0 %v7846_v29, %s9775_s8  ;;  %v8897_v29 = vld [vmem:[%s10970_s2 + $0x4] sm:$0x3] }
 0x650   : > { %7850 = vrot.lane.b32.xlu1 %v7847_v34, %s9775_s8 }
 0x652   : > { %6977 = vrot.lane.b32.xlu0 %v6975_v36, %s9773_s25  ;;  %v8865_v36 = vld [vmem:[%s10970_s2 + $0x6] sm:$0x3] }
 0x654   : > { %6979 = vrot.lane.b32.xlu1 %v6976_v28, %s9773_s25 }
 0x656   : > { %7940 = vrot.lane.b32.xlu0 %v7938_v38, %s9773_s25 }
 0x658   : > { %7942 = vrot.lane.b32.xlu1 %v7939_v42, %s9773_s25 }
 0x65a   : > { %7070 = vrot.lane.b32.xlu0 %v7068_v43, %s9772_s23  ;;  %v8903_v43 = vld [vmem:[%s10970_s2 + $0x8] sm:$0x3] }
 0x65c   : > { %7072 = vrot.lane.b32.xlu1 %v7069_v41, %s9772_s23  ;;  %v8871_v41 = vld [vmem:[%s10970_s2 + $0xa] sm:$0x3] }
 0x65e   : > { %8033 = vrot.lane.b32.xlu0 %v8031_v46, %s9772_s23 }
 0x660   : > { %8035 = vrot.lane.b32.xlu1 %v8032_v52, %s9772_s23  ;;  %v8874_v52 = vld [vmem:[%s10970_s2 + $0xc] sm:$0x3] }
 0x662   : > { %7240 = vrot.lane.b32.xlu0 %v7239_v54, %s9770_s19  ;;  %v8909_v54 = vld [vmem:[%s10970_s2 + $0xc] sm:$0x3] }
 0x664   : > { %8203 = vrot.lane.b32.xlu1 %v8202_v56, %s9770_s19  ;;  %v8877_v56 = vld [vmem:[%s10970_s2 + $0xe] sm:$0x3] }
 0x666   : > { %7329 = vrot.lane.b32.xlu0 %v7328_v58, %s9771_s22 }
 0x668   : > { %8292 = vrot.lane.b32.xlu1 %v8291_v4, %s9771_s22 }
 0x66a   : > { %7417 = vrot.lane.b32.xlu0 %v8878_v19, %s9776_s10 }
 0x66c   : > { %8380 = vrot.lane.b32.xlu1 %v8913_v61, %s9776_s10  ;;  %v8912_v61 = vld [vmem:[%s10970_s2 + $0xe] sm:$0x3] }
 0x66e   : > { %7506 = vrot.lane.b32.xlu0 %v7505_v5, %s9769_s16 }
 0x670   : > { %8469 = vrot.lane.b32.xlu1 %v8468_v63, %s9769_s16 }
 0x672   : > { %1319 = vperm.xlu0 %9756, %v288_v3  }
 0x674   : > { %1325 = vperm.xlu1 %9757, %v289_v6   ;;  %v8881_v6 = vld [vmem:[%s10970_s2 + $0x10] sm:$0x3] }
 0x6aa   : > { %v6797_v22 = vpop.permute.xlu0 %6796 }
 0x6ac   : > { %v6799_v7 = vpop.permute.xlu1 %6798 }
 0x6ad   : > { %v6800_v12 = vsel %vm489_vm9, %v6797_v22, %v6799_v7  ;;  %v8916_v22 = vld [vmem:[%s10970_s2 + $0x10] sm:$0x3] }
 0x6ae   : > { %9481 = vmatpush3.msk.msra.mxu1 %vm282_vm1, %v6800_v12 }
 0x6af   : > { %9483 = vmatmul.mubr.msk.f32.vlgmr.msra.gmra.mrb[14].mxu1 %vm297_vm4, %v8857_v8  ;;  %9485 = vmatprep.subr.mxu1 %v9766_v1 }
 0x6b0   : > { %9487 = vmatprep.mubr.msk.f32.mxu1 %vm9767_vm0, %v9766_v1 }
 0x6b8   : > { %v7760_v45 = vpop.permute.xlu0 %7759 }
 0x6ba   : > { %v7762_v9 = vpop.permute.xlu1 %7761 }
 0x6bb   : > { %v7763_v11 = vsel %vm489_vm9, %v7760_v45, %v7762_v9 }
 0x6bc   : > { %9536 = vmatpush3.msk.msra.mxu0 %vm282_vm1, %v7763_v11  ;;  %v6886_v13 = vpop.permute.xlu0 %6885 }
 0x6bd   : > { %9538 = vmatmul.mubr.msk.f32.vlgmr.msra.gmra.mrb[14].mxu0 %vm297_vm4, %v8892_v10  ;;  %9540 = vmatprep.subr.mxu0 %v9766_v1 }
 0x6be   : > { %v6888_v14 = vpop.permute.xlu1 %6887  ;;  %9542 = vmatprep.mubr.msk.f32.mxu0 %vm9767_vm0, %v9766_v1 }
 0x6bf   : > { %v6889_v17 = vsel %vm579_vm10, %v6886_v13, %v6888_v14 }
 0x6c0   : > { %v7849_v18 = vpop.permute.xlu0 %7848  ;;  %9486 = vmatpush3.msk.msra.mxu1 %vm282_vm1, %v6889_v17 }
 0x6c1   : > { %9488 = vmatmul.mubr.msk.f32.vlgmr.msra.gmra.mrb[14].mxu1 %vm297_vm4, %v6785_v15  ;;  %9490 = vmatprep.subr.mxu1 %v9766_v1 }
 0x6c2   : > { %v7851_v19 = vpop.permute.xlu1 %7850  ;;  %9492 = vmatprep.mubr.msk.f32.mxu1 %vm9767_vm0, %v9766_v1 }
 0x6c3   : > { %v7852_v21 = vsel %vm579_vm10, %v7849_v18, %v7851_v19 }
 0x6c4   : > { %v6978_v23 = vpop.permute.xlu0 %6977  ;;  %9541 = vmatpush3.msk.msra.mxu0 %vm282_vm1, %v7852_v21 }
 0x6c5   : > { %9543 = vmatmul.mubr.msk.f32.vlgmr.msra.gmra.mrb[14].mxu0 %vm297_vm4, %v7748_v20  ;;  %9545 = vmatprep.subr.mxu0 %v9766_v1 }
 0x6c6   : > { %v6980_v24 = vpop.permute.xlu1 %6979  ;;  %9547 = vmatprep.mubr.msk.f32.mxu0 %vm9767_vm0, %v9766_v1 }
 0x6c7   : > { %v6981_v25 = vsel %vm691_vm11, %v6978_v23, %v6980_v24 }
 0x6c8   : > { %v7941_v26 = vpop.permute.xlu0 %7940  ;;  %9491 = vmatpush3.msk.msra.mxu1 %vm282_vm1, %v6981_v25 }
 0x6c9   : > { %9493 = vmatmul.mubr.msk.f32.vlgmr.msra.gmra.mrb[14].mxu1 %vm297_vm4, %v8862_v2  ;;  %9495 = vmatprep.subr.mxu1 %v9766_v1 }
 0x6ca   : > { %v7943_v27 = vpop.permute.xlu1 %7942  ;;  %9497 = vmatprep.mubr.msk.f32.mxu1 %vm9767_vm0, %v9766_v1 }
 0x6cb   : > { %v7944_v30 = vsel %vm691_vm11, %v7941_v26, %v7943_v27 }
 0x6cc   : > { %v7071_v31 = vpop.permute.xlu0 %7070  ;;  %9546 = vmatpush3.msk.msra.mxu0 %vm282_vm1, %v7944_v30 }
 0x6cd   : > { %9548 = vmatmul.mubr.msk.f32.vlgmr.msra.gmra.mrb[14].mxu0 %vm297_vm4, %v8897_v29  ;;  %9550 = vmatprep.subr.mxu0 %v9766_v1 }
 0x6ce   : > { %v7073_v34 = vpop.permute.xlu1 %7072  ;;  %9552 = vmatprep.mubr.msk.f32.mxu0 %vm9767_vm0, %v9766_v1 }
 0x6cf   : > { %v7074_v37 = vsel %vm792_vm12, %v7071_v31, %v7073_v34 }
 0x6d0   : > { %9496 = vmatpush3.msk.msra.mxu1 %vm282_vm1, %v7074_v37  ;;  %v8034_v28 = vpop.permute.xlu0 %8033 }
 0x6d1   : > { %9498 = vmatmul.mubr.msk.f32.vlgmr.msra.gmra.mrb[14].mxu1 %vm297_vm4, %v8865_v36  ;;  %9500 = vmatprep.subr.mxu1 %v9766_v1 }
 0x6d2   : > { %9501 = vmatpush3.msk.msra.mxu1 %vm282_vm1, %v10726_v16  ;;  %v8036_v38 = vpop.permute.xlu1 %8035  ;;  %9502 = vmatprep.mubr.msk.f32.mxu1 %vm9767_vm0, %v9766_v1  ;;  %v8868_v16 = vld [vmem:[%s10970_s2 + $0x8] sm:$0x3] }
 0x6d3   : > { %v8037_v40 = vsel %vm792_vm12, %v8034_v28, %v8036_v38  ;;  %9505 = vmatprep.subr.mxu1 %v9766_v1 }
 0x6d4   : > { %9551 = vmatpush3.msk.msra.mxu0 %vm282_vm1, %v8037_v40  ;;  %v7241_v42 = vpop.permute.xlu0 %7240 }
 0x6d5   : > { %9553 = vmatmul.mubr.msk.f32.vlgmr.msra.gmra.mrb[14].mxu0 %vm297_vm4, %v8900_v39  ;;  %9555 = vmatprep.subr.mxu0 %v9766_v1 }
 0x6d6   : > { %9556 = vmatpush3.msk.msra.mxu0 %vm282_vm1, %v10755_v48  ;;  %9557 = vmatprep.mubr.msk.f32.mxu0 %vm9767_vm0, %v9766_v1  ;;  %v8204_v44 = vpop.permute.xlu1 %8203  ;;  %v8906_v48 = vld [vmem:[%s10970_s2 + $0xa] sm:$0x3] }
 0x6d7   : > { %9560 = vmatprep.subr.mxu0 %v9766_v1 }
 0x6d8   : > { %v7330_v46 = vpop.permute.xlu0 %7329 }
 0x6d9   : > { %9503 = vmatmul.mubr.msk.f32.vlgmr.msra.gmra.mrb[14].mxu1 %vm297_vm4, %v8868_v16 }
 0x6da   : > { %9506 = vmatpush3.msk.msra.mxu1 %vm282_vm1, %v7241_v42  ;;  %9507 = vmatprep.mubr.msk.f32.mxu1 %vm9767_vm0, %v9766_v1  ;;  %v8293_v51 = vpop.permute.xlu1 %8292 }
 0x6db   : > { %9510 = vmatprep.subr.mxu1 %v9766_v1 }
 0x6dc   : > { %v7418_v50 = vpop.permute.xlu0 %7417 }
 0x6dd   : > { %9558 = vmatmul.mubr.msk.f32.vlgmr.msra.gmra.mrb[14].mxu0 %vm297_vm4, %v8903_v43 }
 0x6de   : > { %9561 = vmatpush3.msk.msra.mxu0 %vm282_vm1, %v8204_v44  ;;  %9562 = vmatprep.mubr.msk.f32.mxu0 %vm9767_vm0, %v9766_v1  ;;  %v8381_v53 = vpop.permute.xlu1 %8380 }
 0x6df   : > { %9565 = vmatprep.subr.mxu0 %v9766_v1 }
 0x6e0   : > { %v7507_v55 = vpop.permute.xlu0 %7506 }
 0x6e1   : > { %9508 = vmatmul.mubr.msk.f32.vlgmr.msra.gmra.mrb[14].mxu1 %vm297_vm4, %v8871_v41 }
 0x6e2   : > { %9511 = vmatpush3.msk.msra.mxu1 %vm282_vm1, %v7330_v46  ;;  %9512 = vmatprep.mubr.msk.f32.mxu1 %vm9767_vm0, %v9766_v1  ;;  %v8470_v57 = vpop.permute.xlu1 %8469 }
 0x6e3   : > { %9515 = vmatprep.subr.mxu1 %v9766_v1 }
 0x6e5   : > { %9563 = vmatmul.mubr.msk.f32.vlgmr.msra.gmra.mrb[14].mxu0 %vm297_vm4, %v8906_v48 }
 0x6e6   : > { %9566 = vmatpush3.msk.msra.mxu0 %vm282_vm1, %v8293_v51  ;;  %9567 = vmatprep.mubr.msk.f32.mxu0 %vm9767_vm0, %v9766_v1 }
 0x6e7   : > { %9570 = vmatprep.subr.mxu0 %v9766_v1 }
 0x6e9   : > { %9513 = vmatmul.mubr.msk.f32.vlgmr.msra.gmra.mrb[14].mxu1 %vm297_vm4, %v8874_v52 }
 0x6ea   : > { %9516 = vmatpush3.msk.msra.mxu1 %vm282_vm1, %v7418_v50  ;;  %9517 = vmatprep.mubr.msk.f32.mxu1 %vm9767_vm0, %v9766_v1 }
 0x6eb   : > { %9520 = vmatprep.subr.mxu1 %v9766_v1 }
 0x6ed   : > { %9568 = vmatmul.mubr.msk.f32.vlgmr.msra.gmra.mrb[14].mxu0 %vm297_vm4, %v8909_v54 }
 0x6ee   : > { %9571 = vmatpush3.msk.msra.mxu0 %vm282_vm1, %v8381_v53  ;;  %9572 = vmatprep.mubr.msk.f32.mxu0 %vm9767_vm0, %v9766_v1 }
 0x6ef   : > { %9575 = vmatprep.subr.mxu0 %v9766_v1 }
 0x6f1   : > { %v1320_v58 = vpop.permute.xlu0 %1319  ;;  %9518 = vmatmul.mubr.msk.f32.vlgmr.msra.gmra.mrb[14].mxu1 %vm297_vm4, %v8877_v56 }
 0x6f2   : > { %v1322_v4 = vmul.f32 %v1320_v58, %v10189_v33  ;;  %v2369_v59 = vmul.f32 %v10191_v35, %v1320_v58  ;;  %v3412_v32 = vmul.f32 %v10459_v47, %v1320_v58  ;;  %v4455_v60 = vmul.f32 %v10461_v49, %v1320_v58  ;;  %9521 = vmatpush3.msk.msra.mxu1 %vm282_vm1, %v7507_v55 }
 0x6f3   : > { %v5498_v5 = vmul.f32 %v10720_v62, %v1320_v58  ;;  %v6541_v63 = vmul.f32 %v10722_v0, %v1320_v58  ;;  %v1326_v33 = vpop.permute.xlu1 %1325  ;;  %9522 = vmatprep.mubr.msk.f32.mxu1 %vm9767_vm0, %v9766_v1 }
 0x6f4   : > { %v1328_v35 = vadd.f32 %v1326_v33, %v1322_v4  ;;  %v2370_v47 = vadd.f32 %v2369_v59, %v1326_v33  ;;  %v3413_v49 = vadd.f32 %v3412_v32, %v1326_v33  ;;  %v4456_v62 = vadd.f32 %v4455_v60, %v1326_v33 }
 0x6f5   : > { %v5499_v0 = vadd.f32 %v5498_v5, %v1326_v33  ;;  %v6542_v3 = vadd.f32 %v6541_v63, %v1326_v33  ;;  %9573 = vmatmul.mubr.msk.f32.vlgmr.msra.gmra.mrb[14].mxu0 %vm297_vm4, %v8912_v61 }
 0x6f6   : > { %1329 = vst.msk [vmem:[%s10933_s9] sm:$0x3] %vm451_vm5, %v1328_v35  ;;  %8689 = vst.msk [vmem:[%s10933_s9 + $0x2] sm:$0x3] %vm451_vm5, %v2370_v47  ;;  %9576 = vmatpush3.msk.msra.mxu0 %vm282_vm1, %v8470_v57  ;;  %9577 = vmatprep.mubr.msk.f32.mxu0 %vm9767_vm0, %v9766_v1 }
 0x6f7   : > { %8728 = vst.msk [vmem:[%s10933_s9 + $0x4] sm:$0x3] %vm451_vm5, %v3413_v49  ;;  %8767 = vst.msk [vmem:[%s10933_s9 + $0x6] sm:$0x3] %vm451_vm5, %v4456_v62 }
 0x6f8   : > { %8806 = vst.msk [vmem:[%s10933_s9 + $0x8] sm:$0x3] %vm451_vm5, %v5499_v0  ;;  %8845 = vst.msk [vmem:[%s10933_s9 + $0xa] sm:$0x3] %vm451_vm5, %v6542_v3 }
 0x6f9   : > { %9523 = vmatmul.mubr.msk.f32.vlgmr.msra.gmra.mrb[14].mxu1 %vm297_vm4, %v8881_v6 }
 0x6fd   : > { %9578 = vmatmul.mubr.msk.f32.vlgmr.msra.gmra.mrb[14].mxu0 %vm297_vm4, %v8916_v22 }
 0x7cc   : > { %v7579_v7 = vpop.f32.mrb[14].mxu1 }
 0x7cd   : > { %v7584_v8 = vmul.f32 %v7579_v7, %v1320_v58  ;;  %v9524_v12 = vpop.f32.mrb[15].mxu1 }
 0x7cf   : > { %v7585_v45 = vadd.f32 %v7584_v8, %v1326_v33 }
 0x7d0   : > { %v8542_v9 = vpop.f32.mrb[14].mxu0 }
 0x7d1   : > { %8884 = vst.msk [vmem:[%s10933_s9 + $0xc] sm:$0x3] %vm451_vm5, %v7585_v45  ;;  %v8547_v1 = vmul.f32 %v8542_v9, %v1320_v58  ;;  %v9579_v10 = vpop.f32.mrb[15].mxu0 }
 0x7d3   : > { %v8548_v11 = vadd.f32 %v8547_v1, %v1326_v33 }
 0x7d5   : > { %8919 = vst.msk [vmem:[%s10933_s9 + $0xe] sm:$0x3] %vm451_vm5, %v8548_v11 }
 0x7d6 PF: > { %s17_s24 = sadd.s32 1, %s9764_s24  }
 0x7d7   : > { %p14_p4 = scmp.ge.s32.totalorder %s17_s24, 4  }
 0x7d9   :  { %16 = sbr.rel (!%p14_p4) target bundleno = 1 (0x1), region = 102 }

</bundles_post_ra>
